<compile_context>
chip_gen: v7x
topology: tpu7x:2x2x1
jax: 0.10.0
libtpu: 0.0.40
codegen_flags: <defaults>
</compile_context>

<pallas_src>
import functools

import jax
import jax.numpy as jnp
from jax import lax
from jax.experimental import pallas as pl
from jax.experimental.pallas import tpu as pltpu


# Packed per-row online-softmax state: one (tb, 128) f32 VMEM scratch.
_M_D, _M_S, _M_E = 0, 1, 2    # running maxes (init -inf)
_L_D, _L_S, _L_E = 3, 4, 5    # running exp-sums
_T_D, _T_S, _T_E = 6, 7, 8    # target logits (in-batch col for d/s, col 0 for e)
_A_D, _A_S = 9, 10            # teacher-weighted sums  sum_k exp(e_k - m_e)*{d,s}_k


def infonce_kernel(qd_ref, pd_ref, qs_ref, ps_ref, out_ref, state_ref, *,
                   group_size, inv_temp, chunk, approx_recip):
    i = pl.program_id(0)          # query-row block (parallel)
    j = pl.program_id(1)          # passage-column block (reduction, last)
    nj = pl.num_programs(1)

    tb = qd_ref.shape[0]
    tp = pd_ref.shape[0]
    n_chunks = tp // chunk

    def col(k):
        return state_ref[:, k:k + 1]

    def set_col(k, v):
        state_ref[:, k:k + 1] = v

    # ---- init packed online-softmax state at the first passage tile ---------
    @pl.when(j == 0)
    def _():
        lane = lax.broadcasted_iota(jnp.int32, state_ref.shape, 1)
        state_ref[...] = jnp.where(lane < 3, -jnp.inf, 0.0).astype(jnp.float32)

    qd = qd_ref[...]              # [tb, D]  (bf16 by default)
    qs = qs_ref[...]              # [tb, Ds]

    row0 = i * tb
    col0 = j * tp
    row_iota = lax.broadcasted_iota(jnp.int32, (tb, 1), 0)
    tgt_col = (row0 + row_iota) * group_size          # (tb,1) global target cols

    dn = (((1,), (1,)), ((), ()))                     # contract last dims: A @ B^T

    def chunk_body(c, carry):
        start = pl.multiple_of(c * chunk, chunk)
        base = col0 + c * chunk                       # global first column of chunk

        pd_c = pd_ref[pl.ds(start, chunk), :]         # [chunk, D]
        ps_c = ps_ref[pl.ds(start, chunk), :]         # [chunk, Ds]

        # f32 MXU accumulation; temperature applied in f32 (not pre-folded).
        d_tile = lax.dot_general(qd, pd_c, dn,
                                 preferred_element_type=jnp.float32) * inv_temp
        s_tile = lax.dot_general(qs, ps_c, dn,
                                 preferred_element_type=jnp.float32) * inv_temp
        e_tile = d_tile + 0.3 * s_tile

        # ---- ensemble (teacher) stream first, while d/s tiles are both live --
        m_e_old = col(_M_E)
        m_e_new = jnp.maximum(m_e_old, jnp.max(e_tile, axis=-1, keepdims=True))
        alpha_e = jnp.exp(m_e_old - m_e_new)
        p_e = jnp.exp(e_tile - m_e_new)               # unnormalized teacher
        set_col(_L_E, alpha_e * col(_L_E) + jnp.sum(p_e, axis=-1, keepdims=True))
        set_col(_A_D, alpha_e * col(_A_D)
                + jnp.sum(p_e * d_tile, axis=-1, keepdims=True))
        set_col(_A_S, alpha_e * col(_A_S)
                + jnp.sum(p_e * s_tile, axis=-1, keepdims=True))
        set_col(_M_E, m_e_new)

        # Ensemble CE uses target column 0 (faithful to the PyTorch code).
        @pl.when(base == 0)
        def _():
            set_col(_T_E, e_tile[:, 0:1])

        # In-batch-negative targets: global column = global_row * group_size.
        has_tgt = jnp.logical_and(base <= (row0 + tb - 1) * group_size,
                                  row0 * group_size < base + chunk)

        @pl.when(has_tgt)
        def _():
            col_iota = lax.broadcasted_iota(jnp.int32, (tb, chunk), 1) + base
            mask = col_iota == tgt_col                # per-row single column
            set_col(_T_D, col(_T_D) + jnp.sum(jnp.where(mask, d_tile, 0.0),
                                              axis=-1, keepdims=True))
            set_col(_T_S, col(_T_S) + jnp.sum(jnp.where(mask, s_tile, 0.0),
                                              axis=-1, keepdims=True))

        # ---- dense stream logsumexp ------------------------------------------
        m_d_old = col(_M_D)
        m_d_new = jnp.maximum(m_d_old, jnp.max(d_tile, axis=-1, keepdims=True))
        set_col(_L_D, jnp.exp(m_d_old - m_d_new) * col(_L_D)
                + jnp.sum(jnp.exp(d_tile - m_d_new), axis=-1, keepdims=True))
        set_col(_M_D, m_d_new)

        # ---- sparse stream logsumexp -----------------------------------------
        m_s_old = col(_M_S)
        m_s_new = jnp.maximum(m_s_old, jnp.max(s_tile, axis=-1, keepdims=True))
        set_col(_L_S, jnp.exp(m_s_old - m_s_new) * col(_L_S)
                + jnp.sum(jnp.exp(s_tile - m_s_new), axis=-1, keepdims=True))
        set_col(_M_S, m_s_new)
        return carry

    lax.fori_loop(0, n_chunks, chunk_body, 0, unroll=True)

    # ---- finalize per-row loss at the last passage tile ----------------------
    @pl.when(j == nj - 1)
    def _():
        lse_d = col(_M_D) + jnp.log(col(_L_D))
        lse_s = col(_M_S) + jnp.log(col(_L_S))
        lse_e = col(_M_E) + jnp.log(col(_L_E))

        ce_d = lse_d - col(_T_D)
        ce_s = lse_s - col(_T_S)
        ce_e = lse_e - col(_T_E)

        l_e = col(_L_E)
        if approx_recip:
            inv_le = pl.reciprocal(l_e, approx=True)
        else:
            inv_le = 1.0 / l_e
        # KL self-distill: lse_student - E_{softmax(ens)}[student]
        kd_d = lse_d - col(_A_D) * inv_le
        kd_s = lse_s - col(_A_S) * inv_le

        loss_row = (ce_d + ce_e + 0.1 * ce_s) / 3.0 + (kd_d + 0.1 * kd_s) / 2.0
        out_ref[...] = 0.5 * loss_row


def custom_infonce_loss(q_dense, p_dense, q_sparse, p_sparse, temperature, *,
                        tb=64, tp=512, chunk=128,
                        compute_dtype=jnp.bfloat16):
    """Forward loss of CustomInfoNCELoss given encoder outputs.

    q_dense: [B, D], p_dense: [B*G, D], q_sparse: [B, Ds], p_sparse: [B*G, Ds].
    """
    B, D = q_dense.shape
    P = p_dense.shape[0]
    Ds = q_sparse.shape[1]
    assert P % B == 0, "passages must be B * group_size rows"
    group_size = P // B

    tb = min(tb, B)
    tp = min(tp, P)
    # TODO(synk): pad B/P (with -inf score masking) for non-divisible shapes.
    assert B % tb == 0 and P % tp == 0, "B/P must be multiples of the tiles"
    assert tb % 8 == 0 and (tp % 128 == 0 or tp == P), "tile/layout constraint"
    chunk = min(chunk, tp)
    assert tp % chunk == 0 and (chunk % 8 == 0 or chunk == tp)

    inv_temp = 1.0 / float(temperature)
    itemsize = jnp.dtype(compute_dtype).itemsize

    # Rough per-step VMEM footprint (double-buffered DMA blocks + scratch).
    def _vmem_bytes(tp_):
        per_step = (tb * (D + Ds) + tp_ * (D + Ds)) * itemsize
        return 2 * per_step + tb * 128 * 4 + 2 * tb * 4

    budget = 40 << 20   # conservative: fits v7x's 64 MiB physical VMEM
    while _vmem_bytes(tp) > budget and tp > chunk and tp % (2 * chunk) == 0:
        tp //= 2
    vmem_limit = int(min(48 << 20, max(16 << 20, 2 * _vmem_bytes(tp) + (2 << 20))))

    # Unit-scale reps cast to compute dtype; temperature applied in-kernel (f32).
    qd = q_dense.astype(compute_dtype)          # [B, D]
    qs = q_sparse.astype(compute_dtype)         # [B, Ds]
    pd = p_dense.astype(compute_dtype)          # [P, D]  (no wrapper transpose)
    ps = p_sparse.astype(compute_dtype)         # [P, Ds]

    kernel = functools.partial(
        infonce_kernel, group_size=group_size, inv_temp=inv_temp, chunk=chunk,
        approx_recip=(compute_dtype == jnp.bfloat16))

    grid = (B // tb, P // tp)

    row_loss = pl.pallas_call(
        kernel,
        out_shape=jax.ShapeDtypeStruct((B, 1), jnp.float32),
        grid_spec=pltpu.PrefetchScalarGridSpec(
            num_scalar_prefetch=0,
            grid=grid,
            in_specs=[
                pl.BlockSpec((tb, D), lambda i, j: (i, 0)),    # q_dense block
                pl.BlockSpec((tp, D), lambda i, j: (j, 0)),    # p_dense block
                pl.BlockSpec((tb, Ds), lambda i, j: (i, 0)),   # q_sparse block
                pl.BlockSpec((tp, Ds), lambda i, j: (j, 0)),   # p_sparse block
            ],
            out_specs=pl.BlockSpec((tb, 1), lambda i, j: (i, 0)),
            scratch_shapes=[pltpu.VMEM((tb, 128), jnp.float32)],
        ),
        compiler_params=pltpu.CompilerParams(
            dimension_semantics=("parallel", "arbitrary"),
            vmem_limit_bytes=vmem_limit),
    )(qd, pd, qs, ps)

    # Tiny scalar epilogue: all loss terms are means over the same B rows.
    return jnp.mean(row_loss)


def reference_loss(q_dense, p_dense, q_sparse, p_sparse, temperature,
                   compute_dtype=jnp.float32):
    """Pure-JAX reference mirroring the PyTorch forward (matched matmul dtype)."""
    B = q_dense.shape[0]
    P = p_dense.shape[0]
    G = P // B
    inv_temp = 1.0 / float(temperature)

    qd = q_dense.astype(compute_dtype)
    qs = q_sparse.astype(compute_dtype)
    pd = p_dense.astype(compute_dtype)
    ps = p_sparse.astype(compute_dtype)

    dense_scores = jnp.dot(qd, pd.T, preferred_element_type=jnp.float32) * inv_temp
    sparse_scores = jnp.dot(qs, ps.T, preferred_element_type=jnp.float32) * inv_temp

    def ce(scores, targets):
        ls = jax.nn.log_softmax(scores, axis=-1)
        return -jnp.mean(ls[jnp.arange(scores.shape[0]), targets])

    targets = jnp.arange(B) * G
    dense_loss = ce(dense_scores, targets)
    sparse_loss = ce(sparse_scores, targets)
    ensemble_scores = dense_scores + 0.3 * sparse_scores
    ensemble_loss = ce(ensemble_scores, jnp.zeros((B,), jnp.int32))
    loss = (dense_loss + ensemble_loss + 0.1 * sparse_loss) / 3.0
    teacher = jax.nn.softmax(ensemble_scores, axis=-1)
    dkd = -jnp.mean(jnp.sum(jax.nn.log_softmax(dense_scores, -1) * teacher, -1))
    skd = -jnp.mean(jnp.sum(jax.nn.log_softmax(sparse_scores, -1) * teacher, -1))
    loss = loss + (dkd + 0.1 * skd) / 2.0
    return loss / 2.0


if __name__ == "__main__":
    # Small deterministic synthetic shapes: B queries, G passages per query
    # (1 positive + G-1 negatives, flattened), dense dim D, sparse dim Ds.
    # Chosen so the demo exercises both grid axes (2 query blocks x 2 passage
    # blocks x 2 inner lane chunks) while staying tiny.
    B, G, D, Ds = 128, 4, 128, 256
    P = B * G
    temperature = 0.05

    key = jax.random.PRNGKey(0)
    k1, k2, k3, k4 = jax.random.split(key, 4)
    q_dense = jax.random.normal(k1, (B, D), jnp.float32)
    p_dense = jax.random.normal(k2, (P, D), jnp.float32)
    # dense reps are L2-normalized in practice
    q_dense = q_dense / jnp.linalg.norm(q_dense, axis=-1, keepdims=True)
    p_dense = p_dense / jnp.linalg.norm(p_dense, axis=-1, keepdims=True)
    # sparse reps are small non-negative activations
    q_sparse = jax.nn.relu(jax.random.normal(k3, (B, Ds), jnp.float32)) * 0.05
    p_sparse = jax.nn.relu(jax.random.normal(k4, (P, Ds), jnp.float32)) * 0.05

    # f32 path (strict parity with the PyTorch math; exact reciprocal).
    loss_f32 = custom_infonce_loss(q_dense, p_dense, q_sparse, p_sparse,
                                   temperature, tb=64, tp=256, chunk=128,
                                   compute_dtype=jnp.float32)
    loss_f32 = jax.block_until_ready(loss_f32)
    ref_f32 = reference_loss(q_dense, p_dense, q_sparse, p_sparse,
                             temperature, compute_dtype=jnp.float32)
    assert jnp.allclose(loss_f32, ref_f32, rtol=1e-4, atol=1e-4), (
        loss_f32, ref_f32)

    # bf16-MXU path (default, perf-preferred) vs a bf16-matched reference.
    loss_bf16 = custom_infonce_loss(q_dense, p_dense, q_sparse, p_sparse,
                                    temperature, tb=64, tp=256, chunk=128,
                                    compute_dtype=jnp.bfloat16)
    loss_bf16 = jax.block_until_ready(loss_bf16)
    ref_bf16 = reference_loss(q_dense, p_dense, q_sparse, p_sparse,
                              temperature, compute_dtype=jnp.bfloat16)
    assert jnp.allclose(loss_bf16, ref_bf16, rtol=5e-3, atol=5e-3), (
        loss_bf16, ref_bf16)

    print("KERNEL_OK")
</pallas_src>

<mosaic_0001>
module attributes {stable_mosaic.version = 11 : i64} {
  func.func @infonce_kernel(%arg0: i32, %arg1: i32, %arg2: memref<64x128xf32, #tpu.memory_space<vmem>>, %arg3: memref<256x128xf32, #tpu.memory_space<vmem>>, %arg4: memref<64x256xf32, #tpu.memory_space<vmem>>, %arg5: memref<256x256xf32, #tpu.memory_space<vmem>>, %arg6: memref<64x1xf32, #tpu.memory_space<vmem>>, %arg7: memref<64x128xf32, #tpu.memory_space<vmem>>) attributes {dimension_semantics = [#tpu.dimension_semantics<parallel>, #tpu.dimension_semantics<arbitrary>], iteration_bounds = array<i64: 2, 2>, scalar_prefetch = 0 : i64, scratch_operands = 1 : i64, tpu.core_type = #tpu.core_type<tc>, window_params = [{transform_indices = @transform_0, window_bounds = array<i64: 64, 128>}, {transform_indices = @transform_1, window_bounds = array<i64: 256, 128>}, {transform_indices = @transform_2, window_bounds = array<i64: 64, 256>}, {transform_indices = @transform_3, window_bounds = array<i64: 256, 256>}, {transform_indices = @transform_4, window_bounds = array<i64: 64, 1>}]} {
    %c0_i32 = arith.constant 0 : i32
    %0 = arith.cmpi eq, %arg1, %c0_i32 : i32
    %1 = arith.extui %0 : i1 to i32
    %c0_i32_0 = arith.constant 0 : i32
    %2 = arith.cmpi ne, %1, %c0_i32_0 : i32
    scf.if %2 {
      %199 = tpu.iota {dimensions = array<i32: 1>} : vector<64x128xi32>
      %c3_i32 = arith.constant 3 : i32
      %200 = vector.broadcast %c3_i32 : i32 to vector<64x128xi32>
      %201 = arith.cmpi slt, %199, %200 : vector<64x128xi32>
      %cst_112 = arith.constant 0xFF800000 : f32
      %cst_113 = arith.constant 0.000000e+00 : f32
      %202 = vector.broadcast %cst_112 : f32 to vector<64x128xf32>
      %203 = vector.broadcast %cst_113 : f32 to vector<64x128xf32>
      %204 = arith.select %201, %202, %203 : vector<64x128xi1>, vector<64x128xf32>
      %c0_114 = arith.constant 0 : index
      %c0_115 = arith.constant 0 : index
      %205 = vector.load %arg7[%c0_114, %c0_115] : memref<64x128xf32, #tpu.memory_space<vmem>>, vector<64x128xf32>
      tpu.vector_store %arg7[%c0_114, %c0_115], %204 {strides = array<i32>} : memref<64x128xf32, #tpu.memory_space<vmem>>, vector<64x128xf32>,
    } else {
    }
    %c0 = arith.constant 0 : index
    %c0_1 = arith.constant 0 : index
    %3 = vector.load %arg2[%c0, %c0_1] : memref<64x128xf32, #tpu.memory_space<vmem>>, vector<64x128xf32>
    %c0_2 = arith.constant 0 : index
    %c0_3 = arith.constant 0 : index
    %4 = vector.load %arg4[%c0_2, %c0_3] : memref<64x256xf32, #tpu.memory_space<vmem>>, vector<64x256xf32>
    %c64_i32 = arith.constant 64 : i32
    %5 = arith.muli %arg0, %c64_i32 : i32
    %c256_i32 = arith.constant 256 : i32
    %6 = arith.muli %arg1, %c256_i32 : i32
    %7 = tpu.iota {dimensions = array<i32: 0>} : vector<64x1xi32>
    %8 = vector.broadcast %5 : i32 to vector<64x1xi32>
    %9 = arith.addi %8, %7 : vector<64x1xi32>
    %c4_i32 = arith.constant 4 : i32
    %10 = vector.broadcast %c4_i32 : i32 to vector<64x1xi32>
    %11 = arith.muli %9, %10 : vector<64x1xi32>
    %c0_i32_4 = arith.constant 0 : i32
    %c128_i32 = arith.constant 128 : i32
    %12 = arith.muli %c0_i32_4, %c128_i32 : i32
    %13 = tpu.assume_multiple %12, 128 : i32
    %c128_i32_5 = arith.constant 128 : i32
    %14 = arith.muli %c0_i32_4, %c128_i32_5 : i32
    %15 = arith.addi %6, %14 : i32
    %16 = arith.index_cast %13 : i32 to index
    %c0_6 = arith.constant 0 : index
    %17 = vector.load %arg3[%16, %c0_6] : memref<256x128xf32, #tpu.memory_space<vmem>>, vector<128x128xf32>
    %18 = arith.index_cast %13 : i32 to index
    %c0_7 = arith.constant 0 : index
    %19 = vector.load %arg5[%18, %c0_7] : memref<256x256xf32, #tpu.memory_space<vmem>>, vector<128x256xf32>
    %cst = arith.constant dense<0.000000e+00> : vector<64x128xf32>
    %20 = tpu.matmul %3, %17, %cst {dimension_numbers = #tpu.dot_dimension_numbers<[1], [1], [0], [0], [0, 0, 1, 0], [], []>} : vector<64x128xf32>, vector<128x128xf32>, vector<64x128xf32> -> vector<64x128xf32>
    %cst_8 = arith.constant 2.000000e+01 : f32
    %21 = vector.broadcast %cst_8 : f32 to vector<64x128xf32>
    %22 = arith.mulf %20, %21 : vector<64x128xf32>
    %cst_9 = arith.constant dense<0.000000e+00> : vector<64x128xf32>
    %23 = tpu.matmul %4, %19, %cst_9 {dimension_numbers = #tpu.dot_dimension_numbers<[1], [1], [0], [0], [0, 0, 1, 0], [], []>} : vector<64x256xf32>, vector<128x256xf32>, vector<64x128xf32> -> vector<64x128xf32>
    %cst_10 = arith.constant 2.000000e+01 : f32
    %24 = vector.broadcast %cst_10 : f32 to vector<64x128xf32>
    %25 = arith.mulf %23, %24 : vector<64x128xf32>
    %cst_11 = arith.constant 3.000000e-01 : f32
    %26 = vector.broadcast %cst_11 : f32 to vector<64x128xf32>
    %27 = arith.mulf %26, %25 : vector<64x128xf32>
    %28 = arith.addf %22, %27 : vector<64x128xf32>
    %c0_12 = arith.constant 0 : index
    %c2 = arith.constant 2 : index
    %29 = vector.load %arg7[%c0_12, %c2] : memref<64x128xf32, #tpu.memory_space<vmem>>, vector<64x1xf32>
    %cst_13 = arith.constant dense<0xFF800000> : vector<64xf32>
    %30 = vector.multi_reduction <maximumf>, %28, %cst_13 [1] : vector<64x128xf32> to vector<64xf32>
    %31 = vector.shape_cast %30 : vector<64xf32> to vector<64x1xf32>
    %32 = arith.maximumf %29, %31 : vector<64x1xf32>
    %33 = arith.subf %29, %32 : vector<64x1xf32>
    %34 = math.exp %33 : vector<64x1xf32>
    %35 = vector.broadcast %32 : vector<64x1xf32> to vector<64x128xf32>
    %36 = arith.subf %28, %35 : vector<64x128xf32>
    %37 = math.exp %36 : vector<64x128xf32>
    %c0_14 = arith.constant 0 : index
    %c5 = arith.constant 5 : index
    %38 = vector.load %arg7[%c0_14, %c5] : memref<64x128xf32, #tpu.memory_space<vmem>>, vector<64x1xf32>
    %39 = arith.mulf %34, %38 : vector<64x1xf32>
    %cst_15 = arith.constant dense<0.000000e+00> : vector<64xf32>
    %40 = vector.multi_reduction <add>, %37, %cst_15 [1] : vector<64x128xf32> to vector<64xf32>
    %41 = vector.shape_cast %40 : vector<64xf32> to vector<64x1xf32>
    %42 = arith.addf %39, %41 : vector<64x1xf32>
    %c0_16 = arith.constant 0 : index
    %c5_17 = arith.constant 5 : index
    %43 = vector.load %arg7[%c0_16, %c5_17] : memref<64x128xf32, #tpu.memory_space<vmem>>, vector<64x1xf32>
    tpu.vector_store %arg7[%c0_16, %c5_17], %42 {strides = array<i32>} : memref<64x128xf32, #tpu.memory_space<vmem>>, vector<64x1xf32>,
    %c0_18 = arith.constant 0 : index
    %c9 = arith.constant 9 : index
    %44 = vector.load %arg7[%c0_18, %c9] : memref<64x128xf32, #tpu.memory_space<vmem>>, vector<64x1xf32>
    %45 = arith.mulf %34, %44 : vector<64x1xf32>
    %46 = arith.mulf %37, %22 : vector<64x128xf32>
    %cst_19 = arith.constant dense<0.000000e+00> : vector<64xf32>
    %47 = vector.multi_reduction <add>, %46, %cst_19 [1] : vector<64x128xf32> to vector<64xf32>
    %48 = vector.shape_cast %47 : vector<64xf32> to vector<64x1xf32>
    %49 = arith.addf %45, %48 : vector<64x1xf32>
    %c0_20 = arith.constant 0 : index
    %c9_21 = arith.constant 9 : index
    %50 = vector.load %arg7[%c0_20, %c9_21] : memref<64x128xf32, #tpu.memory_space<vmem>>, vector<64x1xf32>
    tpu.vector_store %arg7[%c0_20, %c9_21], %49 {strides = array<i32>} : memref<64x128xf32, #tpu.memory_space<vmem>>, vector<64x1xf32>,
    %c0_22 = arith.constant 0 : index
    %c10 = arith.constant 10 : index
    %51 = vector.load %arg7[%c0_22, %c10] : memref<64x128xf32, #tpu.memory_space<vmem>>, vector<64x1xf32>
    %52 = arith.mulf %34, %51 : vector<64x1xf32>
    %53 = arith.mulf %37, %25 : vector<64x128xf32>
    %cst_23 = arith.constant dense<0.000000e+00> : vector<64xf32>
    %54 = vector.multi_reduction <add>, %53, %cst_23 [1] : vector<64x128xf32> to vector<64xf32>
    %55 = vector.shape_cast %54 : vector<64xf32> to vector<64x1xf32>
    %56 = arith.addf %52, %55 : vector<64x1xf32>
    %c0_24 = arith.constant 0 : index
    %c10_25 = arith.constant 10 : index
    %57 = vector.load %arg7[%c0_24, %c10_25] : memref<64x128xf32, #tpu.memory_space<vmem>>, vector<64x1xf32>
    tpu.vector_store %arg7[%c0_24, %c10_25], %56 {strides = array<i32>} : memref<64x128xf32, #tpu.memory_space<vmem>>, vector<64x1xf32>,
    %c0_26 = arith.constant 0 : index
    %c2_27 = arith.constant 2 : index
    %58 = vector.load %arg7[%c0_26, %c2_27] : memref<64x128xf32, #tpu.memory_space<vmem>>, vector<64x1xf32>
    tpu.vector_store %arg7[%c0_26, %c2_27], %32 {strides = array<i32>} : memref<64x128xf32, #tpu.memory_space<vmem>>, vector<64x1xf32>,
    %c0_i32_28 = arith.constant 0 : i32
    %59 = arith.cmpi eq, %15, %c0_i32_28 : i32
    %60 = arith.extui %59 : i1 to i32
    %c0_i32_29 = arith.constant 0 : i32
    %61 = arith.cmpi ne, %60, %c0_i32_29 : i32
    scf.if %61 {
      %199 = vector.extract_strided_slice %28 {offsets = [0, 0], sizes = [64, 1], strides = [1, 1]} : vector<64x128xf32> to vector<64x1xf32>
      %c0_112 = arith.constant 0 : index
      %c8 = arith.constant 8 : index
      %200 = vector.load %arg7[%c0_112, %c8] : memref<64x128xf32, #tpu.memory_space<vmem>>, vector<64x1xf32>
      tpu.vector_store %arg7[%c0_112, %c8], %199 {strides = array<i32>} : memref<64x128xf32, #tpu.memory_space<vmem>>, vector<64x1xf32>,
    } else {
    }
    %c64_i32_30 = arith.constant 64 : i32
    %62 = arith.addi %5, %c64_i32_30 : i32
    %c1_i32 = arith.constant 1 : i32
    %63 = arith.subi %62, %c1_i32 : i32
    %c4_i32_31 = arith.constant 4 : i32
    %64 = arith.muli %63, %c4_i32_31 : i32
    %65 = arith.cmpi sle, %15, %64 : i32
    %c4_i32_32 = arith.constant 4 : i32
    %66 = arith.muli %5, %c4_i32_32 : i32
    %c128_i32_33 = arith.constant 128 : i32
    %67 = arith.addi %15, %c128_i32_33 : i32
    %68 = arith.cmpi slt, %66, %67 : i32
    %69 = arith.andi %65, %68 : i1
    %70 = arith.extui %69 : i1 to i32
    %c0_i32_34 = arith.constant 0 : i32
    %71 = arith.cmpi ne, %70, %c0_i32_34 : i32
    scf.if %71 {
      %199 = tpu.iota {dimensions = array<i32: 1>} : vector<64x128xi32>
      %200 = vector.broadcast %15 : i32 to vector<64x128xi32>
      %201 = arith.addi %199, %200 : vector<64x128xi32>
      %202 = vector.broadcast %11 : vector<64x1xi32> to vector<64x128xi32>
      %203 = arith.cmpi eq, %201, %202 : vector<64x128xi32>
      %c0_112 = arith.constant 0 : index
      %c6 = arith.constant 6 : index
      %204 = vector.load %arg7[%c0_112, %c6] : memref<64x128xf32, #tpu.memory_space<vmem>>, vector<64x1xf32>
      %cst_113 = arith.constant 0.000000e+00 : f32
      %205 = vector.broadcast %cst_113 : f32 to vector<64x128xf32>
      %206 = arith.select %203, %22, %205 : vector<64x128xi1>, vector<64x128xf32>
      %cst_114 = arith.constant dense<0.000000e+00> : vector<64xf32>
      %207 = vector.multi_reduction <add>, %206, %cst_114 [1] : vector<64x128xf32> to vector<64xf32>
      %208 = vector.shape_cast %207 : vector<64xf32> to vector<64x1xf32>
      %209 = arith.addf %204, %208 : vector<64x1xf32>
      %c0_115 = arith.constant 0 : index
      %c6_116 = arith.constant 6 : index
      %210 = vector.load %arg7[%c0_115, %c6_116] : memref<64x128xf32, #tpu.memory_space<vmem>>, vector<64x1xf32>
      tpu.vector_store %arg7[%c0_115, %c6_116], %209 {strides = array<i32>} : memref<64x128xf32, #tpu.memory_space<vmem>>, vector<64x1xf32>,
      %c0_117 = arith.constant 0 : index
      %c7 = arith.constant 7 : index
      %211 = vector.load %arg7[%c0_117, %c7] : memref<64x128xf32, #tpu.memory_space<vmem>>, vector<64x1xf32>
      %cst_118 = arith.constant 0.000000e+00 : f32
      %212 = vector.broadcast %cst_118 : f32 to vector<64x128xf32>
      %213 = arith.select %203, %25, %212 : vector<64x128xi1>, vector<64x128xf32>
      %cst_119 = arith.constant dense<0.000000e+00> : vector<64xf32>
      %214 = vector.multi_reduction <add>, %213, %cst_119 [1] : vector<64x128xf32> to vector<64xf32>
      %215 = vector.shape_cast %214 : vector<64xf32> to vector<64x1xf32>
      %216 = arith.addf %211, %215 : vector<64x1xf32>
      %c0_120 = arith.constant 0 : index
      %c7_121 = arith.constant 7 : index
      %217 = vector.load %arg7[%c0_120, %c7_121] : memref<64x128xf32, #tpu.memory_space<vmem>>, vector<64x1xf32>
      tpu.vector_store %arg7[%c0_120, %c7_121], %216 {strides = array<i32>} : memref<64x128xf32, #tpu.memory_space<vmem>>, vector<64x1xf32>,
    } else {
    }
    %c0_35 = arith.constant 0 : index
    %c0_36 = arith.constant 0 : index
    %72 = vector.load %arg7[%c0_35, %c0_36] : memref<64x128xf32, #tpu.memory_space<vmem>>, vector<64x1xf32>
    %cst_37 = arith.constant dense<0xFF800000> : vector<64xf32>
    %73 = vector.multi_reduction <maximumf>, %22, %cst_37 [1] : vector<64x128xf32> to vector<64xf32>
    %74 = vector.shape_cast %73 : vector<64xf32> to vector<64x1xf32>
    %75 = arith.maximumf %72, %74 : vector<64x1xf32>
    %76 = arith.subf %72, %75 : vector<64x1xf32>
    %77 = math.exp %76 : vector<64x1xf32>
    %c0_38 = arith.constant 0 : index
    %c3 = arith.constant 3 : index
    %78 = vector.load %arg7[%c0_38, %c3] : memref<64x128xf32, #tpu.memory_space<vmem>>, vector<64x1xf32>
    %79 = arith.mulf %77, %78 : vector<64x1xf32>
    %80 = vector.broadcast %75 : vector<64x1xf32> to vector<64x128xf32>
    %81 = arith.subf %22, %80 : vector<64x128xf32>
    %82 = math.exp %81 : vector<64x128xf32>
    %cst_39 = arith.constant dense<0.000000e+00> : vector<64xf32>
    %83 = vector.multi_reduction <add>, %82, %cst_39 [1] : vector<64x128xf32> to vector<64xf32>
    %84 = vector.shape_cast %83 : vector<64xf32> to vector<64x1xf32>
    %85 = arith.addf %79, %84 : vector<64x1xf32>
    %c0_40 = arith.constant 0 : index
    %c3_41 = arith.constant 3 : index
    %86 = vector.load %arg7[%c0_40, %c3_41] : memref<64x128xf32, #tpu.memory_space<vmem>>, vector<64x1xf32>
    tpu.vector_store %arg7[%c0_40, %c3_41], %85 {strides = array<i32>} : memref<64x128xf32, #tpu.memory_space<vmem>>, vector<64x1xf32>,
    %c0_42 = arith.constant 0 : index
    %c0_43 = arith.constant 0 : index
    %87 = vector.load %arg7[%c0_42, %c0_43] : memref<64x128xf32, #tpu.memory_space<vmem>>, vector<64x1xf32>
    tpu.vector_store %arg7[%c0_42, %c0_43], %75 {strides = array<i32>} : memref<64x128xf32, #tpu.memory_space<vmem>>, vector<64x1xf32>,
    %c0_44 = arith.constant 0 : index
    %c1 = arith.constant 1 : index
    %88 = vector.load %arg7[%c0_44, %c1] : memref<64x128xf32, #tpu.memory_space<vmem>>, vector<64x1xf32>
    %cst_45 = arith.constant dense<0xFF800000> : vector<64xf32>
    %89 = vector.multi_reduction <maximumf>, %25, %cst_45 [1] : vector<64x128xf32> to vector<64xf32>
    %90 = vector.shape_cast %89 : vector<64xf32> to vector<64x1xf32>
    %91 = arith.maximumf %88, %90 : vector<64x1xf32>
    %92 = arith.subf %88, %91 : vector<64x1xf32>
    %93 = math.exp %92 : vector<64x1xf32>
    %c0_46 = arith.constant 0 : index
    %c4 = arith.constant 4 : index
    %94 = vector.load %arg7[%c0_46, %c4] : memref<64x128xf32, #tpu.memory_space<vmem>>, vector<64x1xf32>
    %95 = arith.mulf %93, %94 : vector<64x1xf32>
    %96 = vector.broadcast %91 : vector<64x1xf32> to vector<64x128xf32>
    %97 = arith.subf %25, %96 : vector<64x128xf32>
    %98 = math.exp %97 : vector<64x128xf32>
    %cst_47 = arith.constant dense<0.000000e+00> : vector<64xf32>
    %99 = vector.multi_reduction <add>, %98, %cst_47 [1] : vector<64x128xf32> to vector<64xf32>
    %100 = vector.shape_cast %99 : vector<64xf32> to vector<64x1xf32>
    %101 = arith.addf %95, %100 : vector<64x1xf32>
    %c0_48 = arith.constant 0 : index
    %c4_49 = arith.constant 4 : index
    %102 = vector.load %arg7[%c0_48, %c4_49] : memref<64x128xf32, #tpu.memory_space<vmem>>, vector<64x1xf32>
    tpu.vector_store %arg7[%c0_48, %c4_49], %101 {strides = array<i32>} : memref<64x128xf32, #tpu.memory_space<vmem>>, vector<64x1xf32>,
    %c0_50 = arith.constant 0 : index
    %c1_51 = arith.constant 1 : index
    %103 = vector.load %arg7[%c0_50, %c1_51] : memref<64x128xf32, #tpu.memory_space<vmem>>, vector<64x1xf32>
    tpu.vector_store %arg7[%c0_50, %c1_51], %91 {strides = array<i32>} : memref<64x128xf32, #tpu.memory_space<vmem>>, vector<64x1xf32>,
    %c1_i32_52 = arith.constant 1 : i32
    %c128_i32_53 = arith.constant 128 : i32
    %104 = arith.muli %c1_i32_52, %c128_i32_53 : i32
    %105 = tpu.assume_multiple %104, 128 : i32
    %c128_i32_54 = arith.constant 128 : i32
    %106 = arith.muli %c1_i32_52, %c128_i32_54 : i32
    %107 = arith.addi %6, %106 : i32
    %108 = arith.index_cast %105 : i32 to index
    %c0_55 = arith.constant 0 : index
    %109 = vector.load %arg3[%108, %c0_55] : memref<256x128xf32, #tpu.memory_space<vmem>>, vector<128x128xf32>
    %110 = arith.index_cast %105 : i32 to index
    %c0_56 = arith.constant 0 : index
    %111 = vector.load %arg5[%110, %c0_56] : memref<256x256xf32, #tpu.memory_space<vmem>>, vector<128x256xf32>
    %cst_57 = arith.constant dense<0.000000e+00> : vector<64x128xf32>
    %112 = tpu.matmul %3, %109, %cst_57 {dimension_numbers = #tpu.dot_dimension_numbers<[1], [1], [0], [0], [0, 0, 1, 0], [], []>} : vector<64x128xf32>, vector<128x128xf32>, vector<64x128xf32> -> vector<64x128xf32>
    %cst_58 = arith.constant 2.000000e+01 : f32
    %113 = vector.broadcast %cst_58 : f32 to vector<64x128xf32>
    %114 = arith.mulf %112, %113 : vector<64x128xf32>
    %cst_59 = arith.constant dense<0.000000e+00> : vector<64x128xf32>
    %115 = tpu.matmul %4, %111, %cst_59 {dimension_numbers = #tpu.dot_dimension_numbers<[1], [1], [0], [0], [0, 0, 1, 0], [], []>} : vector<64x256xf32>, vector<128x256xf32>, vector<64x128xf32> -> vector<64x128xf32>
    %cst_60 = arith.constant 2.000000e+01 : f32
    %116 = vector.broadcast %cst_60 : f32 to vector<64x128xf32>
    %117 = arith.mulf %115, %116 : vector<64x128xf32>
    %cst_61 = arith.constant 3.000000e-01 : f32
    %118 = vector.broadcast %cst_61 : f32 to vector<64x128xf32>
    %119 = arith.mulf %118, %117 : vector<64x128xf32>
    %120 = arith.addf %114, %119 : vector<64x128xf32>
    %c0_62 = arith.constant 0 : index
    %c2_63 = arith.constant 2 : index
    %121 = vector.load %arg7[%c0_62, %c2_63] : memref<64x128xf32, #tpu.memory_space<vmem>>, vector<64x1xf32>
    %cst_64 = arith.constant dense<0xFF800000> : vector<64xf32>
    %122 = vector.multi_reduction <maximumf>, %120, %cst_64 [1] : vector<64x128xf32> to vector<64xf32>
    %123 = vector.shape_cast %122 : vector<64xf32> to vector<64x1xf32>
    %124 = arith.maximumf %121, %123 : vector<64x1xf32>
    %125 = arith.subf %121, %124 : vector<64x1xf32>
    %126 = math.exp %125 : vector<64x1xf32>
    %127 = vector.broadcast %124 : vector<64x1xf32> to vector<64x128xf32>
    %128 = arith.subf %120, %127 : vector<64x128xf32>
    %129 = math.exp %128 : vector<64x128xf32>
    %c0_65 = arith.constant 0 : index
    %c5_66 = arith.constant 5 : index
    %130 = vector.load %arg7[%c0_65, %c5_66] : memref<64x128xf32, #tpu.memory_space<vmem>>, vector<64x1xf32>
    %131 = arith.mulf %126, %130 : vector<64x1xf32>
    %cst_67 = arith.constant dense<0.000000e+00> : vector<64xf32>
    %132 = vector.multi_reduction <add>, %129, %cst_67 [1] : vector<64x128xf32> to vector<64xf32>
    %133 = vector.shape_cast %132 : vector<64xf32> to vector<64x1xf32>
    %134 = arith.addf %131, %133 : vector<64x1xf32>
    %c0_68 = arith.constant 0 : index
    %c5_69 = arith.constant 5 : index
    %135 = vector.load %arg7[%c0_68, %c5_69] : memref<64x128xf32, #tpu.memory_space<vmem>>, vector<64x1xf32>
    tpu.vector_store %arg7[%c0_68, %c5_69], %134 {strides = array<i32>} : memref<64x128xf32, #tpu.memory_space<vmem>>, vector<64x1xf32>,
    %c0_70 = arith.constant 0 : index
    %c9_71 = arith.constant 9 : index
    %136 = vector.load %arg7[%c0_70, %c9_71] : memref<64x128xf32, #tpu.memory_space<vmem>>, vector<64x1xf32>
    %137 = arith.mulf %126, %136 : vector<64x1xf32>
    %138 = arith.mulf %129, %114 : vector<64x128xf32>
    %cst_72 = arith.constant dense<0.000000e+00> : vector<64xf32>
    %139 = vector.multi_reduction <add>, %138, %cst_72 [1] : vector<64x128xf32> to vector<64xf32>
    %140 = vector.shape_cast %139 : vector<64xf32> to vector<64x1xf32>
    %141 = arith.addf %137, %140 : vector<64x1xf32>
    %c0_73 = arith.constant 0 : index
    %c9_74 = arith.constant 9 : index
    %142 = vector.load %arg7[%c0_73, %c9_74] : memref<64x128xf32, #tpu.memory_space<vmem>>, vector<64x1xf32>
    tpu.vector_store %arg7[%c0_73, %c9_74], %141 {strides = array<i32>} : memref<64x128xf32, #tpu.memory_space<vmem>>, vector<64x1xf32>,
    %c0_75 = arith.constant 0 : index
    %c10_76 = arith.constant 10 : index
    %143 = vector.load %arg7[%c0_75, %c10_76] : memref<64x128xf32, #tpu.memory_space<vmem>>, vector<64x1xf32>
    %144 = arith.mulf %126, %143 : vector<64x1xf32>
    %145 = arith.mulf %129, %117 : vector<64x128xf32>
    %cst_77 = arith.constant dense<0.000000e+00> : vector<64xf32>
    %146 = vector.multi_reduction <add>, %145, %cst_77 [1] : vector<64x128xf32> to vector<64xf32>
    %147 = vector.shape_cast %146 : vector<64xf32> to vector<64x1xf32>
    %148 = arith.addf %144, %147 : vector<64x1xf32>
    %c0_78 = arith.constant 0 : index
    %c10_79 = arith.constant 10 : index
    %149 = vector.load %arg7[%c0_78, %c10_79] : memref<64x128xf32, #tpu.memory_space<vmem>>, vector<64x1xf32>
    tpu.vector_store %arg7[%c0_78, %c10_79], %148 {strides = array<i32>} : memref<64x128xf32, #tpu.memory_space<vmem>>, vector<64x1xf32>,
    %c0_80 = arith.constant 0 : index
    %c2_81 = arith.constant 2 : index
    %150 = vector.load %arg7[%c0_80, %c2_81] : memref<64x128xf32, #tpu.memory_space<vmem>>, vector<64x1xf32>
    tpu.vector_store %arg7[%c0_80, %c2_81], %124 {strides = array<i32>} : memref<64x128xf32, #tpu.memory_space<vmem>>, vector<64x1xf32>,
    %c0_i32_82 = arith.constant 0 : i32
    %151 = arith.cmpi eq, %107, %c0_i32_82 : i32
    %152 = arith.extui %151 : i1 to i32
    %c0_i32_83 = arith.constant 0 : i32
    %153 = arith.cmpi ne, %152, %c0_i32_83 : i32
    scf.if %153 {
      %199 = vector.extract_strided_slice %120 {offsets = [0, 0], sizes = [64, 1], strides = [1, 1]} : vector<64x128xf32> to vector<64x1xf32>
      %c0_112 = arith.constant 0 : index
      %c8 = arith.constant 8 : index
      %200 = vector.load %arg7[%c0_112, %c8] : memref<64x128xf32, #tpu.memory_space<vmem>>, vector<64x1xf32>
      tpu.vector_store %arg7[%c0_112, %c8], %199 {strides = array<i32>} : memref<64x128xf32, #tpu.memory_space<vmem>>, vector<64x1xf32>,
    } else {
    }
    %c64_i32_84 = arith.constant 64 : i32
    %154 = arith.addi %5, %c64_i32_84 : i32
    %c1_i32_85 = arith.constant 1 : i32
    %155 = arith.subi %154, %c1_i32_85 : i32
    %c4_i32_86 = arith.constant 4 : i32
    %156 = arith.muli %155, %c4_i32_86 : i32
    %157 = arith.cmpi sle, %107, %156 : i32
    %c4_i32_87 = arith.constant 4 : i32
    %158 = arith.muli %5, %c4_i32_87 : i32
    %c128_i32_88 = arith.constant 128 : i32
    %159 = arith.addi %107, %c128_i32_88 : i32
    %160 = arith.cmpi slt, %158, %159 : i32
    %161 = arith.andi %157, %160 : i1
    %162 = arith.extui %161 : i1 to i32
    %c0_i32_89 = arith.constant 0 : i32
    %163 = arith.cmpi ne, %162, %c0_i32_89 : i32
    scf.if %163 {
      %199 = tpu.iota {dimensions = array<i32: 1>} : vector<64x128xi32>
      %200 = vector.broadcast %107 : i32 to vector<64x128xi32>
      %201 = arith.addi %199, %200 : vector<64x128xi32>
      %202 = vector.broadcast %11 : vector<64x1xi32> to vector<64x128xi32>
      %203 = arith.cmpi eq, %201, %202 : vector<64x128xi32>
      %c0_112 = arith.constant 0 : index
      %c6 = arith.constant 6 : index
      %204 = vector.load %arg7[%c0_112, %c6] : memref<64x128xf32, #tpu.memory_space<vmem>>, vector<64x1xf32>
      %cst_113 = arith.constant 0.000000e+00 : f32
      %205 = vector.broadcast %cst_113 : f32 to vector<64x128xf32>
      %206 = arith.select %203, %114, %205 : vector<64x128xi1>, vector<64x128xf32>
      %cst_114 = arith.constant dense<0.000000e+00> : vector<64xf32>
      %207 = vector.multi_reduction <add>, %206, %cst_114 [1] : vector<64x128xf32> to vector<64xf32>
      %208 = vector.shape_cast %207 : vector<64xf32> to vector<64x1xf32>
      %209 = arith.addf %204, %208 : vector<64x1xf32>
      %c0_115 = arith.constant 0 : index
      %c6_116 = arith.constant 6 : index
      %210 = vector.load %arg7[%c0_115, %c6_116] : memref<64x128xf32, #tpu.memory_space<vmem>>, vector<64x1xf32>
      tpu.vector_store %arg7[%c0_115, %c6_116], %209 {strides = array<i32>} : memref<64x128xf32, #tpu.memory_space<vmem>>, vector<64x1xf32>,
      %c0_117 = arith.constant 0 : index
      %c7 = arith.constant 7 : index
      %211 = vector.load %arg7[%c0_117, %c7] : memref<64x128xf32, #tpu.memory_space<vmem>>, vector<64x1xf32>
      %cst_118 = arith.constant 0.000000e+00 : f32
      %212 = vector.broadcast %cst_118 : f32 to vector<64x128xf32>
      %213 = arith.select %203, %117, %212 : vector<64x128xi1>, vector<64x128xf32>
      %cst_119 = arith.constant dense<0.000000e+00> : vector<64xf32>
      %214 = vector.multi_reduction <add>, %213, %cst_119 [1] : vector<64x128xf32> to vector<64xf32>
      %215 = vector.shape_cast %214 : vector<64xf32> to vector<64x1xf32>
      %216 = arith.addf %211, %215 : vector<64x1xf32>
      %c0_120 = arith.constant 0 : index
      %c7_121 = arith.constant 7 : index
      %217 = vector.load %arg7[%c0_120, %c7_121] : memref<64x128xf32, #tpu.memory_space<vmem>>, vector<64x1xf32>
      tpu.vector_store %arg7[%c0_120, %c7_121], %216 {strides = array<i32>} : memref<64x128xf32, #tpu.memory_space<vmem>>, vector<64x1xf32>,
    } else {
    }
    %c0_90 = arith.constant 0 : index
    %c0_91 = arith.constant 0 : index
    %164 = vector.load %arg7[%c0_90, %c0_91] : memref<64x128xf32, #tpu.memory_space<vmem>>, vector<64x1xf32>
    %cst_92 = arith.constant dense<0xFF800000> : vector<64xf32>
    %165 = vector.multi_reduction <maximumf>, %114, %cst_92 [1] : vector<64x128xf32> to vector<64xf32>
    %166 = vector.shape_cast %165 : vector<64xf32> to vector<64x1xf32>
    %167 = arith.maximumf %164, %166 : vector<64x1xf32>
    %168 = arith.subf %164, %167 : vector<64x1xf32>
    %169 = math.exp %168 : vector<64x1xf32>
    %c0_93 = arith.constant 0 : index
    %c3_94 = arith.constant 3 : index
    %170 = vector.load %arg7[%c0_93, %c3_94] : memref<64x128xf32, #tpu.memory_space<vmem>>, vector<64x1xf32>
    %171 = arith.mulf %169, %170 : vector<64x1xf32>
    %172 = vector.broadcast %167 : vector<64x1xf32> to vector<64x128xf32>
    %173 = arith.subf %114, %172 : vector<64x128xf32>
    %174 = math.exp %173 : vector<64x128xf32>
    %cst_95 = arith.constant dense<0.000000e+00> : vector<64xf32>
    %175 = vector.multi_reduction <add>, %174, %cst_95 [1] : vector<64x128xf32> to vector<64xf32>
    %176 = vector.shape_cast %175 : vector<64xf32> to vector<64x1xf32>
    %177 = arith.addf %171, %176 : vector<64x1xf32>
    %c0_96 = arith.constant 0 : index
    %c3_97 = arith.constant 3 : index
    %178 = vector.load %arg7[%c0_96, %c3_97] : memref<64x128xf32, #tpu.memory_space<vmem>>, vector<64x1xf32>
    tpu.vector_store %arg7[%c0_96, %c3_97], %177 {strides = array<i32>} : memref<64x128xf32, #tpu.memory_space<vmem>>, vector<64x1xf32>,
    %c0_98 = arith.constant 0 : index
    %c0_99 = arith.constant 0 : index
    %179 = vector.load %arg7[%c0_98, %c0_99] : memref<64x128xf32, #tpu.memory_space<vmem>>, vector<64x1xf32>
    tpu.vector_store %arg7[%c0_98, %c0_99], %167 {strides = array<i32>} : memref<64x128xf32, #tpu.memory_space<vmem>>, vector<64x1xf32>,
    %c0_100 = arith.constant 0 : index
    %c1_101 = arith.constant 1 : index
    %180 = vector.load %arg7[%c0_100, %c1_101] : memref<64x128xf32, #tpu.memory_space<vmem>>, vector<64x1xf32>
    %cst_102 = arith.constant dense<0xFF800000> : vector<64xf32>
    %181 = vector.multi_reduction <maximumf>, %117, %cst_102 [1] : vector<64x128xf32> to vector<64xf32>
    %182 = vector.shape_cast %181 : vector<64xf32> to vector<64x1xf32>
    %183 = arith.maximumf %180, %182 : vector<64x1xf32>
    %184 = arith.subf %180, %183 : vector<64x1xf32>
    %185 = math.exp %184 : vector<64x1xf32>
    %c0_103 = arith.constant 0 : index
    %c4_104 = arith.constant 4 : index
    %186 = vector.load %arg7[%c0_103, %c4_104] : memref<64x128xf32, #tpu.memory_space<vmem>>, vector<64x1xf32>
    %187 = arith.mulf %185, %186 : vector<64x1xf32>
    %188 = vector.broadcast %183 : vector<64x1xf32> to vector<64x128xf32>
    %189 = arith.subf %117, %188 : vector<64x128xf32>
    %190 = math.exp %189 : vector<64x128xf32>
    %cst_105 = arith.constant dense<0.000000e+00> : vector<64xf32>
    %191 = vector.multi_reduction <add>, %190, %cst_105 [1] : vector<64x128xf32> to vector<64xf32>
    %192 = vector.shape_cast %191 : vector<64xf32> to vector<64x1xf32>
    %193 = arith.addf %187, %192 : vector<64x1xf32>
    %c0_106 = arith.constant 0 : index
    %c4_107 = arith.constant 4 : index
    %194 = vector.load %arg7[%c0_106, %c4_107] : memref<64x128xf32, #tpu.memory_space<vmem>>, vector<64x1xf32>
    tpu.vector_store %arg7[%c0_106, %c4_107], %193 {strides = array<i32>} : memref<64x128xf32, #tpu.memory_space<vmem>>, vector<64x1xf32>,
    %c0_108 = arith.constant 0 : index
    %c1_109 = arith.constant 1 : index
    %195 = vector.load %arg7[%c0_108, %c1_109] : memref<64x128xf32, #tpu.memory_space<vmem>>, vector<64x1xf32>
    tpu.vector_store %arg7[%c0_108, %c1_109], %183 {strides = array<i32>} : memref<64x128xf32, #tpu.memory_space<vmem>>, vector<64x1xf32>,
    %c2_i32 = arith.constant 2 : i32
    %c1_i32_110 = arith.constant 1 : i32
    %196 = arith.cmpi eq, %arg1, %c1_i32_110 : i32
    %197 = arith.extui %196 : i1 to i32
    %c0_i32_111 = arith.constant 0 : i32
    %198 = arith.cmpi ne, %197, %c0_i32_111 : i32
    scf.if %198 {
      %c0_112 = arith.constant 0 : index
      %c0_113 = arith.constant 0 : index
      %199 = vector.load %arg7[%c0_112, %c0_113] : memref<64x128xf32, #tpu.memory_space<vmem>>, vector<64x1xf32>
      %c0_114 = arith.constant 0 : index
      %c3_115 = arith.constant 3 : index
      %200 = vector.load %arg7[%c0_114, %c3_115] : memref<64x128xf32, #tpu.memory_space<vmem>>, vector<64x1xf32>
      %201 = math.log %200 : vector<64x1xf32>
      %202 = arith.addf %199, %201 : vector<64x1xf32>
      %c0_116 = arith.constant 0 : index
      %c1_117 = arith.constant 1 : index
      %203 = vector.load %arg7[%c0_116, %c1_117] : memref<64x128xf32, #tpu.memory_space<vmem>>, vector<64x1xf32>
      %c0_118 = arith.constant 0 : index
      %c4_119 = arith.constant 4 : index
      %204 = vector.load %arg7[%c0_118, %c4_119] : memref<64x128xf32, #tpu.memory_space<vmem>>, vector<64x1xf32>
      %205 = math.log %204 : vector<64x1xf32>
      %206 = arith.addf %203, %205 : vector<64x1xf32>
      %c0_120 = arith.constant 0 : index
      %c2_121 = arith.constant 2 : index
      %207 = vector.load %arg7[%c0_120, %c2_121] : memref<64x128xf32, #tpu.memory_space<vmem>>, vector<64x1xf32>
      %c0_122 = arith.constant 0 : index
      %c5_123 = arith.constant 5 : index
      %208 = vector.load %arg7[%c0_122, %c5_123] : memref<64x128xf32, #tpu.memory_space<vmem>>, vector<64x1xf32>
      %209 = math.log %208 : vector<64x1xf32>
      %210 = arith.addf %207, %209 : vector<64x1xf32>
      %c0_124 = arith.constant 0 : index
      %c6 = arith.constant 6 : index
      %211 = vector.load %arg7[%c0_124, %c6] : memref<64x128xf32, #tpu.memory_space<vmem>>, vector<64x1xf32>
      %212 = arith.subf %202, %211 : vector<64x1xf32>
      %c0_125 = arith.constant 0 : index
      %c7 = arith.constant 7 : index
      %213 = vector.load %arg7[%c0_125, %c7] : memref<64x128xf32, #tpu.memory_space<vmem>>, vector<64x1xf32>
      %214 = arith.subf %206, %213 : vector<64x1xf32>
      %c0_126 = arith.constant 0 : index
      %c8 = arith.constant 8 : index
      %215 = vector.load %arg7[%c0_126, %c8] : memref<64x128xf32, #tpu.memory_space<vmem>>, vector<64x1xf32>
      %216 = arith.subf %210, %215 : vector<64x1xf32>
      %c0_127 = arith.constant 0 : index
      %c5_128 = arith.constant 5 : index
      %217 = vector.load %arg7[%c0_127, %c5_128] : memref<64x128xf32, #tpu.memory_space<vmem>>, vector<64x1xf32>
      %cst_129 = arith.constant 1.000000e+00 : f32
      %218 = vector.broadcast %cst_129 : f32 to vector<64x1xf32>
      %219 = arith.divf %218, %217 : vector<64x1xf32>
      %c0_130 = arith.constant 0 : index
      %c9_131 = arith.constant 9 : index
      %220 = vector.load %arg7[%c0_130, %c9_131] : memref<64x128xf32, #tpu.memory_space<vmem>>, vector<64x1xf32>
      %221 = arith.mulf %220, %219 : vector<64x1xf32>
      %222 = arith.subf %202, %221 : vector<64x1xf32>
      %c0_132 = arith.constant 0 : index
      %c10_133 = arith.constant 10 : index
      %223 = vector.load %arg7[%c0_132, %c10_133] : memref<64x128xf32, #tpu.memory_space<vmem>>, vector<64x1xf32>
      %224 = arith.mulf %223, %219 : vector<64x1xf32>
      %225 = arith.subf %206, %224 : vector<64x1xf32>
      %226 = arith.addf %212, %216 : vector<64x1xf32>
      %cst_134 = arith.constant 1.000000e-01 : f32
      %227 = vector.broadcast %cst_134 : f32 to vector<64x1xf32>
      %228 = arith.mulf %227, %214 : vector<64x1xf32>
      %229 = arith.addf %226, %228 : vector<64x1xf32>
      %cst_135 = arith.constant 3.000000e+00 : f32
      %230 = vector.broadcast %cst_135 : f32 to vector<64x1xf32>
      %231 = arith.divf %229, %230 : vector<64x1xf32>
      %cst_136 = arith.constant 1.000000e-01 : f32
      %232 = vector.broadcast %cst_136 : f32 to vector<64x1xf32>
      %233 = arith.mulf %232, %225 : vector<64x1xf32>
      %234 = arith.addf %222, %233 : vector<64x1xf32>
      %cst_137 = arith.constant 2.000000e+00 : f32
      %235 = vector.broadcast %cst_137 : f32 to vector<64x1xf32>
      %236 = arith.divf %234, %235 : vector<64x1xf32>
      %237 = arith.addf %231, %236 : vector<64x1xf32>
      %cst_138 = arith.constant 5.000000e-01 : f32
      %238 = vector.broadcast %cst_138 : f32 to vector<64x1xf32>
      %239 = arith.mulf %238, %237 : vector<64x1xf32>
      %c0_139 = arith.constant 0 : index
      %c0_140 = arith.constant 0 : index
      %240 = vector.load %arg6[%c0_139, %c0_140] : memref<64x1xf32, #tpu.memory_space<vmem>>, vector<64x1xf32>
      tpu.vector_store %arg6[%c0_139, %c0_140], %239 {strides = array<i32>} : memref<64x1xf32, #tpu.memory_space<vmem>>, vector<64x1xf32>,
    } else {
    }
    return
  }
  func.func @transform_0(%arg0: i32, %arg1: i32) -> (i32, i32) {
    %c0_i32 = arith.constant 0 : i32
    %c0_i32_0 = arith.constant 0 : i32
    return %arg0, %c0_i32 : i32, i32
  }
  func.func @transform_1(%arg0: i32, %arg1: i32) -> (i32, i32) {
    %c0_i32 = arith.constant 0 : i32
    %c0_i32_0 = arith.constant 0 : i32
    return %arg1, %c0_i32 : i32, i32
  }
  func.func @transform_2(%arg0: i32, %arg1: i32) -> (i32, i32) {
    %c0_i32 = arith.constant 0 : i32
    %c0_i32_0 = arith.constant 0 : i32
    return %arg0, %c0_i32 : i32, i32
  }
  func.func @transform_3(%arg0: i32, %arg1: i32) -> (i32, i32) {
    %c0_i32 = arith.constant 0 : i32
    %c0_i32_0 = arith.constant 0 : i32
    return %arg1, %c0_i32 : i32, i32
  }
  func.func @transform_4(%arg0: i32, %arg1: i32) -> (i32, i32) {
    %c0_i32 = arith.constant 0 : i32
    %c0_i32_0 = arith.constant 0 : i32
    return %arg0, %c0_i32 : i32, i32
  }
}

</mosaic_0001>

<bundles_post_ra>
// kernel: tpu_custom_call.1
= control target key start
LH: loop header
LB: loop body
LE: loop exit
PB: predicated region body
PF: predicated region fallthrough
CT: control target
= control target key end

     0   :  { %s7210_s0 = inlined_call_operand.hbm [shape: f32[128,128], index: 0, kind: input, shape index: {}]   ;;  %s7211_s1 = inlined_call_operand.hbm [shape: f32[512,128], index: 1, kind: input, shape index: {}]   ;;  %s7212_s2 = inlined_call_operand.hbm [shape: f32[128,256], index: 2, kind: input, shape index: {}]   ;;  %s7213_s3 = inlined_call_operand.hbm [shape: f32[512,256], index: 3, kind: input, shape index: {}]   ;;  %s7214_s4 = inlined_call_operand.vmem [shape: f32[128,1], index: 4, kind: output, shape index: {}]  }
   0x1   :  { %7291 = sst [smem:[#allocation53_spill]] %s7210_s0 }
   0x2   :  { %7292 = sst [smem:[#allocation54_spill]] %s7211_s1 }
   0x3   :  { %9 = vsyncpa [#allocation4], 0 }
   0x4   :  { %11 = vsyncpa [#allocation4 + $0x1], 0 }
   0x5   :  { %12 = vsyncpa [#allocation6], 0 }
   0x6   :  { %14 = vsyncpa [#allocation6 + $0x1], 0 }
   0x7   :  { %15 = vsyncpa [#allocation9], 0 }
   0x8   :  { %17 = vsyncpa [#allocation9 + $0x1], 0  ;;  %s4817_s15 = smov 0   ;;  %s4819_s16 = smov 0  }
   0x9   :  { %s4821_s17 = smov 0   ;;  %s4823_s18 = smov 0  }
   0xa   :  { %s4825_s19 = smov 0   ;;  %s4827_s20 = smov 0  }
   0xb   :  { %s4829_s21 = smov 0   ;;  %s4831_s22 = smov 0  }
   0xc   :  { %s4833_s23 = smov 0   ;;  %s4835_s24 = smov 0  }
   0xd   :  { %s4837_s25 = smov 0  }
   0xe LB: > { %7293 = sst [smem:[#allocation14_spill]] %s4731_s17  ;;  %s7215_s26 = sadd.s32 4294967295, %s4763_s25   ;;  %s4763_s25 = sphi %s4837_s25, %s23_s25   ;;  %s4759_s24 = sphi %s4835_s24, %s7487_s24   ;;  %s4755_s23 = sphi %s4833_s23, %s7486_s23   ;;  %s4751_s22 = sphi %s4831_s22, %s7485_s22   ;;  %s4747_s21 = sphi %s4829_s21, %s7484_s21   ;;  %s4743_s20 = sphi %s4827_s20, %s7477_s20   ;;  %s4739_s19 = sphi %s4825_s19, %s7483_s19   ;;  %s4735_s18 = sphi %s4823_s18, %s7482_s18   ;;  %s4731_s17 = sphi %s4821_s17, %s7475_s17   ;;  %s4727_s16 = sphi %s4819_s16, %s7481_s16   ;;  %s4723_s15 = sphi %s4817_s15, %s7480_s15  }
   0xf   : > { %7294 = sst [smem:[#allocation15_spill]] %s4743_s20  ;;  %s32_s27 = sadd.s32 1, %s4755_s23 }
  0x10   : > { %p4872_p0 = scmp.ge.s32.totalorder %s32_s27, 2  ;;  %p7218_p1 = scmp.eq.s32.totalorder %s4763_s25, 0 }
  0x11   : > { %p4879_p2 = scmp.eq.s32.totalorder %s7215_s26, 0  ;;  %s68_s30 = sadd.s32 1, %s4731_s17 }
  0x12   : > { %s7489_s27 = smov (%p4872_p0, %s32_s27), 0  ;;  %p75_p3 = scmp.ne.s32.totalorder %s4731_s17, %s4727_s16 }
  0x13   : > { %s7296_s29 = scalar_select %p4879_p2, 1, 0 }
  0x14   : > { %7297 = sst [smem:[#allocation16_spill]] %s7489_s27  ;;  %p81_p4 = scmp.ne.s32.totalorder %s4727_s16, %s4723_s15 }
  0x15   : > { %s65_s5 = ssub.s32 %s4755_s23, %s7489_s27  ;;  %p77_p6 = por %p75_p3, %p7218_p1 }
  0x16   : > { %p66_p5 = scmp.eq.s32.totalorder %s65_s5, 0  ;;  %p4897_p7 = por %p81_p4, %p4879_p2 }
  0x17   : > { %p7217_p8 = scmp.lt.s32.totalorder %s4763_s25, 4  ;;  %s204_s8 = sand.u32 1, %s4763_s25  }
  0x18   : > { %s7298_s6 = scalar_select %p4897_p7, 1, 0 }
  0x19   : > { %s4903_s7 = scalar_select %p66_p5, %s4731_s17, %s68_s30  }
  0x1a   : > { %s4907_s9 = sand.u32 1, %s4731_s17   ;;  %s3900_s11 = sshll.u32 %s4755_s23, 12 }
  0x1b   : > { %7299 = sst [smem:[#allocation17_spill]] %s4903_s7  ;;  %s3823_s10 = sshll.u32 %s4907_s9, 8 }
  0x1c   : > { %s7300_s1 = sld [smem:[#allocation54_spill]]  ;;  %s208_s15 = scalar_lea.vmem [#allocation5], %s3823_s10 }
  0x1d   : > { %s215_s5 = sshll.u32 %s208_s15, 4  ;;  %p4920_p9 = pnand %p7217_p8, %p77_p6  ;;  %s4916_s5 = int_to_ptr.vmem [resolvable:$true] %s215_s5 }
  0x1e   : > { %s4926_s12 = scalar_lea.sflag [#allocation6], %s204_s8 }
  0x1f   : > { %p7225_p13 = pneg %p4920_p9 }
  0x22   : > { %s4914_s14 = scalar_lea.hbm %s7300_s1, %s3900_s11  ;;  %s4546_s15 = scalar_lea.hbm %s7300_s1, 8192 }
  0x23   : > { %s4541_s11 = scalar_lea.hbm %s4914_s14, 4096  ;;  %p4547_p5 = scmp.lt.u32.totalorder %s4914_s14, %s7300_s1 }
  0x24   : > { %p4542_p12 = scmp.ne.s32.totalorder %s4914_s14, %s4541_s11  ;;  %p4548_p6 = scmp.lt.u32.totalorder %s4546_s15, %s4541_s11 }
  0x25   : > { %p4550_p1 = scmp.lt.u32.totalorder %s4541_s11, %s4914_s14 }
  0x26   : > { %p4544_p3 = pnand %p7225_p13, %p4542_p12  ;;  %p4549_p8 = por %p4548_p6, %p4547_p5 }
  0x28   : > { %p4545_p4 = pneg %p4544_p3  ;;  %p4551_p10 = por %p4550_p1, %p4549_p8 }
  0x2a   : > { %p4552_p11 = pnand %p4551_p10, %p4545_p4 }
  0x2c   : > { %4555 = shalt.err (!%p4552_p11)
}
  0x2d   : > { %s4556_s8 = scalar_lea.vmem %s4916_s5, 4096  ;;  %s4765_s10 = smov [#allocation5]  }
  0x2e   : > { %p4557_p12 = scmp.ne.s32.totalorder %s4916_s5, %s4556_s8  ;;  %s4561_s13 = sshll.u32 %s4765_s10, 4  ;;  %s4562_s13 = int_to_ptr.vmem [resolvable:$false] %s4561_s13 }
  0x2f   : > { %s4563_s26 = scalar_lea.vmem %s4562_s13, 8192  ;;  %p4564_p2 = scmp.lt.s32.totalorder %s4916_s5, %s4562_s13 }
  0x30   : > { %p4559_p3 = pnand %p4557_p12, %p7225_p13  ;;  %p4565_p5 = scmp.lt.s32.totalorder %s4563_s26, %s4556_s8 }
  0x32   : > { %p4560_p7 = pneg %p4559_p3  ;;  %p4566_p6 = por %p4565_p5, %p4564_p2 }
  0x34   : > { %p4567_p1 = pnand %p4566_p6, %p4560_p7 }
  0x36   : > { %4570 = shalt.err (!%p4567_p1)
}
  0x37   : > { %s7221_s27 = smov 128   ;;  %s7222_s11 = smov 8  }
  0x38   : > { %4186 = dma.hbm_to_vmem [thread:$0]  (!%p4920_p9), %s4914_s14, 4096, %s4916_s5, %s4926_s12, %s7221_s27, %s7221_s27, %s7222_s11  }
  0x39   : > { %p7302_p2 = scmp.lt.s32.totalorder %s4763_s25, 5  ;;  %p7303_p7 = scmp.ge.s32.totalorder %s4763_s25, 1 }
  0x3a   : > { %s35_s8 = sadd.s32 1, %s4759_s24  ;;  %s42_s10 = sadd.s32 1, %s4743_s20 }
  0x3b   : > { %p4961_p8 = pnand %p7303_p7, %p7302_p2  ;;  %s7491_s8 = smov (!%p4872_p0, %s35_s8), %s4759_s24 }
  0x3c   : > { %p49_p10 = scmp.ne.s32.totalorder %s4743_s20, %s4739_s19  ;;  %p55_p11 = scmp.ne.s32.totalorder %s4739_s19, %s4735_s18 }
  0x3d   : > { %s7304_s15 = scalar_select %p4961_p8, 1, 0 }
  0x3e   : > { %p37_p4 = scmp.ge.s32.totalorder %s7491_s8, 2  ;;  %s4975_s13 = sand.u32 1, %s4743_s20  }
  0x3f   : > { %p7305_p12 = scmp.eq.s32.totalorder %s4763_s25, 0  ;;  %p7306_p5 = scmp.ne.s32.totalorder %s7296_s29, 0 }
  0x40   : > { %s7493_s8 = smov (%p37_p4, %s7491_s8), 0  ;;  %s3820_s28 = sshll.u32 %s4975_s13, 6 }
  0x41   : > { %p51_p3 = por %p7305_p12, %p49_p10  ;;  %p4981_p6 = por %p7306_p5, %p55_p11 }
  0x42   : > { %7308 = sst [smem:[#allocation18_spill]] %s7493_s8  ;;  %s39_s5 = ssub.s32 %s4759_s24, %s7493_s8 }
  0x43   : > { %s7307_s14 = scalar_select %p4981_p6, 1, 0 }
  0x44   : > { %p40_p0 = scmp.eq.s32.totalorder %s39_s5, 0  ;;  %s3899_s18 = sshll.u32 %s4759_s24, 10 }
  0x45   : > { %s7309_s0 = sld [smem:[#allocation53_spill]]  ;;  %s187_s29 = scalar_lea.vmem [#allocation3], %s3820_s28 }
  0x46   : > { %s194_s1 = sshll.u32 %s187_s29, 4  ;;  %p7311_p1 = scmp.lt.s32.totalorder %s4763_s25, 4  ;;  %s4999_s1 = int_to_ptr.vmem [resolvable:$true] %s194_s1 }
  0x47   : > { %s4997_s7 = scalar_select %p40_p0, %s4743_s20, %s42_s10  }
  0x48   : > { %p5003_p2 = pnand %p7311_p1, %p51_p3  ;;  %s3902_s5 = sshll.u32 %s4759_s24, 11 }
  0x49   : > { %7310 = sst [smem:[#allocation19_spill]] %s4997_s7 }
  0x4a   : > { %p4573_p10 = pneg %p5003_p2 }
  0x4b   : > { %s4994_s11 = scalar_lea.hbm %s7309_s0, %s3899_s18  ;;  %s184_s18 = scalar_lea.sflag [#allocation4], %s4975_s13 }
  0x4c   : > { %s4571_s26 = scalar_lea.hbm %s4994_s11, 1024  ;;  %s4576_s29 = scalar_lea.hbm %s7309_s0, 2048 }
  0x4d   : > { %p4572_p7 = scmp.ne.s32.totalorder %s4994_s11, %s4571_s26  ;;  %p4577_p12 = scmp.lt.u32.totalorder %s4994_s11, %s7309_s0 }
  0x4e   : > { %p4578_p3 = scmp.lt.u32.totalorder %s4576_s29, %s4571_s26  ;;  %p4580_p0 = scmp.lt.u32.totalorder %s4571_s26, %s4994_s11 }
  0x4f   : > { %p4574_p11 = pnand %p4573_p10, %p4572_p7 }
  0x50   : > { %p4579_p5 = por %p4578_p3, %p4577_p12 }
  0x51   : > { %p4575_p4 = pneg %p4574_p11 }
  0x52   : > { %p4581_p1 = por %p4580_p0, %p4579_p5 }
  0x54   : > { %p4582_p13 = pnand %p4581_p1, %p4575_p4 }
  0x56   : > { %4585 = shalt.err (!%p4582_p13)
}
  0x57   : > { %s4586_s27 = scalar_lea.vmem %s4999_s1, 1024  ;;  %s4768_s10 = smov [#allocation3]  }
  0x58   : > { %p4587_p7 = scmp.ne.s32.totalorder %s4999_s1, %s4586_s27  ;;  %s4591_s28 = sshll.u32 %s4768_s10, 4  ;;  %s4592_s28 = int_to_ptr.vmem [resolvable:$false] %s4591_s28 }
  0x59   : > { %s4593_s20 = scalar_lea.vmem %s4592_s28, 2048  ;;  %p4594_p8 = scmp.lt.s32.totalorder %s4999_s1, %s4592_s28 }
  0x5a   : > { %p4589_p11 = pnand %p4587_p7, %p4573_p10  ;;  %p4595_p12 = scmp.lt.s32.totalorder %s4593_s20, %s4586_s27 }
  0x5c   : > { %p4590_p6 = pneg %p4589_p11  ;;  %p4596_p3 = por %p4595_p12, %p4594_p8 }
  0x5e   : > { %p4597_p5 = pnand %p4596_p3, %p4590_p6 }
  0x60   : > { %4600 = shalt.err (!%p4597_p5)
}
  0x61   : > { %s7313_s7 = smov 8   ;;  %s7314_s26 = smov 128  }
  0x62   : > { %4183 = dma.hbm_to_vmem [thread:$0]  (!%p5003_p2), %s4994_s11, 1024, %s4999_s1, %s184_s18, %s7314_s26, %s7314_s26, %s7313_s7  }
  0x63   : > { %s5045_s27 = scalar_lea.hbm %s7212_s2, %s3902_s5  ;;  %s7315_s28 = sshll.u32 %s4975_s13, 7 }
  0x64   : > { %s229_s20 = scalar_lea.vmem [#allocation7], %s7315_s28  ;;  %s4601_s17 = scalar_lea.hbm %s5045_s27, 2048 }
  0x65   : > { %s237_s0 = sshll.u32 %s229_s20, 4  ;;  %p4602_p13 = scmp.ne.s32.totalorder %s5045_s27, %s4601_s17  ;;  %s5049_s0 = int_to_ptr.vmem [resolvable:$true] %s237_s0 }
  0x66   : > { %s4606_s5 = scalar_lea.hbm %s7212_s2, 4096  ;;  %p4607_p4 = scmp.lt.u32.totalorder %s5045_s27, %s7212_s2 }
  0x67   : > { %p4604_p8 = pnand %p4602_p13, %p4573_p10  ;;  %p4608_p0 = scmp.lt.u32.totalorder %s4606_s5, %s4601_s17 }
  0x68   : > { %p4610_p7 = scmp.lt.u32.totalorder %s4601_s17, %s5045_s27 }
  0x69   : > { %p4605_p6 = pneg %p4604_p8  ;;  %p4609_p1 = por %p4608_p0, %p4607_p4 }
  0x6b   : > { %p4611_p11 = por %p4610_p7, %p4609_p1 }
  0x6d   : > { %p4612_p12 = pnand %p4611_p11, %p4605_p6 }
  0x6f   : > { %4615 = shalt.err (!%p4612_p12)
}
  0x70   : > { %s4616_s7 = scalar_lea.vmem %s5049_s0, 2048  ;;  %s4769_s26 = smov [#allocation7]  }
  0x71   : > { %p4617_p3 = scmp.ne.s32.totalorder %s5049_s0, %s4616_s7  ;;  %s4621_s29 = sshll.u32 %s4769_s26, 4  ;;  %s4622_s29 = int_to_ptr.vmem [resolvable:$false] %s4621_s29 }
  0x72   : > { %s4623_s10 = scalar_lea.vmem %s4622_s29, 4096  ;;  %p4624_p8 = scmp.lt.s32.totalorder %s5049_s0, %s4622_s29 }
  0x73   : > { %p4619_p5 = pnand %p4617_p3, %p4573_p10  ;;  %p4625_p4 = scmp.lt.s32.totalorder %s4623_s10, %s4616_s7 }
  0x75   : > { %p4620_p13 = pneg %p4619_p5  ;;  %p4626_p0 = por %p4625_p4, %p4624_p8 }
  0x77   : > { %p4627_p1 = pnand %p4626_p0, %p4620_p13 }
  0x79   : > { %4630 = shalt.err (!%p4627_p1)
}
  0x7a   : > { %s4770_s17 = smov 256   ;;  %s4771_s28 = smov 16  }
  0x7b   : > { %4189 = dma.hbm_to_vmem [thread:$0]  (!%p5003_p2), %s5045_s27, 2048, %s5049_s0, %s4926_s12, %s4770_s17, %s4770_s17, %s4771_s28  }
  0x7c   : > { %s3830_s20 = sshll.u32 %s4907_s9, 9  ;;  %s3904_s1 = sshll.u32 %s4755_s23, 13 }
  0x7d   : > { %s5083_s18 = scalar_lea.hbm %s7213_s3, %s3904_s1  ;;  %s251_s13 = scalar_lea.vmem [#allocation8], %s3830_s20 }
  0x7e   : > { %s259_s7 = sshll.u32 %s251_s13, 4  ;;  %s248_s8 = scalar_lea.sflag [#allocation9], %s4907_s9  ;;  %s5085_s7 = int_to_ptr.vmem [resolvable:$true] %s259_s7 }
  0x7f   : > { %s4631_s26 = scalar_lea.hbm %s5083_s18, 8192  ;;  %p7316_p2 = pneg %p4920_p9 }
  0x80   : > { %p4632_p10 = scmp.ne.s32.totalorder %s5083_s18, %s4631_s26  ;;  %s4636_s27 = scalar_lea.hbm %s7213_s3, 16384 }
  0x81   : > { %p4637_p11 = scmp.lt.u32.totalorder %s5083_s18, %s7213_s3  ;;  %p4638_p12 = scmp.lt.u32.totalorder %s4636_s27, %s4631_s26 }
  0x82   : > { %p4634_p6 = pnand %p4632_p10, %p7316_p2  ;;  %p4640_p5 = scmp.lt.u32.totalorder %s4631_s26, %s5083_s18 }
  0x83   : > { %p4639_p3 = por %p4638_p12, %p4637_p11 }
  0x84   : > { %p4635_p7 = pneg %p4634_p6 }
  0x85   : > { %p4641_p13 = por %p4640_p5, %p4639_p3 }
  0x87   : > { %p4642_p8 = pnand %p4641_p13, %p4635_p7 }
  0x89   : > { %4645 = shalt.err (!%p4642_p8)
}
  0x8a   : > { %s4646_s20 = scalar_lea.vmem %s5085_s7, 8192  ;;  %p7317_p0 = pmov %p7316_p2 }
  0x8b   : > { %p4647_p4 = scmp.ne.s32.totalorder %s5085_s7, %s4646_s20  ;;  %s4772_s1 = smov [#allocation8]  }
  0x8c   : > { %s4651_s11 = sshll.u32 %s4772_s1, 4  ;;  %s4652_s11 = int_to_ptr.vmem [resolvable:$false] %s4651_s11 }
  0x8d   : > { %p4649_p1 = pnand %p4647_p4, %p7317_p0  ;;  %s4653_s5 = scalar_lea.vmem %s4652_s11, 16384 }
  0x8e   : > { %p4654_p2 = scmp.lt.s32.totalorder %s5085_s7, %s4652_s11  ;;  %p4655_p6 = scmp.lt.s32.totalorder %s4653_s5, %s4646_s20 }
  0x8f   : > { %p4650_p10 = pneg %p4649_p1 }
  0x90   : > { %p4656_p11 = por %p4655_p6, %p4654_p2 }
  0x92   : > { %p4657_p12 = pnand %p4656_p11, %p4650_p10 }
  0x94   : > { %4660 = shalt.err (!%p4657_p12)
}
  0x95   : > { %4192 = dma.hbm_to_vmem [thread:$0]  (!%p4920_p9), %s5083_s18, 8192, %s5085_s7, %s248_s8, %s4770_s17, %s4770_s17, %s4771_s28  }
  0x96   : > { %p7318_p7 = scmp.ne.s32.totalorder %s7304_s15, 0 }
  0x98   : > { %271 = sbr.rel (%p7318_p7) target bundleno = 5223 (0x1467), region = 36 }
  0x9f   : > { %s273_s13 = sand.u32 1, %s4739_s19   ;;  %p7319_p3 = scmp.ne.s32.totalorder %s7307_s14, 0 }
  0xa0   : > { %s3835_s26 = sshll.u32 %s273_s13, 6  ;;  %s274_s0 = scalar_lea.sflag [#allocation4], %s273_s13 }
  0xa1   : > { %s5119_s12 = scalar_lea.vmem [#allocation3], %s3835_s26 }
  0xa2   : > { %4706 = dma.done.wait (%p7319_p3), %s274_s0, 1024  }
  0xa3   : > { %4708 = vsyncadd (%p7319_p3), %s274_s0, 4294966272  ;;  %s7320_s9 = sadd.s32 4294967295, %s4763_s25   ;;  %s284_s17 = sand.u32 1, %s4727_s16  }
  0xa4   : > { %s282_s30 = sand.u32 1, %s7320_s9   ;;  %s3836_s15 = sshll.u32 %s284_s17, 8 }
  0xa5   : > { %s283_s28 = scalar_lea.sflag [#allocation6], %s282_s30  ;;  %s5128_s18 = scalar_lea.vmem [#allocation5], %s3836_s15 }
  0xa6   : > { %p7321_p9 = scmp.ne.s32.totalorder %s7298_s6, 0 }
  0xa8   : > { %4710 = dma.done.wait (%p7321_p9), %s283_s28, 4096  }
  0xa9   : > { %4712 = vsyncadd (%p7321_p9), %s283_s28, 4294963200  ;;  %s3837_s7 = sshll.u32 %s273_s13, 7 }
  0xaa   : > { %s5134_s8 = scalar_lea.vmem [#allocation7], %s3837_s7 }
  0xab   : > { %4714 = dma.done.wait (%p7319_p3), %s283_s28, 2048  }
  0xac   : > { %4716 = vsyncadd (%p7319_p3), %s283_s28, 4294965248  ;;  %s3838_s27 = sshll.u32 %s284_s17, 9  ;;  %s301_s29 = scalar_lea.sflag [#allocation9], %s284_s17 }
  0xad   : > { %s5140_s10 = scalar_lea.vmem [#allocation8], %s3838_s27 }
  0xae   : > { %4718 = dma.done.wait (%p7321_p9), %s301_s29, 8192  }
  0xaf   : > { %4720 = vsyncadd (%p7321_p9), %s301_s29, 4294959104  ;;  %s3839_s20 = sshll.u32 %s4751_s22, 3  ;;  %p3841_p13 = scmp.ne.s32.totalorder %s4747_s21, 0 }
  0xb0   : > { %p349_p5 = scmp.lt.s32.totalorder %s3839_s20, 15  ;;  %v358_v0 = vlaneseq (!%p3841_p13)  ;;  %v4773_v2 = vmov (!%p3841_p13), 0.0  }
  0xb1   : > { %357 = sbr.rel (%p3841_p13) target bundleno = 186 (0xba), region = 56 }
  0xb2   : > { %s7495_s20 = smov (!%p349_p5, %s3839_s20), 15  ;;  %v359_v1 = vand.u32 (!%p3841_p13), 127, %v358_v0 }
  0xb3   : > { %s3840_s1 = sshll.u32 %s7495_s20, 3 }
  0xb4   : > { %s5150_s14 = scalar_lea.vmem %s7214_s4, %s3840_s1  ;;  %vm360_vm0 = vcmp.lt.s32.totalorder (!%p3841_p13), %v359_v1, 3 }
  0xb5   : > { %v361_v3 = vsel (!%p3841_p13), %vm360_vm0, -inf, %v4773_v2 }
  0xb6   : > { %362 = vst [vmem:[#allocation2] sm:$0xff] (!%p3841_p13), %v361_v3  ;;  %363 = vst [vmem:[#allocation2 + $0x8] sm:$0xff] (!%p3841_p13), %v361_v3 }
  0xb7   : > { %364 = vst [vmem:[#allocation2 + $0x10] sm:$0xff] (!%p3841_p13), %v361_v3  ;;  %365 = vst [vmem:[#allocation2 + $0x18] sm:$0xff] (!%p3841_p13), %v361_v3 }
  0xb8   : > { %366 = vst [vmem:[#allocation2 + $0x20] sm:$0xff] %v361_v3  ;;  %367 = vst [vmem:[#allocation2 + $0x28] sm:$0xff] %v361_v3 }
  0xb9   : > { %368 = vst [vmem:[#allocation2 + $0x30] sm:$0xff] %v361_v3  ;;  %369 = vst [vmem:[#allocation2 + $0x38] sm:$0xff] %v361_v3 }
  0xba PF: > { %s3842_s6 = sshll.u32 %s4751_s22, 6  ;;  %s5155_s13 = sshll.u32 %s4747_s21, 8  ;;  %v7230_v4 = vlaneseq  ;;  %v422_v5 = vld [vmem:[%s5128_s18] sm:$0xff]  ;;  %v423_v6 = vld [vmem:[%s5128_s18 + $0x8] sm:$0xff]  ;;  %v444_v9 = vld [vmem:[%s5140_s10 + $0x18] sm:$0xff]  ;;  %v7228_v50 = vmov 2  }
  0xbb   : > { %v442_v7 = vld [vmem:[%s5140_s10 + $0x8] sm:$0xff]  ;;  %v4044_v8 = vpack.c.bf16 %v423_v6, %v422_v5  ;;  %v441_v10 = vld [vmem:[%s5140_s10] sm:$0xff]  ;;  %v443_v11 = vld [vmem:[%s5140_s10 + $0x10] sm:$0xff]  ;;  %v405_v13 = vstv %s3842_s6  ;;  %4305 = vset.pattern.permute.xlu0 %v7228_v50  ;;  %4306 = vset.pattern.permute.xlu1 %v7228_v50  ;;  %s4775_s26 = smov 125   ;;  %s4776_s0 = smov 3   ;;  %vm931_vm1 = vcmask 48168  }
  0xbc   : > { %v397_v12 = vshrl.u32 %v7230_v4, 7  ;;  %v4076_v14 = vpack.c.bf16 %v444_v9, %v442_v7  ;;  %v4078_v15 = vpack.c.bf16 %v443_v11, %v441_v10  ;;  %v424_v16 = vld [vmem:[%s5128_s18 + $0x10] sm:$0xff]  ;;  %v425_v17 = vld [vmem:[%s5128_s18 + $0x18] sm:$0xff]  ;;  %v446_v27 = vld [vmem:[%s5140_s10 + $0x28] sm:$0xff]  ;;  %s4778_s9 = smov 7   ;;  %vm1052_vm2 = vcmask 80968  }
  0xbd   : > { %4045 = vmatprep.subr.bf16.mxu0 %v4044_v8  ;;  %v4048_v18 = vpack.c.bf16 %v425_v17, %v424_v16  ;;  %v448_v28 = vld [vmem:[%s5140_s10 + $0x38] sm:$0xff]  ;;  %v445_v29 = vld [vmem:[%s5140_s10 + $0x20] sm:$0xff]  ;;  %v447_v34 = vld [vmem:[%s5140_s10 + $0x30] sm:$0xff]  ;;  %s4779_s30 = smov 120   ;;  %s4780_s17 = smov 8   ;;  %vm1173_vm3 = vcmask 89168  }
  0xbe   : > { %v398_v19 = vadd.s32 8, %v397_v12  ;;  %v399_v20 = vadd.s32 16, %v397_v12  ;;  %v400_v21 = vadd.s32 24, %v397_v12  ;;  %v401_v22 = vadd.s32 32, %v397_v12  ;;  %4077 = vmatprep.subr.bf16.mxu1 %v4076_v14  ;;  %4047 = vmatpush3.bf16.xpose.msra.mxu0 %v4044_v8  ;;  %v426_v35 = vld [vmem:[%s5128_s18 + $0x20] sm:$0xff]  ;;  %v427_v36 = vld [vmem:[%s5128_s18 + $0x28] sm:$0xff] }
  0xbf   : > { %v402_v23 = vadd.s32 40, %v397_v12  ;;  %v403_v24 = vadd.s32 48, %v397_v12  ;;  %v404_v25 = vadd.s32 56, %v397_v12  ;;  %v5166_v26 = vadd.s32 %v405_v13, %v397_v12  ;;  %4079 = vmatpush1.bf16.xpose.msra.mxu1 %v4078_v15  ;;  %4049 = vmatprep.subr.bf16.mxu0 %v4048_v18  ;;  %v450_v41 = vld [vmem:[%s5140_s10 + $0x48] sm:$0xff]  ;;  %v452_v42 = vld [vmem:[%s5140_s10 + $0x58] sm:$0xff]  ;;  %v449_v54 = vld [vmem:[%s5140_s10 + $0x40] sm:$0xff] }
  0xc0   : > { %v5171_v30 = vadd.s32 %v405_v13, %v398_v19  ;;  %v5173_v31 = vadd.s32 %v405_v13, %v399_v20  ;;  %v5175_v32 = vadd.s32 %v405_v13, %v400_v21  ;;  %v5177_v33 = vadd.s32 %v405_v13, %v401_v22  ;;  %v451_v55 = vld [vmem:[%s5140_s10 + $0x50] sm:$0xff]  ;;  %v429_v57 = vld [vmem:[%s5128_s18 + $0x38] sm:$0xff]  ;;  %v454_v58 = vld [vmem:[%s5140_s10 + $0x68] sm:$0xff]  ;;  %p3844_p8 = scmp.ne.s32.totalorder %s5155_s13, 0 }
  0xc1   : > { %v5182_v37 = vadd.s32 %v405_v13, %v402_v23  ;;  %v5184_v38 = vadd.s32 %v405_v13, %v403_v24  ;;  %v5186_v39 = vadd.s32 %v405_v13, %v404_v25  ;;  %v4080_v45 = vpack.c.bf16 %v448_v28, %v446_v27  ;;  %v428_v56 = vld [vmem:[%s5128_s18 + $0x30] sm:$0xff]  ;;  %v456_v59 = vld [vmem:[%s5140_s10 + $0x78] sm:$0xff]  ;;  %v5205_v60 = vld [vmem:[%s5119_s12] sm:$0xff]  ;;  %s4781_s15 = smov (!%p3844_p8), 8  }
  0xc2   : > { %v4082_v48 = vpack.c.bf16 %v447_v34, %v445_v29  ;;  %v4052_v49 = vpack.c.bf16 %v427_v36, %v426_v35  ;;  %v4084_v52 = vpack.c.bf16 %v452_v42, %v450_v41  ;;  %7324 = vst [vmem:[#allocation22_spill] sm:$0xff] %v5205_v60  ;;  %v5208_v61 = vld [vmem:[%s5134_s8 + $0x8] sm:$0xff]  ;;  %v4086_v62 = vpack.c.bf16 %v451_v55, %v449_v54  ;;  %v453_v1 = vld [vmem:[%s5140_s10 + $0x60] sm:$0xff]  ;;  %v455_v2 = vld [vmem:[%s5140_s10 + $0x70] sm:$0xff] }
  0xc3   : > { %7322 = vst [vmem:[#allocation20_spill] sm:$0xff] %v5184_v38  ;;  %7323 = vst [vmem:[#allocation21_spill] sm:$0xff] %v5186_v39  ;;  %4081 = vmatprep.subr.bf16.mxu1 %v4080_v45  ;;  %v4056_v63 = vpack.c.bf16 %v429_v57, %v428_v56  ;;  %3988 = vmatprep.mubr.f32.mxu0 %v5205_v60  ;;  %v4088_v0 = vpack.c.bf16 %v456_v59, %v454_v58  ;;  %v430_v3 = vld [vmem:[%s5128_s18 + $0x40] sm:$0xff]  ;;  %v431_v5 = vld [vmem:[%s5128_s18 + $0x48] sm:$0xff]  ;;  %vm1182_vm4 = vcmask 23568   ;;  %vm1227_vm5 = vcmask (!%p3844_p8), 72768  }
  0xc4   : > { %7325 = vst [vmem:[#allocation23_spill] sm:$0xff] %v5208_v61  ;;  %650 = vmatprep.mubr.f32.mxu1 %v5208_v61  ;;  %v458_v6 = vld [vmem:[%s5140_s10 + $0x88] sm:$0xff]  ;;  %v460_v7 = vld [vmem:[%s5140_s10 + $0x98] sm:$0xff]  ;;  %v4090_v8 = vpack.c.bf16 %v455_v2, %v453_v1  ;;  %v4060_v9 = vpack.c.bf16 %v431_v5, %v430_v3  ;;  %v457_v11 = vld [vmem:[%s5140_s10 + $0x80] sm:$0xff] }
  0xc5   : > { %v4092_v10 = vpack.c.bf16 %v460_v7, %v458_v6  ;;  %v459_v12 = vld [vmem:[%s5140_s10 + $0x90] sm:$0xff]  ;;  %v433_v14 = vld [vmem:[%s5128_s18 + $0x58] sm:$0xff]  ;;  %v462_v15 = vld [vmem:[%s5140_s10 + $0xa8] sm:$0xff] }
  0xc6   : > { %4051 = vmatpush3.bf16.xpose.msra.mxu0 %v4048_v18  ;;  %v432_v13 = vld [vmem:[%s5128_s18 + $0x50] sm:$0xff]  ;;  %v464_v16 = vld [vmem:[%s5140_s10 + $0xb8] sm:$0xff]  ;;  %v4094_v17 = vpack.c.bf16 %v459_v12, %v457_v11  ;;  %v461_v20 = vld [vmem:[%s5140_s10 + $0xa0] sm:$0xff] }
  0xc7   : > { %4083 = vmatpush1.bf16.xpose.msra.mxu1 %v4082_v48  ;;  %4053 = vmatprep.subr.bf16.mxu0 %v4052_v49  ;;  %v4064_v18 = vpack.c.bf16 %v433_v14, %v432_v13  ;;  %v4096_v19 = vpack.c.bf16 %v464_v16, %v462_v15  ;;  %v463_v21 = vld [vmem:[%s5140_s10 + $0xb0] sm:$0xff]  ;;  %v434_v22 = vld [vmem:[%s5128_s18 + $0x60] sm:$0xff]  ;;  %v435_v23 = vld [vmem:[%s5128_s18 + $0x68] sm:$0xff] }
  0xc8   : > { %4085 = vmatprep.subr.bf16.mxu1 %v4084_v52  ;;  %v466_v24 = vld [vmem:[%s5140_s10 + $0xc8] sm:$0xff]  ;;  %v468_v25 = vld [vmem:[%s5140_s10 + $0xd8] sm:$0xff]  ;;  %v4098_v27 = vpack.c.bf16 %v463_v21, %v461_v20  ;;  %v4068_v28 = vpack.c.bf16 %v435_v23, %v434_v22  ;;  %v465_v34 = vld [vmem:[%s5140_s10 + $0xc0] sm:$0xff] }
  0xc9   : > { %v4100_v29 = vpack.c.bf16 %v468_v25, %v466_v24  ;;  %v467_v35 = vld [vmem:[%s5140_s10 + $0xd0] sm:$0xff]  ;;  %v437_v41 = vld [vmem:[%s5128_s18 + $0x78] sm:$0xff]  ;;  %v470_v42 = vld [vmem:[%s5140_s10 + $0xe8] sm:$0xff] }
  0xca   : > { %v436_v36 = vld [vmem:[%s5128_s18 + $0x70] sm:$0xff]  ;;  %v472_v45 = vld [vmem:[%s5140_s10 + $0xf8] sm:$0xff]  ;;  %v4102_v48 = vpack.c.bf16 %v467_v35, %v465_v34  ;;  %v469_v54 = vld [vmem:[%s5140_s10 + $0xe0] sm:$0xff] }
  0xcb   : > { %v4104_v52 = vpack.c.bf16 %v472_v45, %v470_v42  ;;  %v471_v55 = vld [vmem:[%s5140_s10 + $0xf0] sm:$0xff]  ;;  %v5239_v57 = vld [vmem:[%s5119_s12 + $0x8] sm:$0xff]  ;;  %v5242_v58 = vld [vmem:[%s5134_s8] sm:$0xff] }
  0xcc   : > { %v4106_v56 = vpack.c.bf16 %v471_v55, %v469_v54  ;;  %7326 = vst [vmem:[#allocation24_spill] sm:$0xff] %v5239_v57  ;;  %7327 = vst [vmem:[#allocation25_spill] sm:$0xff] %v5242_v58  ;;  %v5245_v59 = vld [vmem:[%s5119_s12 + $0x10] sm:$0xff]  ;;  %v5261_v1 = vld [vmem:[%s5119_s12 + $0x20] sm:$0xff] }
  0xcd   : > { %7328 = vst [vmem:[#allocation26_spill] sm:$0xff] %v5245_v59  ;;  %7332 = vst [vmem:[#allocation30_spill] sm:$0xff] %v5261_v1  ;;  %v5264_v2 = vld [vmem:[%s5134_s8 + $0x28] sm:$0xff]  ;;  %v5274_v5 = vld [vmem:[%s5134_s8 + $0x20] sm:$0xff] }
  0xce   : > { %4055 = vmatpush3.bf16.xpose.msra.mxu0 %v4052_v49  ;;  %v4072_v49 = vpack.c.bf16 %v437_v41, %v436_v36  ;;  %7333 = vst [vmem:[#allocation31_spill] sm:$0xff] %v5264_v2  ;;  %v5270_v3 = vld [vmem:[%s5119_s12 + $0x28] sm:$0xff]  ;;  %7335 = vst [vmem:[#allocation33_spill] sm:$0xff] %v5274_v5  ;;  %v5277_v6 = vld [vmem:[%s5119_s12 + $0x30] sm:$0xff] }
  0xcf   : > { %4087 = vmatpush1.bf16.xpose.msra.mxu1 %v4086_v62  ;;  %4057 = vmatprep.subr.bf16.mxu0 %v4056_v63  ;;  %v5248_v62 = vld [vmem:[%s5134_s8 + $0x18] sm:$0xff]  ;;  %7334 = vst [vmem:[#allocation32_spill] sm:$0xff] %v5270_v3  ;;  %7336 = vst [vmem:[#allocation34_spill] sm:$0xff] %v5277_v6  ;;  %v5299_v11 = vld [vmem:[%s5134_s8 + $0x40] sm:$0xff] }
  0xd0   : > { %4089 = vmatprep.subr.bf16.mxu1 %v4088_v0  ;;  %7329 = vst [vmem:[#allocation27_spill] sm:$0xff] %v5248_v62  ;;  %v5258_v0 = vld [vmem:[%s5134_s8 + $0x10] sm:$0xff]  ;;  %v5280_v7 = vld [vmem:[%s5134_s8 + $0x38] sm:$0xff]  ;;  %7341 = vst [vmem:[#allocation39_spill] sm:$0xff] %v5299_v11 }
  0xd1   : > { %7331 = vst [vmem:[#allocation29_spill] sm:$0xff] %v5258_v0  ;;  %7337 = vst [vmem:[#allocation35_spill] sm:$0xff] %v5280_v7  ;;  %v5302_v12 = vld [vmem:[%s5134_s8 + $0x58] sm:$0xff]  ;;  %v5307_v13 = vld [vmem:[%s5134_s8 + $0x50] sm:$0xff] }
  0xd2   : > { %7342 = vst [vmem:[#allocation40_spill] sm:$0xff] %v5302_v12  ;;  %7343 = vst [vmem:[#allocation41_spill] sm:$0xff] %v5307_v13  ;;  %v5310_v14 = vld [vmem:[%s5134_s8 + $0x68] sm:$0xff]  ;;  %v5315_v15 = vld [vmem:[%s5134_s8 + $0x60] sm:$0xff] }
  0xd3   : > { %7344 = vst [vmem:[#allocation42_spill] sm:$0xff] %v5310_v14  ;;  %7345 = vst [vmem:[#allocation43_spill] sm:$0xff] %v5315_v15  ;;  %v5318_v16 = vld [vmem:[%s5134_s8 + $0x78] sm:$0xff] }
  0xd4   : > { %7346 = vst [vmem:[#allocation44_spill] sm:$0xff] %v5318_v16  ;;  %v5417_v4 = vld [vmem:[#allocation2 + $0x18] sm:$0xff] }
  0xd6   : > { %4059 = vmatpush3.bf16.xpose.msra.mxu0 %v4056_v63  ;;  %v5254_v63 = vld [vmem:[%s5119_s12 + $0x18] sm:$0xff] }
  0xd7   : > { %4091 = vmatpush1.bf16.xpose.msra.mxu1 %v4090_v8  ;;  %4061 = vmatprep.subr.bf16.mxu0 %v4060_v9  ;;  %7330 = vst [vmem:[#allocation28_spill] sm:$0xff] %v5254_v63  ;;  %v5286_v8 = vld [vmem:[%s5119_s12 + $0x38] sm:$0xff]  ;;  %s4777_s12 = smov 121  }
  0xd8   : > { %4093 = vmatprep.subr.bf16.mxu1 %v4092_v10  ;;  %7338 = vst [vmem:[#allocation36_spill] sm:$0xff] %v5286_v8  ;;  %v5293_v10 = vld [vmem:[%s5134_s8 + $0x48] sm:$0xff] }
  0xd9   : > { %7340 = vst [vmem:[#allocation38_spill] sm:$0xff] %v5293_v10 }
  0xde   : > { %4063 = vmatpush3.bf16.xpose.msra.mxu0 %v4060_v9  ;;  %v5290_v9 = vld [vmem:[%s5134_s8 + $0x30] sm:$0xff] }
  0xdf   : > { %4095 = vmatpush1.bf16.xpose.msra.mxu1 %v4094_v17  ;;  %4065 = vmatprep.subr.bf16.mxu0 %v4064_v18  ;;  %7339 = vst [vmem:[#allocation37_spill] sm:$0xff] %v5290_v9  ;;  %v5323_v17 = vld [vmem:[%s5134_s8 + $0x70] sm:$0xff] }
  0xe0   : > { %4097 = vmatprep.subr.bf16.mxu1 %v4096_v19  ;;  %7347 = vst [vmem:[#allocation45_spill] sm:$0xff] %v5323_v17 }
  0xe6   : > { %4067 = vmatpush3.bf16.xpose.msra.mxu0 %v4064_v18 }
  0xe7   : > { %4099 = vmatpush1.bf16.xpose.msra.mxu1 %v4098_v27  ;;  %4069 = vmatprep.subr.bf16.mxu0 %v4068_v28 }
  0xe8   : > { %4101 = vmatprep.subr.bf16.mxu1 %v4100_v29 }
  0xee   : > { %4071 = vmatpush3.bf16.xpose.msra.mxu0 %v4068_v28 }
  0xef   : > { %4103 = vmatpush1.bf16.xpose.msra.mxu1 %v4102_v48  ;;  %4073 = vmatprep.subr.bf16.mxu0 %v4072_v49 }
  0xf0   : > { %4105 = vmatprep.subr.bf16.mxu1 %v4104_v52 }
  0xf6   : > { %4075 = vmatpush3.bf16.xpose.msra.mxu0 %v4072_v49 }
  0xf7   : > { %4107 = vmatpush1.bf16.xpose.msra.mxu1 %v4106_v56 }
  0xfd   : > { %3989 = vmatmul.mubr.f32.vlgmr.msra.gmra.mrb[0].mxu0 %v5239_v57 }
  0xfe   : > { %651 = vmatmul.mubr.f32.vlgmr.msra.gmra.mrb[0].mxu1 %v5242_v58  ;;  %3991 = vmatprep.mubr.f32.mxu0 %v5245_v59 }
  0xff   : > { %655 = vmatprep.mubr.f32.mxu1 %v5248_v62 }
 0x101   : > { %3992 = vmatmul.mubr.f32.gmra.mrb[2].mxu0 %v5254_v63 }
 0x102   : > { %656 = vmatmul.mubr.f32.gmra.mrb[2].mxu1 %v5258_v0  ;;  %3994 = vmatprep.mubr.f32.mxu0 %v5261_v1 }
 0x103   : > { %660 = vmatprep.mubr.f32.mxu1 %v5264_v2 }
 0x105   : > { %3995 = vmatmul.mubr.f32.gmra.mrb[4].mxu0 %v5270_v3 }
 0x106   : > { %661 = vmatmul.mubr.f32.gmra.mrb[4].mxu1 %v5274_v5  ;;  %3997 = vmatprep.mubr.f32.mxu0 %v5277_v6 }
 0x107   : > { %665 = vmatprep.mubr.f32.mxu1 %v5280_v7 }
 0x109   : > { %3998 = vmatmul.mubr.f32.gmra.mrb[6].mxu0 %v5286_v8 }
 0x10a   : > { %666 = vmatmul.mubr.f32.gmra.mrb[6].mxu1 %v5290_v9 }
 0x10b   : > { %670 = vmatprep.mubr.f32.mxu1 %v5293_v10 }
 0x10e   : > { %671 = vmatmul.mubr.f32.gmra.mrb[8].mxu1 %v5299_v11 }
 0x10f   : > { %675 = vmatprep.mubr.f32.mxu1 %v5302_v12  ;;  %v5449_v12 = vld [vmem:[#allocation2 + $0x38] sm:$0xff] }
 0x112   : > { %676 = vmatmul.mubr.f32.gmra.mrb[10].mxu1 %v5307_v13  ;;  %v5443_v13 = vld [vmem:[#allocation2 + $0x30] sm:$0xff] }
 0x113   : > { %680 = vmatprep.mubr.f32.mxu1 %v5310_v14 }
 0x116   : > { %681 = vmatmul.mubr.f32.gmra.mrb[12].mxu1 %v5315_v15  ;;  %v5433_v15 = vld [vmem:[#allocation2 + $0x20] sm:$0xff] }
 0x117   : > { %685 = vmatprep.mubr.f32.mxu1 %v5318_v16 }
 0x11a   : > { %686 = vmatmul.mubr.f32.gmra.mrb[14].mxu1 %v5323_v17 }
 0x1d0   : > { %v3990_v18 = vpop.f32.mrb[0].mxu0 }
 0x1d1   : > { %v652_v19 = vpop.f32.mrb[0].mxu1  ;;  %v539_v20 = vpop.f32.mrb[1].mxu0  ;;  %v5336_v36 = vmul.f32 20.0, %v3990_v18 }
 0x1d2   : > { %v5326_v21 = vmul.f32 20.0, %v652_v19  ;;  %v5328_v22 = vmul.f32 20.0, %v539_v20  ;;  %v654_v23 = vpop.f32.mrb[1].mxu1 }
 0x1d4   : > { %7348 = vst [vmem:[#allocation46_spill] sm:$0xff] %v5326_v21  ;;  %v699_v24 = vmul.f32 0.3, %v5326_v21  ;;  %v3993_v25 = vpop.f32.mrb[2].mxu0 }
 0x1d5   : > { %v657_v27 = vpop.f32.mrb[2].mxu1  ;;  %v549_v28 = vpop.f32.mrb[3].mxu0 }
 0x1d6   : > { %v5331_v29 = vmul.f32 20.0, %v657_v27  ;;  %v659_v34 = vpop.f32.mrb[3].mxu1  ;;  %v5334_v35 = vadd.f32 %v699_v24, %v5328_v22  ;;  %v5342_v52 = vmul.f32 20.0, %v549_v28 }
 0x1d7   : > { %v5354_v34 = vmul.f32 20.0, %v3993_v25 }
 0x1d8   : > { %7349 = vst [vmem:[#allocation47_spill] sm:$0xff] %v5331_v29  ;;  %v700_v41 = vmul.f32 0.3, %v5331_v29  ;;  %723 = vmax.xlane.f32.xlu0 %v5334_v35  ;;  %v3996_v42 = vpop.f32.mrb[4].mxu0 }
 0x1d9   : > { %v662_v45 = vpop.f32.mrb[4].mxu1  ;;  %v559_v48 = vpop.f32.mrb[5].mxu0 }
 0x1da   : > { %v5340_v49 = vmul.f32 20.0, %v662_v45  ;;  %v664_v54 = vpop.f32.mrb[5].mxu1  ;;  %v5345_v55 = vadd.f32 %v700_v41, %v5336_v36 }
 0x1db   : > { %v5360_v54 = vmul.f32 20.0, %v559_v48 }
 0x1dc   : > { %7350 = vst [vmem:[#allocation48_spill] sm:$0xff] %v5340_v49  ;;  %v701_v56 = vmul.f32 0.3, %v5340_v49  ;;  %725 = vmax.xlane.f32.xlu0 %v5345_v55  ;;  %v3999_v18 = vpop.f32.mrb[6].mxu0 }
 0x1dd   : > { %v667_v19 = vpop.f32.mrb[6].mxu1  ;;  %v569_v20 = vpop.f32.mrb[7].mxu0  ;;  %7351 = vst [vmem:[#allocation49_spill] sm:$0xff] %v5360_v54  ;;  %v5392_v44 = vmul.f32 20.0, %v3999_v18 }
 0x1de   : > { %v5349_v23 = vmul.f32 20.0, %v667_v19  ;;  %v669_v24 = vpop.f32.mrb[7].mxu1  ;;  %v5352_v27 = vadd.f32 %v701_v56, %v5342_v52 }
 0x1df   : > { %7354 = vst [vmem:[#allocation52_spill] sm:$0xff] %v5392_v44 }
 0x1e0   : > { %v702_v28 = vmul.f32 0.3, %v5349_v23  ;;  %727 = vmax.xlane.f32.xlu1 %v5352_v27 }
 0x1e1   : > { %v672_v41 = vpop.f32.mrb[8].mxu1 }
 0x1e2   : > { %v5358_v45 = vmul.f32 20.0, %v672_v41  ;;  %v674_v51 = vpop.f32.mrb[9].mxu1  ;;  %v5363_v53 = vadd.f32 %v702_v28, %v5354_v34 }
 0x1e3   : > { %v5374_v51 = vmul.f32 20.0, %v3996_v42 }
 0x1e4   : > { %v703_v19 = vmul.f32 0.3, %v5358_v45  ;;  %729 = vmax.xlane.f32.xlu1 %v5363_v53 }
 0x1e5   : > { %v677_v56 = vpop.f32.mrb[10].mxu1  ;;  %7352 = vst [vmem:[#allocation50_spill] sm:$0xff] %v5374_v51 }
 0x1e6   : > { %v5367_v25 = vmul.f32 20.0, %v677_v56  ;;  %v679_v24 = vpop.f32.mrb[11].mxu1  ;;  %v5370_v47 = vadd.f32 %v703_v19, %v5360_v54  ;;  %v5380_v56 = vmul.f32 20.0, %v569_v20 }
 0x1e8   : > { %v704_v48 = vmul.f32 0.3, %v5367_v25  ;;  %731 = vmax.xlane.f32.xlu0 %v5370_v47  ;;  %7353 = vst [vmem:[#allocation51_spill] sm:$0xff] %v5380_v56 }
 0x1e9   : > { %v682_v28 = vpop.f32.mrb[12].mxu1 }
 0x1ea   : > { %v5378_v41 = vmul.f32 20.0, %v682_v28  ;;  %v684_v24 = vpop.f32.mrb[13].mxu1  ;;  %v5383_v19 = vadd.f32 %v704_v48, %v5374_v51  ;;  %v5400_v28 = vld [vmem:[#allocation2 + $0x8] sm:$0xff] }
 0x1eb   : > { %v5402_v24 = vld [vmem:[#allocation2] sm:$0xff] }
 0x1ec   : > { %v705_v43 = vmul.f32 0.3, %v5378_v41  ;;  %733 = vmax.xlane.f32.xlu1 %v5383_v19 }
 0x1ed   : > { %v687_v50 = vpop.f32.mrb[14].mxu1 }
 0x1ee   : > { %v5387_v42 = vmul.f32 20.0, %v687_v50  ;;  %v689_v46 = vpop.f32.mrb[15].mxu1  ;;  %v5390_v40 = vadd.f32 %v705_v43, %v5380_v56 }
 0x1f0   : > { %v706_v20 = vmul.f32 0.3, %v5387_v42  ;;  %735 = vmax.xlane.f32.xlu0 %v5390_v40 }
 0x1f2   : > { %v5397_v48 = vadd.f32 %v706_v20, %v5392_v44  ;;  %v5415_v20 = vld [vmem:[#allocation2 + $0x10] sm:$0xff] }
 0x1f4   : > { %737 = vmax.xlane.f32.xlu1 %v5397_v48 }
 0x205   : > { %845 = vrot.lane.b32.xlu1 %v5400_v28, %s4775_s26 }
 0x206   : > { %843 = vrot.lane.b32.xlu0 %v5402_v24, %s4775_s26 }
 0x265   : > { %v724_v43 = vpop.xlane.xlu0 %723 }
 0x266   : > { %v5409_v46 = vmax.f32 %v5402_v24, %v724_v43  ;;  %v5425_v43 = vld [vmem:[#allocation2 + $0x28] sm:$0xff] }
 0x268   : > { %773 = vperm.xlu0 %4305, %v5409_v46  }
 0x269   : > { %v726_v50 = vpop.xlane.xlu0 %725 }
 0x26a   : > { %v5413_v18 = vmax.f32 %v5400_v28, %v726_v50 }
 0x26c   : > { %778 = vperm.xlu1 %4306, %v5413_v18   ;;  %849 = vrot.lane.b32.xlu0 %v5417_v4, %s4775_s26 }
 0x26d   : > { %v728_v17 = vpop.xlane.xlu1 %727 }
 0x26e   : > { %v5423_v16 = vmax.f32 %v5415_v20, %v728_v17 }
 0x270   : > { %783 = vperm.xlu1 %4306, %v5423_v16   ;;  %853 = vrot.lane.b32.xlu0 %v5425_v43, %s4775_s26 }
 0x271   : > { %v730_v50 = vpop.xlane.xlu1 %729 }
 0x272   : > { %v5431_v8 = vmax.f32 %v5417_v4, %v730_v50 }
 0x274   : > { %788 = vperm.xlu1 %4306, %v5431_v8  }
 0x275   : > { %v732_v6 = vpop.xlane.xlu0 %731 }
 0x276   : > { %v5437_v14 = vmax.f32 %v5433_v15, %v732_v6 }
 0x278   : > { %793 = vperm.xlu1 %4306, %v5437_v14  }
 0x279   : > { %v734_v17 = vpop.xlane.xlu1 %733 }
 0x27a   : > { %v5441_v3 = vmax.f32 %v5425_v43, %v734_v17 }
 0x27c   : > { %798 = vperm.xlu1 %4306, %v5441_v3  }
 0x27d   : > { %v736_v50 = vpop.xlane.xlu0 %735 }
 0x27e   : > { %v5447_v1 = vmax.f32 %v5443_v13, %v736_v50 }
 0x280   : > { %803 = vperm.xlu1 %4306, %v5447_v1  }
 0x281   : > { %v738_v6 = vpop.xlane.xlu1 %737  ;;  %v5460_v17 = vpop.permute.xlu0 %843 }
 0x282   : > { %v5453_v63 = vmax.f32 %v5449_v12, %v738_v6 }
 0x284   : > { %808 = vperm.xlu1 %4306, %v5453_v63  }
 0x285   : > { %v5462_v50 = vpop.permute.xlu1 %845 }
 0x288   : > { %847 = vrot.lane.b32.xlu1 %v5415_v20, %s4775_s26 }
 0x28c   : > { %851 = vrot.lane.b32.xlu1 %v5433_v15, %s4775_s26 }
 0x2e7   : > { %v774_v11 = vpop.permute.xlu0 %773 }
 0x2e8   : > { %v811_v59 = vsub.f32 %v5334_v35, %v774_v11 }
 0x2ea   : > { %v819_v10 = vmul.f32 1.442695, %v811_v59 }
 0x2eb   : > { %v779_v57 = vpop.permute.xlu1 %778 }
 0x2ec   : > { %4307 = vpow2.f32 %v819_v10  ;;  %v812_v6 = vsub.f32 %v5345_v55, %v779_v57 }
 0x2ee   : > { %v821_v9 = vmul.f32 1.442695, %v812_v6 }
 0x2ef   : > { %v784_v7 = vpop.permute.xlu1 %783 }
 0x2f0   : > { %4309 = vpow2.f32 %v821_v9  ;;  %v813_v5 = vsub.f32 %v5352_v27, %v784_v7 }
 0x2f2   : > { %v823_v2 = vmul.f32 1.442695, %v813_v5 }
 0x2f3   : > { %v789_v0 = vpop.permute.xlu1 %788 }
 0x2f4   : > { %4311 = vpow2.f32 %v823_v2  ;;  %v814_v62 = vsub.f32 %v5363_v53, %v789_v0 }
 0x2f6   : > { %v5468_v58 = vpop.eup %4307  ;;  %v825_v60 = vmul.f32 1.442695, %v814_v62 }
 0x2f7   : > { %v794_v61 = vpop.permute.xlu1 %793  ;;  %875 = vadd.xlane.f32.xlu1 %v5468_v58 }
 0x2f8   : > { %4313 = vpow2.f32 %v825_v60  ;;  %v815_v59 = vsub.f32 %v5370_v47, %v794_v61 }
 0x2fa   : > { %v5472_v57 = vpop.eup %4309  ;;  %v827_v10 = vmul.f32 1.442695, %v815_v59 }
 0x2fb   : > { %v799_v9 = vpop.permute.xlu1 %798  ;;  %877 = vadd.xlane.f32.xlu0 %v5472_v57 }
 0x2fc   : > { %4315 = vpow2.f32 %v827_v10  ;;  %v816_v2 = vsub.f32 %v5383_v19, %v799_v9 }
 0x2fe   : > { %v5476_v5 = vpop.eup %4311  ;;  %v829_v0 = vmul.f32 1.442695, %v816_v2 }
 0x2ff   : > { %879 = vadd.xlane.f32.xlu0 %v5476_v5  ;;  %v804_v62 = vpop.permute.xlu1 %803 }
 0x300   : > { %4317 = vpow2.f32 %v829_v0  ;;  %v817_v60 = vsub.f32 %v5390_v40, %v804_v62  ;;  %v989_v62 = vmul.f32 %v5472_v57, %v5336_v36 }
 0x302   : > { %v5480_v7 = vpop.eup %4313  ;;  %v831_v61 = vmul.f32 1.442695, %v817_v60  ;;  %v990_v60 = vmul.f32 %v5476_v5, %v5342_v52 }
 0x303   : > { %v809_v11 = vpop.permute.xlu1 %808  ;;  %881 = vadd.xlane.f32.xlu1 %v5480_v7 }
 0x304   : > { %4319 = vpow2.f32 %v831_v61  ;;  %v818_v6 = vsub.f32 %v5397_v48, %v809_v11  ;;  %v988_v61 = vmul.f32 %v5468_v58, %v5328_v22 }
 0x306   : > { %v5484_v59 = vpop.eup %4315  ;;  %v833_v10 = vmul.f32 1.442695, %v818_v6  ;;  %v991_v6 = vmul.f32 %v5480_v7, %v5354_v34 }
 0x307   : > { %883 = vadd.xlane.f32.xlu0 %v5484_v59  ;;  %v992_v11 = vmul.f32 %v5484_v59, %v5360_v54  ;;  %v848_v39 = vpop.permute.xlu1 %847 }
 0x308   : > { %4321 = vpow2.f32 %v833_v10 }
 0x30a   : > { %v5487_v9 = vpop.eup %4317 }
 0x30b   : > { %885 = vadd.xlane.f32.xlu1 %v5487_v9 }
 0x30e   : > { %v5490_v2 = vpop.eup %4319 }
 0x30f   : > { %887 = vadd.xlane.f32.xlu0 %v5490_v2  ;;  %v994_v10 = vmul.f32 %v5490_v2, %v5380_v56  ;;  %v749_v56 = vsub.f32 %v5415_v20, %v5423_v16 }
 0x312   : > { %v5493_v0 = vpop.eup %4321 }
 0x313   : > { %889 = vadd.xlane.f32.xlu1 %v5493_v0 }
 0x324   : > { %855 = vrot.lane.b32.xlu1 %v5443_v13, %s4775_s26 }
 0x325   : > { %857 = vrot.lane.b32.xlu0 %v5449_v12, %s4775_s26 }
 0x344   : > { %998 = vadd.xlane.f32.xlu0 %v989_v62  ;;  %v993_v62 = vmul.f32 %v5487_v9, %v5374_v51 }
 0x348   : > { %1000 = vadd.xlane.f32.xlu0 %v990_v60  ;;  %996 = vadd.xlane.f32.xlu1 %v988_v61  ;;  %v995_v60 = vmul.f32 %v5493_v0, %v5392_v44  ;;  %v747_v61 = vsub.f32 %v5402_v24, %v5409_v46  ;;  %v850_v44 = vpop.permute.xlu0 %849  ;;  %v751_v24 = vsub.f32 %v5433_v15, %v5437_v14 }
 0x34a   : > { %v755_v38 = vmul.f32 1.442695, %v747_v61  ;;  %v852_v61 = vpop.permute.xlu1 %851 }
 0x34c   : > { %1004 = vadd.xlane.f32.xlu0 %v992_v11  ;;  %1002 = vadd.xlane.f32.xlu1 %v991_v6  ;;  %v748_v11 = vsub.f32 %v5400_v28, %v5413_v18  ;;  %4323 = vpow2.f32 %v755_v38  ;;  %v763_v28 = vmul.f32 1.442695, %v751_v24  ;;  %v854_v20 = vpop.permute.xlu0 %853 }
 0x34e   : > { %v757_v6 = vmul.f32 1.442695, %v748_v11 }
 0x350   : > { %1008 = vadd.xlane.f32.xlu0 %v994_v10  ;;  %1006 = vadd.xlane.f32.xlu1 %v993_v62  ;;  %4325 = vpow2.f32 %v757_v6  ;;  %v759_v10 = vmul.f32 1.442695, %v749_v56  ;;  %v750_v62 = vsub.f32 %v5417_v4, %v5431_v8  ;;  %v752_v56 = vsub.f32 %v5425_v43, %v5441_v3 }
 0x352   : > { %4327 = vpow2.f32 %v759_v10  ;;  %v765_v15 = vmul.f32 1.442695, %v752_v56 }
 0x354   : > { %1010 = vadd.xlane.f32.xlu1 %v995_v60  ;;  %v761_v60 = vmul.f32 1.442695, %v750_v62 }
 0x356   : > { %v5526_v54 = vpop.eup %4323  ;;  %4329 = vpow2.f32 %v761_v60 }
 0x357   : > { %v867_v38 = vmul.f32 %v5526_v54, %v5460_v17  ;;  %4331 = vpow2.f32 %v763_v28 }
 0x358   : > { %4333 = vpow2.f32 %v765_v15 }
 0x35a   : > { %v5532_v6 = vpop.eup %4325 }
 0x35b   : > { %v868_v10 = vmul.f32 %v5532_v6, %v5462_v50  ;;  %v754_v50 = vsub.f32 %v5449_v12, %v5453_v63 }
 0x35c   : > { %v5537_v60 = vpop.eup %4327 }
 0x35d   : > { %v869_v24 = vmul.f32 %v5537_v60, %v848_v39  ;;  %v753_v39 = vsub.f32 %v5443_v13, %v5447_v1 }
 0x35f   : > { %v767_v12 = vmul.f32 1.442695, %v753_v39 }
 0x384   : > { %v876_v11 = vpop.xlane.xlu1 %875 }
 0x385   : > { %v891_v4 = vadd.f32 %v876_v11, %v867_v38  ;;  %v5541_v11 = vpop.eup %4329 }
 0x387   : > { %907 = vrot.lane.b32.xlu1 %v891_v4, %s4776_s0  ;;  %v870_v4 = vmul.f32 %v5541_v11, %v850_v44 }
 0x388   : > { %v878_v62 = vpop.xlane.xlu0 %877 }
 0x389   : > { %v892_v17 = vadd.f32 %v878_v62, %v868_v10  ;;  %v5547_v10 = vpop.eup %4331  ;;  %v769_v62 = vmul.f32 1.442695, %v754_v50 }
 0x38a   : > { %v871_v15 = vmul.f32 %v5547_v10, %v852_v61 }
 0x38b   : > { %909 = vrot.lane.b32.xlu0 %v892_v17, %s4776_s0  ;;  %4335 = vpow2.f32 %v769_v62 }
 0x38c   : > { %v880_v43 = vpop.xlane.xlu0 %879  ;;  %4337 = vpow2.f32 %v767_v12  ;;  %v1109_v12 = vmul.f32 %v5468_v58, %v5326_v21 }
 0x38d   : > { %v893_v38 = vadd.f32 %v880_v43, %v869_v24  ;;  %v5553_v43 = vpop.eup %4333 }
 0x38e   : > { %v872_v44 = vmul.f32 %v5553_v43, %v854_v20 }
 0x38f   : > { %911 = vrot.lane.b32.xlu1 %v893_v38, %s4776_s0 }
 0x390   : > { %v882_v28 = vpop.xlane.xlu1 %881 }
 0x391   : > { %v894_v56 = vadd.f32 %v882_v28, %v870_v4 }
 0x393   : > { %913 = vrot.lane.b32.xlu0 %v894_v56, %s4776_s0 }
 0x394   : > { %v884_v17 = vpop.xlane.xlu0 %883 }
 0x395   : > { %v895_v24 = vadd.f32 %v884_v17, %v871_v15  ;;  %v5558_v50 = vpop.eup %4335 }
 0x396   : > { %v5561_v17 = vpop.eup %4337 }
 0x397   : > { %915 = vrot.lane.b32.xlu1 %v895_v24, %s4776_s0  ;;  %v1110_v24 = vmul.f32 %v5472_v57, %v5331_v29 }
 0x398   : > { %v886_v38 = vpop.xlane.xlu1 %885 }
 0x399   : > { %v896_v4 = vadd.f32 %v886_v38, %v872_v44 }
 0x39b   : > { %917 = vrot.lane.b32.xlu0 %v896_v4, %s4776_s0 }
 0x39c   : > { %v888_v13 = vpop.xlane.xlu0 %887 }
 0x3a0   : > { %v890_v61 = vpop.xlane.xlu1 %889  ;;  %v858_v28 = vpop.permute.xlu0 %857 }
 0x3a1   : > { %v874_v56 = vmul.f32 %v5558_v50, %v858_v28 }
 0x3a3   : > { %v898_v15 = vadd.f32 %v890_v61, %v874_v56 }
 0x3a4   : > { %v856_v39 = vpop.permute.xlu1 %855 }
 0x3a5   : > { %v873_v20 = vmul.f32 %v5561_v17, %v856_v39  ;;  %921 = vrot.lane.b32.xlu0 %v898_v15, %s4776_s0 }
 0x3a7   : > { %v897_v62 = vadd.f32 %v888_v13, %v873_v20 }
 0x3a9   : > { %919 = vrot.lane.b32.xlu1 %v897_v62, %s4776_s0 }
 0x3c4   : > { %1119 = vadd.xlane.f32.xlu0 %v1110_v24 }
 0x3cd   : > { %1117 = vadd.xlane.f32.xlu1 %v1109_v12 }
 0x3d1   : > { %v999_v38 = vpop.xlane.xlu0 %998 }
 0x3d5   : > { %v997_v44 = vpop.xlane.xlu1 %996  ;;  %v1001_v61 = vpop.xlane.xlu0 %1000 }
 0x3d9   : > { %v1003_v4 = vpop.xlane.xlu1 %1002  ;;  %v1005_v56 = vpop.xlane.xlu0 %1004 }
 0x3dd   : > { %v5570_v28 = vpop.xlane.xlu1 %1006  ;;  %v5574_v13 = vpop.xlane.xlu0 %1008 }
 0x3e1   : > { %v5572_v39 = vpop.xlane.xlu1 %1010 }
 0x3f9   : > { %v908_v15 = vpop.permute.xlu1 %907 }
 0x3fa   : > { %932 = vst.msk [vmem:[#allocation2] sm:$0xff] %vm931_vm1, %v908_v15 }
 0x3fd   : > { %v910_v57 = vpop.permute.xlu0 %909 }
 0x3fe   : > { %933 = vst.msk [vmem:[#allocation2 + $0x8] sm:$0xff] %vm931_vm1, %v910_v57 }
 0x401   : > { %v912_v58 = vpop.permute.xlu1 %911  ;;  %v940_v20 = vld [vmem:[#allocation2] sm:$0xff] }
 0x402   : > { %934 = vst.msk [vmem:[#allocation2 + $0x10] sm:$0xff] %vm931_vm1, %v912_v58  ;;  %956 = vrot.lane.b32.xlu0 %v940_v20, %s4777_s12 }
 0x405   : > { %v914_v62 = vpop.permute.xlu0 %913  ;;  %v941_v24 = vld [vmem:[#allocation2 + $0x8] sm:$0xff] }
 0x406   : > { %935 = vst.msk [vmem:[#allocation2 + $0x18] sm:$0xff] %vm931_vm1, %v914_v62  ;;  %958 = vrot.lane.b32.xlu1 %v941_v24, %s4777_s12 }
 0x409   : > { %v916_v12 = vpop.permute.xlu1 %915  ;;  %v942_v21 = vld [vmem:[#allocation2 + $0x10] sm:$0xff] }
 0x40a   : > { %936 = vst.msk [vmem:[#allocation2 + $0x20] sm:$0xff] %vm931_vm1, %v916_v12  ;;  %960 = vrot.lane.b32.xlu1 %v942_v21, %s4777_s12 }
 0x40d   : > { %v918_v15 = vpop.permute.xlu0 %917  ;;  %v943_v57 = vld [vmem:[#allocation2 + $0x18] sm:$0xff] }
 0x40e   : > { %937 = vst.msk [vmem:[#allocation2 + $0x28] sm:$0xff] %vm931_vm1, %v918_v15  ;;  %962 = vrot.lane.b32.xlu0 %v943_v57, %s4777_s12  ;;  %v1111_v15 = vmul.f32 %v5476_v5, %v5340_v49  ;;  %v1112_v57 = vmul.f32 %v5480_v7, %v5349_v23 }
 0x411   : > { %v944_v58 = vld [vmem:[#allocation2 + $0x20] sm:$0xff] }
 0x412   : > { %964 = vrot.lane.b32.xlu1 %v944_v58, %s4777_s12 }
 0x415   : > { %v945_v20 = vld [vmem:[#allocation2 + $0x28] sm:$0xff] }
 0x416   : > { %966 = vrot.lane.b32.xlu0 %v945_v20, %s4777_s12 }
 0x417   : > { %v922_v62 = vpop.permute.xlu0 %921 }
 0x418   : > { %939 = vst.msk [vmem:[#allocation2 + $0x38] sm:$0xff] %vm931_vm1, %v922_v62 }
 0x41b   : > { %v920_v24 = vpop.permute.xlu1 %919 }
 0x41c   : > { %938 = vst.msk [vmem:[#allocation2 + $0x30] sm:$0xff] %vm931_vm1, %v920_v24 }
 0x41f   : > { %v947_v12 = vld [vmem:[#allocation2 + $0x38] sm:$0xff] }
 0x420   : > { %970 = vrot.lane.b32.xlu0 %v947_v12, %s4777_s12 }
 0x423   : > { %v946_v21 = vld [vmem:[#allocation2 + $0x30] sm:$0xff] }
 0x424   : > { %968 = vrot.lane.b32.xlu1 %v946_v21, %s4777_s12 }
 0x43f   : > { %1121 = vadd.xlane.f32.xlu0 %v1111_v15 }
 0x448   : > { %1123 = vadd.xlane.f32.xlu1 %v1112_v57 }
 0x451   : > { %v5596_v58 = vpop.xlane.xlu0 %1119 }
 0x45a   : > { %v5598_v20 = vpop.xlane.xlu1 %1117 }
 0x474   : > { %v957_v62 = vpop.permute.xlu0 %956 }
 0x475   : > { %v980_v24 = vmul.f32 %v5526_v54, %v957_v62 }
 0x477   : > { %v1012_v29 = vadd.f32 %v997_v44, %v980_v24 }
 0x478   : > { %v959_v12 = vpop.permute.xlu1 %958 }
 0x479   : > { %v981_v51 = vmul.f32 %v5532_v6, %v959_v12  ;;  %1028 = vrot.lane.b32.xlu1 %v1012_v29, %s4778_s9 }
 0x47b   : > { %v1013_v5 = vadd.f32 %v999_v38, %v981_v51 }
 0x47c   : > { %v961_v21 = vpop.permute.xlu1 %960 }
 0x47d   : > { %v982_v15 = vmul.f32 %v5537_v60, %v961_v21  ;;  %1030 = vrot.lane.b32.xlu0 %v1013_v5, %s4778_s9 }
 0x47f   : > { %v1014_v7 = vadd.f32 %v1001_v61, %v982_v15  ;;  %v1113_v15 = vmul.f32 %v5484_v59, %v5358_v45 }
 0x480   : > { %v963_v57 = vpop.permute.xlu0 %962 }
 0x481   : > { %v983_v49 = vmul.f32 %v5541_v11, %v963_v57  ;;  %1032 = vrot.lane.b32.xlu1 %v1014_v7, %s4778_s9  ;;  %v1116_v7 = vmul.f32 %v5493_v0, %v5387_v42 }
 0x483   : > { %v1015_v62 = vadd.f32 %v1003_v4, %v983_v49 }
 0x484   : > { %v965_v44 = vpop.permute.xlu1 %964 }
 0x485   : > { %v984_v24 = vmul.f32 %v5547_v10, %v965_v44  ;;  %1034 = vrot.lane.b32.xlu0 %v1015_v62, %s4778_s9 }
 0x487   : > { %v1016_v12 = vadd.f32 %v1005_v56, %v984_v24 }
 0x488   : > { %v967_v29 = vpop.permute.xlu0 %966 }
 0x489   : > { %v985_v51 = vmul.f32 %v5553_v43, %v967_v29  ;;  %1036 = vrot.lane.b32.xlu1 %v1016_v12, %s4778_s9 }
 0x48b   : > { %v1017_v38 = vadd.f32 %v5570_v28, %v985_v51  ;;  %v1115_v28 = vmul.f32 %v5490_v2, %v5378_v41 }
 0x48d   : > { %1038 = vrot.lane.b32.xlu0 %v1017_v38, %s4778_s9 }
 0x492   : > { %v971_v61 = vpop.permute.xlu0 %970 }
 0x493   : > { %v987_v5 = vmul.f32 %v5558_v50, %v971_v61 }
 0x495   : > { %v1019_v49 = vadd.f32 %v5572_v39, %v987_v5  ;;  %v1114_v39 = vmul.f32 %v5487_v9, %v5367_v25 }
 0x496   : > { %v969_v4 = vpop.permute.xlu1 %968 }
 0x497   : > { %v986_v21 = vmul.f32 %v5561_v17, %v969_v4  ;;  %1042 = vrot.lane.b32.xlu0 %v1019_v49, %s4778_s9 }
 0x499   : > { %v1018_v56 = vadd.f32 %v5574_v13, %v986_v21 }
 0x49b   : > { %1040 = vrot.lane.b32.xlu1 %v1018_v56, %s4778_s9 }
 0x4b6   : > { %1125 = vadd.xlane.f32.xlu0 %v1113_v15 }
 0x4ba   : > { %1129 = vadd.xlane.f32.xlu0 %v1115_v28 }
 0x4bf   : > { %1127 = vadd.xlane.f32.xlu1 %v1114_v39 }
 0x4c3   : > { %1131 = vadd.xlane.f32.xlu1 %v1116_v7 }
 0x4cc   : > { %v1122_v13 = vpop.xlane.xlu0 %1121 }
 0x4d5   : > { %v1124_v57 = vpop.xlane.xlu1 %1123 }
 0x4eb   : > { %v1029_v62 = vpop.permute.xlu1 %1028 }
 0x4ec   : > { %1053 = vst.msk [vmem:[#allocation2] sm:$0xff] %vm1052_vm2, %v1029_v62 }
 0x4ef   : > { %v1031_v59 = vpop.permute.xlu0 %1030 }
 0x4f0   : > { %1054 = vst.msk [vmem:[#allocation2 + $0x8] sm:$0xff] %vm1052_vm2, %v1031_v59 }
 0x4f3   : > { %v1033_v44 = vpop.permute.xlu1 %1032  ;;  %v1061_v2 = vld [vmem:[#allocation2] sm:$0xff] }
 0x4f4   : > { %1055 = vst.msk [vmem:[#allocation2 + $0x10] sm:$0xff] %vm1052_vm2, %v1033_v44  ;;  %1077 = vrot.lane.b32.xlu0 %v1061_v2, %s4779_s30 }
 0x4f7   : > { %v1035_v9 = vpop.permute.xlu0 %1034  ;;  %v1062_v24 = vld [vmem:[#allocation2 + $0x8] sm:$0xff] }
 0x4f8   : > { %1056 = vst.msk [vmem:[#allocation2 + $0x18] sm:$0xff] %vm1052_vm2, %v1035_v9  ;;  %1079 = vrot.lane.b32.xlu1 %v1062_v24, %s4779_s30 }
 0x4fb   : > { %v1037_v0 = vpop.permute.xlu1 %1036  ;;  %v1063_v12 = vld [vmem:[#allocation2 + $0x10] sm:$0xff] }
 0x4fc   : > { %1057 = vst.msk [vmem:[#allocation2 + $0x20] sm:$0xff] %vm1052_vm2, %v1037_v0  ;;  %1081 = vrot.lane.b32.xlu1 %v1063_v12, %s4779_s30 }
 0x4ff   : > { %v1039_v29 = vpop.permute.xlu0 %1038  ;;  %v1064_v51 = vld [vmem:[#allocation2 + $0x18] sm:$0xff] }
 0x500   : > { %1058 = vst.msk [vmem:[#allocation2 + $0x28] sm:$0xff] %vm1052_vm2, %v1039_v29  ;;  %1083 = vrot.lane.b32.xlu0 %v1064_v51, %s4779_s30 }
 0x503   : > { %v1065_v38 = vld [vmem:[#allocation2 + $0x20] sm:$0xff] }
 0x504   : > { %1085 = vrot.lane.b32.xlu1 %v1065_v38, %s4779_s30 }
 0x507   : > { %v1066_v61 = vld [vmem:[#allocation2 + $0x28] sm:$0xff] }
 0x508   : > { %1087 = vrot.lane.b32.xlu0 %v1066_v61, %s4779_s30 }
 0x509   : > { %v1043_v5 = vpop.permute.xlu0 %1042 }
 0x50a   : > { %1060 = vst.msk [vmem:[#allocation2 + $0x38] sm:$0xff] %vm1052_vm2, %v1043_v5 }
 0x50d   : > { %v1041_v49 = vpop.permute.xlu1 %1040 }
 0x50e   : > { %1059 = vst.msk [vmem:[#allocation2 + $0x30] sm:$0xff] %vm1052_vm2, %v1041_v49 }
 0x511   : > { %v1068_v4 = vld [vmem:[#allocation2 + $0x38] sm:$0xff] }
 0x512   : > { %1091 = vrot.lane.b32.xlu0 %v1068_v4, %s4779_s30 }
 0x515   : > { %v1067_v21 = vld [vmem:[#allocation2 + $0x30] sm:$0xff] }
 0x516   : > { %1089 = vrot.lane.b32.xlu1 %v1067_v21, %s4779_s30 }
 0x543   : > { %v1126_v56 = vpop.xlane.xlu0 %1125 }
 0x547   : > { %v1130_v28 = vpop.xlane.xlu0 %1129 }
 0x54c   : > { %v1128_v15 = vpop.xlane.xlu1 %1127 }
 0x550   : > { %v1132_v39 = vpop.xlane.xlu1 %1131 }
 0x566   : > { %v1078_v7 = vpop.permute.xlu0 %1077 }
 0x567   : > { %v1101_v62 = vmul.f32 %v5526_v54, %v1078_v7 }
 0x569   : > { %v1133_v59 = vadd.f32 %v5598_v20, %v1101_v62 }
 0x56a   : > { %v1080_v44 = vpop.permute.xlu1 %1079 }
 0x56b   : > { %v1102_v2 = vmul.f32 %v5532_v6, %v1080_v44  ;;  %1149 = vrot.lane.b32.xlu1 %v1133_v59, %s4780_s17 }
 0x56d   : > { %v1134_v9 = vadd.f32 %v5596_v58, %v1102_v2 }
 0x56e   : > { %v1082_v24 = vpop.permute.xlu1 %1081 }
 0x56f   : > { %v1103_v0 = vmul.f32 %v5537_v60, %v1082_v24  ;;  %1151 = vrot.lane.b32.xlu0 %v1134_v9, %s4780_s17 }
 0x571   : > { %v1135_v12 = vadd.f32 %v1122_v13, %v1103_v0 }
 0x572   : > { %v1084_v29 = vpop.permute.xlu0 %1083 }
 0x573   : > { %v1104_v51 = vmul.f32 %v5541_v11, %v1084_v29  ;;  %1153 = vrot.lane.b32.xlu1 %v1135_v12, %s4780_s17 }
 0x575   : > { %v1136_v54 = vadd.f32 %v1124_v57, %v1104_v51 }
 0x576   : > { %v1086_v20 = vpop.permute.xlu1 %1085 }
 0x577   : > { %v1105_v6 = vmul.f32 %v5547_v10, %v1086_v20  ;;  %1155 = vrot.lane.b32.xlu0 %v1136_v54, %s4780_s17 }
 0x579   : > { %v1137_v38 = vadd.f32 %v1126_v56, %v1105_v6 }
 0x57a   : > { %v1088_v61 = vpop.permute.xlu0 %1087 }
 0x57b   : > { %v1106_v58 = vmul.f32 %v5553_v43, %v1088_v61  ;;  %1157 = vrot.lane.b32.xlu1 %v1137_v38, %s4780_s17 }
 0x57d   : > { %v1138_v60 = vadd.f32 %v1128_v15, %v1106_v58 }
 0x57f   : > { %1159 = vrot.lane.b32.xlu0 %v1138_v60, %s4780_s17 }
 0x584   : > { %v1092_v13 = vpop.permute.xlu0 %1091 }
 0x585   : > { %v1108_v11 = vmul.f32 %v5558_v50, %v1092_v13 }
 0x587   : > { %v1140_v5 = vadd.f32 %v1132_v39, %v1108_v11 }
 0x588   : > { %v1090_v49 = vpop.permute.xlu1 %1089 }
 0x589   : > { %v1107_v57 = vmul.f32 %v5561_v17, %v1090_v49  ;;  %1163 = vrot.lane.b32.xlu0 %v1140_v5, %s4780_s17 }
 0x58b   : > { %v1139_v10 = vadd.f32 %v1130_v28, %v1107_v57 }
 0x58d   : > { %1161 = vrot.lane.b32.xlu1 %v1139_v10, %s4780_s17  ;;  %1203 = vrot.lane.b32.xlu0 (!%p3844_p8), %v5334_v35, %s4781_s15 }
 0x591   : > { %1207 = vrot.lane.b32.xlu1 (!%p3844_p8), %v5352_v27, %s4781_s15  ;;  %1205 = vrot.lane.b32.xlu0 (!%p3844_p8), %v5345_v55, %s4781_s15 }
 0x595   : > { %1209 = vrot.lane.b32.xlu1 (!%p3844_p8), %v5363_v53, %s4781_s15  ;;  %1211 = vrot.lane.b32.xlu0 (!%p3844_p8), %v5370_v47, %s4781_s15 }
 0x599   : > { %1213 = vrot.lane.b32.xlu1 (!%p3844_p8), %v5383_v19, %s4781_s15  ;;  %1215 = vrot.lane.b32.xlu0 (!%p3844_p8), %v5390_v40, %s4781_s15 }
 0x59d   : > { %1217 = vrot.lane.b32.xlu1 (!%p3844_p8), %v5397_v48, %s4781_s15 }
 0x5dd   : > { %v1150_v43 = vpop.permute.xlu1 %1149 }
 0x5de   : > { %1174 = vst.msk [vmem:[#allocation2] sm:$0xff] %vm1173_vm3, %v1150_v43 }
 0x5df   : > { %1183 = vst.msk [vmem:[#allocation2] sm:$0xff] %vm1182_vm4, %v5409_v46 }
 0x5e1   : > { %v1152_v4 = vpop.permute.xlu0 %1151 }
 0x5e2   : > { %1175 = vst.msk [vmem:[#allocation2 + $0x8] sm:$0xff] %vm1173_vm3, %v1152_v4 }
 0x5e3   : > { %1184 = vst.msk [vmem:[#allocation2 + $0x8] sm:$0xff] %vm1182_vm4, %v5413_v18 }
 0x5e5   : > { %v1154_v50 = vpop.permute.xlu1 %1153 }
 0x5e6   : > { %1176 = vst.msk [vmem:[#allocation2 + $0x10] sm:$0xff] %vm1173_vm3, %v1154_v50 }
 0x5e7   : > { %1185 = vst.msk [vmem:[#allocation2 + $0x10] sm:$0xff] %vm1182_vm4, %v5423_v16 }
 0x5e9   : > { %v1156_v17 = vpop.permute.xlu0 %1155 }
 0x5ea   : > { %1177 = vst.msk [vmem:[#allocation2 + $0x18] sm:$0xff] %vm1173_vm3, %v1156_v17 }
 0x5eb   : > { %1186 = vst.msk [vmem:[#allocation2 + $0x18] sm:$0xff] %vm1182_vm4, %v5431_v8 }
 0x5ed   : > { %v1158_v21 = vpop.permute.xlu1 %1157 }
 0x5ee   : > { %1178 = vst.msk [vmem:[#allocation2 + $0x20] sm:$0xff] %vm1173_vm3, %v1158_v21 }
 0x5ef   : > { %1187 = vst.msk [vmem:[#allocation2 + $0x20] sm:$0xff] %vm1182_vm4, %v5437_v14 }
 0x5f1   : > { %v1160_v46 = vpop.permute.xlu0 %1159 }
 0x5f2   : > { %1179 = vst.msk [vmem:[#allocation2 + $0x28] sm:$0xff] %vm1173_vm3, %v1160_v46 }
 0x5f3   : > { %1188 = vst.msk [vmem:[#allocation2 + $0x28] sm:$0xff] %vm1182_vm4, %v5441_v3 }
 0x5fb   : > { %v1164_v18 = vpop.permute.xlu0 %1163  ;;  %1194 = sbr.rel (%p3844_p8) target bundleno = 1553 (0x611), region = 60 }
 0x5fc   : > { %1181 = vst.msk [vmem:[#allocation2 + $0x38] sm:$0xff] %vm1173_vm3, %v1164_v18 }
 0x5fd   : > { %1190 = vst.msk [vmem:[#allocation2 + $0x38] sm:$0xff] %vm1182_vm4, %v5453_v63 }
 0x5ff   : > { %v1162_v16 = vpop.permute.xlu1 %1161 }
 0x600   : > { %1180 = vst.msk [vmem:[#allocation2 + $0x30] sm:$0xff] %vm1173_vm3, %v1162_v16 }
 0x601   : > { %1189 = vst.msk [vmem:[#allocation2 + $0x30] sm:$0xff] %vm1182_vm4, %v5447_v1  ;;  %v1204_v1 = vpop.permute.xlu0 (!%p3844_p8), %1203 }
 0x602   : > { %1228 = vst.msk [vmem:[#allocation2] sm:$0xff] %vm1227_vm5, %v1204_v1 }
 0x603   : > { %v1208_v63 = vpop.permute.xlu1 %1207 }
 0x604   : > { %1230 = vst.msk [vmem:[#allocation2 + $0x10] sm:$0xff] %vm1227_vm5, %v1208_v63 }
 0x605   : > { %v1206_v8 = vpop.permute.xlu0 %1205 }
 0x606   : > { %1229 = vst.msk [vmem:[#allocation2 + $0x8] sm:$0xff] %vm1227_vm5, %v1206_v8 }
 0x607   : > { %v1210_v3 = vpop.permute.xlu1 %1209 }
 0x608   : > { %1231 = vst.msk [vmem:[#allocation2 + $0x18] sm:$0xff] %vm1227_vm5, %v1210_v3 }
 0x609   : > { %v1212_v14 = vpop.permute.xlu0 %1211 }
 0x60a   : > { %1232 = vst.msk [vmem:[#allocation2 + $0x20] sm:$0xff] %vm1227_vm5, %v1212_v14 }
 0x60b   : > { %v1214_v53 = vpop.permute.xlu1 %1213 }
 0x60c   : > { %1233 = vst.msk [vmem:[#allocation2 + $0x28] sm:$0xff] %vm1227_vm5, %v1214_v53 }
 0x60d   : > { %v1216_v47 = vpop.permute.xlu0 %1215 }
 0x60e   : > { %1234 = vst.msk [vmem:[#allocation2 + $0x30] sm:$0xff] %vm1227_vm5, %v1216_v47 }
 0x60f   : > { %v1218_v40 = vpop.permute.xlu1 %1217 }
 0x610   : > { %1235 = vst.msk [vmem:[#allocation2 + $0x38] sm:$0xff] %vm1227_vm5, %v1218_v40 }
 0x611 PF: > { %s5703_s28 = sshll.u32 %s4751_s22, 8  ;;  %s5706_s7 = sadd.s32 128, %s5155_s13 }
 0x612   : > { %s3906_s8 = sadd.s32 252, %s5703_s28  ;;  %p1241_p4 = scmp.lt.s32.totalorder %s5703_s28, %s5706_s7 }
 0x613   : > { %p1238_p0 = scmp.le.s32.totalorder %s5155_s13, %s3906_s8 }
 0x615   : > { %p1242_p1 = pnand %p1241_p4, %p1238_p0 }
 0x616   : > { %v7355_v35 = vlaneseq (!%p1242_p1)  ;;  %v1248_v27 = vstv (!%p1242_p1), %s5155_s13  ;;  %v7356_v48 = vmul.u32 (!%p1242_p1), 4, %v5173_v31  ;;  %v7359_v15 = vmul.u32 (!%p1242_p1), 4, %v5166_v26  ;;  %v7374_v54 = vld [vmem:[#allocation50_spill] sm:$0xff] (!%p1242_p1)  ;;  %v7375_v6 = vld [vmem:[#allocation49_spill] sm:$0xff] (!%p1242_p1)  ;;  %v7380_v13 = vld [vmem:[#allocation20_spill] sm:$0xff] (!%p1242_p1) }
 0x617   : > { %1245 = sbr.rel (%p1242_p1) target bundleno = 1739 (0x6cb), region = 64  ;;  %v7362_v39 = vmul.u32 (!%p1242_p1), 4, %v5175_v32  ;;  %v7365_v62 = vmul.u32 (!%p1242_p1), 4, %v5171_v30  ;;  %v7376_v61 = vld [vmem:[#allocation21_spill] sm:$0xff] (!%p1242_p1)  ;;  %v7384_v49 = vld [vmem:[#allocation52_spill] sm:$0xff] (!%p1242_p1)  ;;  %v7385_v10 = vld [vmem:[#allocation51_spill] sm:$0xff] (!%p1242_p1) }
 0x618   : > { %v1247_v55 = vand.u32 (!%p1242_p1), 127, %v7355_v35  ;;  %v7368_v0 = vmul.u32 (!%p1242_p1), 4, %v5182_v37  ;;  %v7371_v29 = vmul.u32 (!%p1242_p1), 4, %v5177_v33  ;;  %v7386_v4 = vld [vmem:[#allocation47_spill] sm:$0xff] (!%p1242_p1)  ;;  %v7387_v17 = vld [vmem:[#allocation46_spill] sm:$0xff] (!%p1242_p1)  ;;  %v7388_v18 = vld [vmem:[#allocation48_spill] sm:$0xff] (!%p1242_p1) }
 0x619   : > { %v7377_v58 = vmul.u32 (!%p1242_p1), 4, %v7376_v61  ;;  %v7381_v11 = vmul.u32 (!%p1242_p1), 4, %v7380_v13  ;;  %v1260_v53 = vld [vmem:[#allocation2 + $0x10] sm:$0xff] (!%p1242_p1)  ;;  %v1258_v14 = vld [vmem:[#allocation2] sm:$0xff] (!%p1242_p1)  ;;  %vm1298_vm14 = vcmask (!%p1242_p1), 56368   ;;  %vm1347_vm15 = vcmask (!%p1242_p1), 64568  }
 0x61a   : > { %v1249_v19 = vadd.s32 (!%p1242_p1), %v1248_v27, %v1247_v55  ;;  %v1261_v27 = vld [vmem:[#allocation2 + $0x18] sm:$0xff] (!%p1242_p1)  ;;  %v1262_v7 = vld [vmem:[#allocation2 + $0x20] sm:$0xff] (!%p1242_p1) }
 0x61c   : > { %vm5718_vm6 = vcmp.eq.s32.totalorder (!%p1242_p1), %v1249_v19, %v7356_v48  ;;  %vm5724_vm7 = vcmp.eq.s32.totalorder (!%p1242_p1), %v1249_v19, %v7359_v15  ;;  %vm5730_vm8 = vcmp.eq.s32.totalorder (!%p1242_p1), %v1249_v19, %v7362_v39  ;;  %vm5736_vm9 = vcmp.eq.s32.totalorder (!%p1242_p1), %v1249_v19, %v7365_v62  ;;  %v1263_v39 = vld [vmem:[#allocation2 + $0x28] sm:$0xff] (!%p1242_p1) }
 0x61d   : > { %v1268_v44 = vsel (!%p1242_p1), %vm5718_vm6, %v5342_v52, 0.0  ;;  %v1266_v2 = vsel (!%p1242_p1), %vm5724_vm7, %v5328_v22, 0.0  ;;  %v1269_v9 = vsel (!%p1242_p1), %vm5730_vm8, %v5354_v34, 0.0  ;;  %v1267_v24 = vsel (!%p1242_p1), %vm5736_vm9, %v5336_v36, 0.0 }
 0x61e   : > { %1278 = vadd.xlane.f32.xlu1 %v1268_v44  ;;  %1274 = vadd.xlane.f32.xlu0 %v1266_v2  ;;  %vm5754_vm10 = vcmp.eq.s32.totalorder %v1249_v19, %v7368_v0  ;;  %vm5760_vm11 = vcmp.eq.s32.totalorder %v1249_v19, %v7371_v29  ;;  %vm5772_vm12 = vcmp.eq.s32.totalorder %v1249_v19, %v7377_v58  ;;  %v1316_v50 = vsel %vm5736_vm9, %v7386_v4, 0.0 }
 0x61f   : > { %v1271_v20 = vsel %vm5754_vm10, %v7374_v54, 0.0  ;;  %v1270_v38 = vsel %vm5760_vm11, %v7375_v6, 0.0  ;;  %vm5778_vm13 = vcmp.eq.s32.totalorder %v1249_v19, %v7381_v11  ;;  %v1273_v57 = vsel %vm5772_vm12, %v7384_v49, 0.0  ;;  %v1259_v19 = vld [vmem:[#allocation2 + $0x8] sm:$0xff] }
 0x620   : > { %v1272_v43 = vsel %vm5778_vm13, %v7385_v10, 0.0  ;;  %v1315_v21 = vsel %vm5724_vm7, %v7387_v17, 0.0  ;;  %v1318_v46 = vsel %vm5730_vm8, %v5349_v23, 0.0  ;;  %v1317_v16 = vsel %vm5718_vm6, %v7388_v18, 0.0 }
 0x621   : > { %v1320_v63 = vsel %vm5754_vm10, %v5367_v25, 0.0  ;;  %v1319_v1 = vsel %vm5760_vm11, %v5358_v45, 0.0  ;;  %v1322_v3 = vsel %vm5772_vm12, %v5387_v42, 0.0  ;;  %v1321_v8 = vsel %vm5778_vm13, %v5378_v41, 0.0 }
 0x622   : > { %1280 = vadd.xlane.f32.xlu1 %v1269_v9  ;;  %1276 = vadd.xlane.f32.xlu0 %v1267_v24  ;;  %v1265_v9 = vld [vmem:[#allocation2 + $0x38] sm:$0xff]  ;;  %v1264_v24 = vld [vmem:[#allocation2 + $0x30] sm:$0xff] }
 0x626   : > { %1284 = vadd.xlane.f32.xlu1 %v1271_v20  ;;  %1282 = vadd.xlane.f32.xlu0 %v1270_v38 }
 0x62a   : > { %1288 = vadd.xlane.f32.xlu1 %v1273_v57  ;;  %1286 = vadd.xlane.f32.xlu0 %v1272_v43 }
 0x62e   : > { %1325 = vadd.xlane.f32.xlu1 %v1316_v50  ;;  %1323 = vadd.xlane.f32.xlu0 %v1315_v21 }
 0x632   : > { %1329 = vadd.xlane.f32.xlu1 %v1318_v46  ;;  %1327 = vadd.xlane.f32.xlu0 %v1317_v16 }
 0x636   : > { %1333 = vadd.xlane.f32.xlu1 %v1320_v63  ;;  %1331 = vadd.xlane.f32.xlu0 %v1319_v1 }
 0x63a   : > { %1337 = vadd.xlane.f32.xlu1 %v1322_v3  ;;  %1335 = vadd.xlane.f32.xlu0 %v1321_v8 }
 0x6ab   : > { %v1279_v40 = vpop.xlane.xlu1 %1278  ;;  %v1275_v47 = vpop.xlane.xlu0 %1274 }
 0x6ac   : > { %v1292_v35 = vadd.f32 %v1279_v40, %v1260_v53  ;;  %v1290_v55 = vadd.f32 %v1275_v47, %v1258_v14 }
 0x6ae   : > { %1301 = vst.msk [vmem:[#allocation2 + $0x10] sm:$0xff] %vm1298_vm14, %v1292_v35  ;;  %1299 = vst.msk [vmem:[#allocation2] sm:$0xff] %vm1298_vm14, %v1290_v55 }
 0x6af   : > { %v1281_v48 = vpop.xlane.xlu1 %1280  ;;  %v1277_v56 = vpop.xlane.xlu0 %1276 }
 0x6b0   : > { %v1293_v15 = vadd.f32 %v1281_v48, %v1261_v27  ;;  %v1291_v28 = vadd.f32 %v1277_v56, %v1259_v19 }
 0x6b2   : > { %1302 = vst.msk [vmem:[#allocation2 + $0x18] sm:$0xff] %vm1298_vm14, %v1293_v15  ;;  %1300 = vst.msk [vmem:[#allocation2 + $0x8] sm:$0xff] %vm1298_vm14, %v1291_v28 }
 0x6b3   : > { %v1285_v62 = vpop.xlane.xlu1 %1284  ;;  %v1283_v59 = vpop.xlane.xlu0 %1282 }
 0x6b4   : > { %v1295_v44 = vadd.f32 %v1285_v62, %v1263_v39  ;;  %v1294_v2 = vadd.f32 %v1283_v59, %v1262_v7 }
 0x6b5   : > { %v1307_v6 = vld [vmem:[#allocation2] sm:$0xff]  ;;  %v1309_v11 = vld [vmem:[#allocation2 + $0x10] sm:$0xff] }
 0x6b6   : > { %1304 = vst.msk [vmem:[#allocation2 + $0x28] sm:$0xff] %vm1298_vm14, %v1295_v44  ;;  %1303 = vst.msk [vmem:[#allocation2 + $0x20] sm:$0xff] %vm1298_vm14, %v1294_v2 }
 0x6b7   : > { %v1289_v0 = vpop.xlane.xlu1 %1288  ;;  %v1287_v12 = vpop.xlane.xlu0 %1286 }
 0x6b8   : > { %v1297_v29 = vadd.f32 %v1289_v0, %v1265_v9  ;;  %v1296_v51 = vadd.f32 %v1287_v12, %v1264_v24 }
 0x6b9   : > { %v1308_v20 = vld [vmem:[#allocation2 + $0x8] sm:$0xff]  ;;  %v1310_v60 = vld [vmem:[#allocation2 + $0x18] sm:$0xff] }
 0x6ba   : > { %1306 = vst.msk [vmem:[#allocation2 + $0x38] sm:$0xff] %vm1298_vm14, %v1297_v29  ;;  %1305 = vst.msk [vmem:[#allocation2 + $0x30] sm:$0xff] %vm1298_vm14, %v1296_v51 }
 0x6bb   : > { %v1326_v54 = vpop.xlane.xlu1 %1325  ;;  %v1324_v38 = vpop.xlane.xlu0 %1323 }
 0x6bc   : > { %v1340_v61 = vadd.f32 %v1326_v54, %v1308_v20  ;;  %v1339_v58 = vadd.f32 %v1324_v38, %v1307_v6 }
 0x6bd   : > { %v1312_v10 = vld [vmem:[#allocation2 + $0x28] sm:$0xff]  ;;  %v1311_v4 = vld [vmem:[#allocation2 + $0x20] sm:$0xff] }
 0x6be   : > { %1349 = vst.msk [vmem:[#allocation2 + $0x8] sm:$0xff] %vm1347_vm15, %v1340_v61  ;;  %1348 = vst.msk [vmem:[#allocation2] sm:$0xff] %vm1347_vm15, %v1339_v58 }
 0x6bf   : > { %v1330_v13 = vpop.xlane.xlu1 %1329  ;;  %v1328_v5 = vpop.xlane.xlu0 %1327 }
 0x6c0   : > { %v1342_v49 = vadd.f32 %v1330_v13, %v1310_v60  ;;  %v1341_v57 = vadd.f32 %v1328_v5, %v1309_v11 }
 0x6c1   : > { %v1314_v46 = vld [vmem:[#allocation2 + $0x38] sm:$0xff]  ;;  %v1313_v16 = vld [vmem:[#allocation2 + $0x30] sm:$0xff] }
 0x6c2   : > { %1351 = vst.msk [vmem:[#allocation2 + $0x18] sm:$0xff] %vm1347_vm15, %v1342_v49  ;;  %1350 = vst.msk [vmem:[#allocation2 + $0x10] sm:$0xff] %vm1347_vm15, %v1341_v57 }
 0x6c3   : > { %v1334_v43 = vpop.xlane.xlu1 %1333  ;;  %v1332_v50 = vpop.xlane.xlu0 %1331 }
 0x6c4   : > { %v1344_v17 = vadd.f32 %v1334_v43, %v1312_v10  ;;  %v1343_v21 = vadd.f32 %v1332_v50, %v1311_v4 }
 0x6c6   : > { %1353 = vst.msk [vmem:[#allocation2 + $0x28] sm:$0xff] %vm1347_vm15, %v1344_v17  ;;  %1352 = vst.msk [vmem:[#allocation2 + $0x20] sm:$0xff] %vm1347_vm15, %v1343_v21 }
 0x6c7   : > { %v1338_v18 = vpop.xlane.xlu1 %1337  ;;  %v1336_v63 = vpop.xlane.xlu0 %1335 }
 0x6c8   : > { %v1346_v1 = vadd.f32 %v1338_v18, %v1314_v46  ;;  %v1345_v3 = vadd.f32 %v1336_v63, %v1313_v16 }
 0x6ca   : > { %1355 = vst.msk [vmem:[#allocation2 + $0x38] sm:$0xff] %vm1347_vm15, %v1346_v1  ;;  %1354 = vst.msk [vmem:[#allocation2 + $0x30] sm:$0xff] %vm1347_vm15, %v1345_v3 }
 0x6cb PF: > { %1364 = vmax.xlane.f32.xlu0 %v5328_v22  ;;  %1368 = vmax.xlane.f32.xlu1 %v5342_v52  ;;  %v7389_v8 = vld [vmem:[#allocation23_spill] sm:$0xff]  ;;  %v7390_v53 = vld [vmem:[#allocation22_spill] sm:$0xff]  ;;  %v7391_v14 = vld [vmem:[#allocation49_spill] sm:$0xff]  ;;  %v7273_v55 = vmov 0   ;;  %vm1572_vm0 = vcmask 31768   ;;  %vm1581_vm5 = vcmask 7168  }
 0x6cc   : > { %2053 = vmatprep.mubr.f32.mxu1 %v7389_v8  ;;  %4032 = vmatprep.mubr.f32.mxu0 %v7390_v53  ;;  %v7392_v40 = vld [vmem:[#allocation50_spill] sm:$0xff]  ;;  %v7393_v47 = vld [vmem:[#allocation51_spill] sm:$0xff]  ;;  %v7394_v35 = vld [vmem:[#allocation52_spill] sm:$0xff]  ;;  %vm1806_vm6 = vcmask 39968   ;;  %vm1815_vm7 = vcmask 15368   ;;  %p3895_p10 = scmp.ne.s32.totalorder %s5706_s7, 0 }
 0x6cd   : > { %4339 = vset.pattern.permute.xlu0 %v7273_v55  ;;  %4340 = vset.pattern.permute.xlu1 %v7273_v55  ;;  %v5840_v27 = vld [vmem:[#allocation2] sm:$0xff]  ;;  %v5847_v56 = vld [vmem:[#allocation2 + $0x8] sm:$0xff]  ;;  %v5850_v39 = vld [vmem:[#allocation2 + $0x10] sm:$0xff]  ;;  %s4784_s22 = smov (!%p3895_p10), 8  }
 0x6ce   : > { %v5855_v62 = vld [vmem:[#allocation2 + $0x18] sm:$0xff]  ;;  %v5863_v2 = vld [vmem:[#allocation2 + $0x28] sm:$0xff]  ;;  %v5871_v24 = vld [vmem:[#allocation2 + $0x20] sm:$0xff] }
 0x6cf   : > { %1366 = vmax.xlane.f32.xlu0 %v5336_v36  ;;  %1370 = vmax.xlane.f32.xlu1 %v5354_v34 }
 0x6d1   : > { %v5881_v54 = vld [vmem:[#allocation2 + $0x30] sm:$0xff]  ;;  %v5887_v61 = vld [vmem:[#allocation2 + $0x38] sm:$0xff] }
 0x6d3   : > { %1372 = vmax.xlane.f32.xlu0 %v7391_v14  ;;  %1374 = vmax.xlane.f32.xlu1 %v7392_v40 }
 0x6d7   : > { %1376 = vmax.xlane.f32.xlu0 %v7393_v47  ;;  %1378 = vmax.xlane.f32.xlu1 %v7394_v35 }
 0x6ed   : > { %1420 = vrot.lane.b32.xlu0 %v5840_v27, %s4775_s26 }
 0x758   : > { %v1365_v19 = vpop.xlane.xlu0 %1364  ;;  %v1369_v15 = vpop.xlane.xlu1 %1368 }
 0x759   : > { %v5845_v48 = vmax.f32 %v5840_v27, %v1365_v19  ;;  %v5859_v59 = vmax.f32 %v5850_v39, %v1369_v15 }
 0x75b   : > { %1454 = vperm.xlu0 %4339, %v5845_v48  }
 0x75c   : > { %v1367_v28 = vpop.xlane.xlu0 %1366  ;;  %v1371_v44 = vpop.xlane.xlu1 %1370 }
 0x75d   : > { %v5853_v7 = vmax.f32 %v5847_v56, %v1367_v28  ;;  %v5867_v9 = vmax.f32 %v5855_v62, %v1371_v44 }
 0x75f   : > { %1459 = vperm.xlu1 %4340, %v5853_v7   ;;  %1426 = vrot.lane.b32.xlu0 %v5855_v62, %s4775_s26 }
 0x760   : > { %v1373_v0 = vpop.xlane.xlu0 %1372  ;;  %v1375_v29 = vpop.xlane.xlu1 %1374 }
 0x761   : > { %v5874_v12 = vmax.f32 %v5871_v24, %v1373_v0  ;;  %v5879_v51 = vmax.f32 %v5863_v2, %v1375_v29 }
 0x763   : > { %1464 = vperm.xlu1 %4340, %v5859_v59   ;;  %1430 = vrot.lane.b32.xlu0 %v5863_v2, %s4775_s26 }
 0x764   : > { %v1377_v20 = vpop.xlane.xlu0 %1376  ;;  %v1379_v38 = vpop.xlane.xlu1 %1378 }
 0x765   : > { %v5884_v6 = vmax.f32 %v5881_v54, %v1377_v20  ;;  %v5891_v58 = vmax.f32 %v5887_v61, %v1379_v38  ;;  %v3866_v20 = vld [vmem:[%s5140_s10 + $0x118] sm:$0xff]  ;;  %v3863_v38 = vld [vmem:[%s5140_s10 + $0x100] sm:$0xff] }
 0x767   : > { %1469 = vperm.xlu1 %4340, %v5867_v9  }
 0x768   : > { %v5900_v60 = vpop.permute.xlu0 %1420 }
 0x76b   : > { %1474 = vperm.xlu1 %4340, %v5874_v12  }
 0x76f   : > { %1479 = vperm.xlu1 %4340, %v5879_v51  }
 0x773   : > { %1484 = vperm.xlu1 %4340, %v5884_v6  }
 0x777   : > { %1489 = vperm.xlu1 %4340, %v5891_v58  }
 0x77b   : > { %1422 = vrot.lane.b32.xlu1 %v5847_v56, %s4775_s26 }
 0x77f   : > { %1424 = vrot.lane.b32.xlu1 %v5850_v39, %s4775_s26 }
 0x783   : > { %1428 = vrot.lane.b32.xlu1 %v5871_v24, %s4775_s26 }
 0x7da   : > { %v1455_v13 = vpop.permute.xlu0 %1454 }
 0x7db   : > { %v1492_v11 = vsub.f32 %v5328_v22, %v1455_v13 }
 0x7dd   : > { %v1500_v5 = vmul.f32 1.442695, %v1492_v11  ;;  %v3865_v11 = vld [vmem:[%s5140_s10 + $0x110] sm:$0xff] }
 0x7de   : > { %v1460_v49 = vpop.permute.xlu1 %1459 }
 0x7df   : > { %4345 = vpow2.f32 %v1500_v5  ;;  %v1493_v57 = vsub.f32 %v5336_v36, %v1460_v49  ;;  %v3868_v5 = vld [vmem:[%s5140_s10 + $0x128] sm:$0xff]  ;;  %v3870_v49 = vld [vmem:[%s5140_s10 + $0x138] sm:$0xff] }
 0x7e1   : > { %v1502_v10 = vmul.f32 1.442695, %v1493_v57  ;;  %v4142_v57 = vpack.c.bf16 %v3865_v11, %v3863_v38  ;;  %v3882_v38 = vld [vmem:[%s5140_s10 + $0x198] sm:$0xff] }
 0x7e2   : > { %v1465_v43 = vpop.permute.xlu1 %1464 }
 0x7e3   : > { %4347 = vpow2.f32 %v1502_v10  ;;  %v1494_v4 = vsub.f32 %v5342_v52, %v1465_v43  ;;  %v4144_v10 = vpack.c.bf16 %v3870_v49, %v3868_v5  ;;  %v3847_v43 = vld [vmem:[%s5128_s18 + $0x80] sm:$0xff]  ;;  %v3881_v5 = vld [vmem:[%s5140_s10 + $0x190] sm:$0xff] }
 0x7e5   : > { %v1504_v50 = vmul.f32 1.442695, %v1494_v4  ;;  %v3848_v4 = vld [vmem:[%s5128_s18 + $0x88] sm:$0xff] }
 0x7e6   : > { %v1470_v17 = vpop.permute.xlu1 %1469 }
 0x7e7   : > { %4349 = vpow2.f32 %v1504_v50  ;;  %v1495_v21 = vsub.f32 %v5354_v34, %v1470_v17  ;;  %v4108_v50 = vpack.c.bf16 %v3848_v4, %v3847_v43  ;;  %v3849_v17 = vld [vmem:[%s5128_s18 + $0x90] sm:$0xff]  ;;  %v1388_v4 = vsub.f32 %v5840_v27, %v5845_v48 }
 0x7e9   : > { %v4346_v46 = vpop.eup %4345  ;;  %v1506_v18 = vmul.f32 1.442695, %v1495_v21  ;;  %v3867_v21 = vld [vmem:[%s5140_s10 + $0x120] sm:$0xff]  ;;  %4109 = vmatprep.subr.bf16.mxu0 %v4108_v50 }
 0x7ea   : > { %v1475_v16 = vpop.permute.xlu1 %1474  ;;  %1516 = vadd.xlane.f32.xlu1 %v4346_v46  ;;  %v3869_v46 = vld [vmem:[%s5140_s10 + $0x130] sm:$0xff]  ;;  %4111 = vmatpush3.bf16.xpose.msra.mxu0 %v4108_v50  ;;  %v1396_v50 = vmul.f32 1.442695, %v1388_v4  ;;  %v3858_v4 = vld [vmem:[%s5128_s18 + $0xd8] sm:$0xff] }
 0x7eb   : > { %4351 = vpow2.f32 %v1506_v18  ;;  %v1496_v22 = vsub.f32 %v7391_v14, %v1475_v16  ;;  %v3850_v18 = vld [vmem:[%s5128_s18 + $0x98] sm:$0xff]  ;;  %v3872_v16 = vld [vmem:[%s5140_s10 + $0x148] sm:$0xff] }
 0x7ed   : > { %v4348_v63 = vpop.eup %4347  ;;  %v1508_v1 = vmul.f32 1.442695, %v1496_v22  ;;  %v3874_v22 = vld [vmem:[%s5140_s10 + $0x158] sm:$0xff] }
 0x7ee   : > { %v1480_v36 = vpop.permute.xlu1 %1479  ;;  %1518 = vadd.xlane.f32.xlu0 %v4348_v63  ;;  %v4112_v63 = vpack.c.bf16 %v3850_v18, %v3849_v17  ;;  %v1389_v17 = vsub.f32 %v5847_v56, %v5853_v7  ;;  %v1390_v18 = vsub.f32 %v5850_v39, %v5859_v59  ;;  %v1391_v56 = vsub.f32 %v5855_v62, %v5867_v9  ;;  %v3856_v39 = vld [vmem:[%s5128_s18 + $0xc8] sm:$0xff] }
 0x7ef   : > { %4353 = vpow2.f32 %v1508_v1  ;;  %v1497_v3 = vsub.f32 %v7392_v40, %v1480_v36  ;;  %v4146_v1 = vpack.c.bf16 %v3869_v46, %v3867_v21  ;;  %v4148_v36 = vpack.c.bf16 %v3874_v22, %v3872_v16  ;;  %v3884_v16 = vld [vmem:[%s5140_s10 + $0x1a8] sm:$0xff]  ;;  %v3886_v22 = vld [vmem:[%s5140_s10 + $0x1b8] sm:$0xff] }
 0x7f0   : > { %4113 = vmatprep.subr.bf16.mxu0 %v4112_v63  ;;  %v1398_v46 = vmul.f32 1.442695, %v1389_v17  ;;  %v1400_v27 = vmul.f32 1.442695, %v1390_v18  ;;  %v3892_v18 = vld [vmem:[%s5140_s10 + $0x1e8] sm:$0xff] }
 0x7f1   : > { %v4350_v52 = vpop.eup %4349  ;;  %v1510_v8 = vmul.f32 1.442695, %v1497_v3  ;;  %v3871_v3 = vld [vmem:[%s5140_s10 + $0x140] sm:$0xff] }
 0x7f2   : > { %v1485_v53 = vpop.permute.xlu1 %1484  ;;  %1520 = vadd.xlane.f32.xlu0 %v4350_v52  ;;  %v3873_v52 = vld [vmem:[%s5140_s10 + $0x150] sm:$0xff]  ;;  %4115 = vmatpush3.bf16.xpose.msra.mxu0 %v4112_v63  ;;  %v4160_v63 = vpack.c.bf16 %v3886_v22, %v3884_v16  ;;  %v3894_v16 = vld [vmem:[%s5140_s10 + $0x1f8] sm:$0xff] }
 0x7f3   : > { %4355 = vpow2.f32 %v1510_v8  ;;  %v1498_v34 = vsub.f32 %v7393_v47, %v1485_v53  ;;  %v4150_v8 = vpack.c.bf16 %v3873_v52, %v3871_v3  ;;  %v7395_v53 = vld [vmem:[#allocation47_spill] sm:$0xff] }
 0x7f5   : > { %v4352_v19 = vpop.eup %4351  ;;  %v1512_v15 = vmul.f32 1.442695, %v1498_v34  ;;  %v7396_v34 = vld [vmem:[#allocation48_spill] sm:$0xff] }
 0x7f6   : > { %v1490_v28 = vpop.permute.xlu1 %1489  ;;  %1522 = vadd.xlane.f32.xlu1 %v4352_v19  ;;  %v7397_v19 = vld [vmem:[#allocation46_spill] sm:$0xff] }
 0x7f7   : > { %4357 = vpow2.f32 %v1512_v15  ;;  %v1499_v14 = vsub.f32 %v7394_v35, %v1490_v28  ;;  %v3864_v35 = vld [vmem:[%s5140_s10 + $0x108] sm:$0xff]  ;;  %v3878_v28 = vld [vmem:[%s5140_s10 + $0x178] sm:$0xff] }
 0x7f8   : > { %v4140_v13 = vpack.c.bf16 %v3866_v20, %v3864_v35  ;;  %v3876_v15 = vld [vmem:[%s5140_s10 + $0x168] sm:$0xff] }
 0x7f9   : > { %v4354_v44 = vpop.eup %4353  ;;  %v1514_v40 = vmul.f32 1.442695, %v1499_v14  ;;  %v3875_v14 = vld [vmem:[%s5140_s10 + $0x160] sm:$0xff]  ;;  %v3880_v20 = vld [vmem:[%s5140_s10 + $0x188] sm:$0xff] }
 0x7fa   : > { %1524 = vadd.xlane.f32.xlu0 %v4354_v44  ;;  %4141 = vmatprep.subr.bf16.mxu1 %v4140_v13  ;;  %v4152_v44 = vpack.c.bf16 %v3878_v28, %v3876_v15  ;;  %v3879_v13 = vld [vmem:[%s5140_s10 + $0x180] sm:$0xff]  ;;  %v4156_v11 = vpack.c.bf16 %v3882_v38, %v3880_v20  ;;  %v1423_v21 = vpop.permute.xlu1 %1422  ;;  %v1427_v15 = vpop.permute.xlu0 %1426  ;;  %v3889_v20 = vld [vmem:[%s5140_s10 + $0x1d0] sm:$0xff] }
 0x7fb   : > { %4359 = vpow2.f32 %v1514_v40  ;;  %4143 = vmatpush1.bf16.xpose.msra.mxu1 %v4142_v57  ;;  %v3877_v40 = vld [vmem:[%s5140_s10 + $0x170] sm:$0xff]  ;;  %v4158_v49 = vpack.c.bf16 %v3881_v5, %v3879_v13 }
 0x7fc   : > { %4145 = vmatprep.subr.bf16.mxu1 %v4144_v10  ;;  %v3853_v57 = vld [vmem:[%s5128_s18 + $0xb0] sm:$0xff]  ;;  %v3854_v10 = vld [vmem:[%s5128_s18 + $0xb8] sm:$0xff]  ;;  %4361 = vpow2.f32 %v1396_v50 }
 0x7fd   : > { %v4356_v0 = vpop.eup %4355  ;;  %v4120_v43 = vpack.c.bf16 %v3854_v10, %v3853_v57  ;;  %4363 = vpow2.f32 %v1398_v46  ;;  %v7271_v57 = vmov 1  }
 0x7fe   : > { %1526 = vadd.xlane.f32.xlu1 %v4356_v0  ;;  %v4154_v0 = vpack.c.bf16 %v3877_v40, %v3875_v14  ;;  %v1425_v3 = vpop.permute.xlu1 %1424  ;;  %4365 = vpow2.f32 %v1400_v27  ;;  %v1402_v40 = vmul.f32 1.442695, %v1391_v56  ;;  %v1431_v5 = vpop.permute.xlu0 %1430  ;;  %4342 = vset.pattern.permute.xlu0 %v7271_v57 }
 0x7ff   : > { %4341 = vset.pattern.permute.xlu1 %v7271_v57 }
 0x800   : > { %4367 = vpow2.f32 %v1402_v40 }
 0x801   : > { %v4358_v47 = vpop.eup %4357 }
 0x802   : > { %1528 = vadd.xlane.f32.xlu0 %v4358_v47  ;;  %v3851_v47 = vld [vmem:[%s5128_s18 + $0xa0] sm:$0xff] }
 0x803   : > { %4147 = vmatpush1.bf16.xpose.msra.mxu1 %v4146_v1  ;;  %v3883_v1 = vld [vmem:[%s5140_s10 + $0x1a0] sm:$0xff] }
 0x804   : > { %4149 = vmatprep.subr.bf16.mxu1 %v4148_v36  ;;  %v3885_v36 = vld [vmem:[%s5140_s10 + $0x1b0] sm:$0xff] }
 0x805   : > { %v4360_v29 = vpop.eup %4359  ;;  %v4162_v52 = vpack.c.bf16 %v3885_v36, %v3883_v1  ;;  %v3891_v1 = vld [vmem:[%s5140_s10 + $0x1e0] sm:$0xff]  ;;  %v3893_v36 = vld [vmem:[%s5140_s10 + $0x1f0] sm:$0xff] }
 0x806   : > { %1530 = vadd.xlane.f32.xlu1 %v4360_v29  ;;  %v3852_v29 = vld [vmem:[%s5128_s18 + $0xa8] sm:$0xff]  ;;  %v4362_v14 = vpop.eup %4361  ;;  %v4170_v27 = vpack.c.bf16 %v3893_v36, %v3891_v1  ;;  %v7405_v1 = vld [vmem:[#allocation24_spill] sm:$0xff]  ;;  %v7406_v36 = vld [vmem:[#allocation38_spill] sm:$0xff] }
 0x807   : > { %v4116_v35 = vpack.c.bf16 %v3852_v29, %v3851_v47  ;;  %v3888_v47 = vld [vmem:[%s5140_s10 + $0x1c8] sm:$0xff]  ;;  %v3890_v29 = vld [vmem:[%s5140_s10 + $0x1d8] sm:$0xff]  ;;  %v1444_v13 = vmul.f32 %v4362_v14, %v5900_v60  ;;  %v4364_v60 = vpop.eup %4363 }
 0x808   : > { %v4164_v62 = vpack.c.bf16 %v3890_v29, %v3888_v47  ;;  %v1445_v17 = vmul.f32 %v4364_v60, %v1423_v21 }
 0x809   : > { %4117 = vmatprep.subr.bf16.mxu0 %v4116_v35 }
 0x80a   : > { %4119 = vmatpush3.bf16.xpose.msra.mxu0 %v4116_v35  ;;  %v3887_v35 = vld [vmem:[%s5140_s10 + $0x1c0] sm:$0xff] }
 0x80b   : > { %4151 = vmatpush1.bf16.xpose.msra.mxu1 %v4150_v8  ;;  %4121 = vmatprep.subr.bf16.mxu0 %v4120_v43  ;;  %v3855_v8 = vld [vmem:[%s5128_s18 + $0xc0] sm:$0xff]  ;;  %v4166_v38 = vpack.c.bf16 %v3889_v20, %v3887_v35  ;;  %v1394_v35 = vsub.f32 %v5881_v54, %v5884_v6 }
 0x80c   : > { %4153 = vmatprep.subr.bf16.mxu1 %v4152_v44  ;;  %v4124_v28 = vpack.c.bf16 %v3856_v39, %v3855_v8  ;;  %v1392_v44 = vsub.f32 %v5871_v24, %v5874_v12  ;;  %v1393_v24 = vsub.f32 %v5863_v2, %v5879_v51  ;;  %v3859_v39 = vld [vmem:[%s5128_s18 + $0xe0] sm:$0xff] }
 0x80e   : > { %v1406_v2 = vmul.f32 1.442695, %v1393_v24  ;;  %v3861_v24 = vld [vmem:[%s5128_s18 + $0xf0] sm:$0xff] }
 0x812   : > { %4123 = vmatpush3.bf16.xpose.msra.mxu0 %v4120_v43  ;;  %v3857_v43 = vld [vmem:[%s5128_s18 + $0xd0] sm:$0xff] }
 0x813   : > { %4155 = vmatpush1.bf16.xpose.msra.mxu1 %v4154_v0  ;;  %v1429_v0 = vpop.permute.xlu1 %1428  ;;  %4125 = vmatprep.subr.bf16.mxu0 %v4124_v28  ;;  %v4128_v50 = vpack.c.bf16 %v3858_v4, %v3857_v43  ;;  %v1408_v43 = vmul.f32 1.442695, %v1394_v35  ;;  %v7415_v35 = vld [vmem:[#allocation34_spill] sm:$0xff] }
 0x814   : > { %4157 = vmatprep.subr.bf16.mxu1 %v4156_v11  ;;  %v1404_v11 = vmul.f32 1.442695, %v1392_v44  ;;  %v1395_v44 = vsub.f32 %v5887_v61, %v5891_v58 }
 0x816   : > { %4369 = vpow2.f32 %v1404_v11  ;;  %v1410_v20 = vmul.f32 1.442695, %v1395_v44  ;;  %v7399_v11 = vld [vmem:[#allocation27_spill] sm:$0xff] }
 0x817   : > { %1432 = vrot.lane.b32.xlu1 %v5881_v54, %s4775_s26  ;;  %4371 = vpow2.f32 %v1406_v2  ;;  %v7400_v54 = vld [vmem:[#allocation29_spill] sm:$0xff] }
 0x818   : > { %1434 = vrot.lane.b32.xlu0 %v5887_v61, %s4775_s26  ;;  %4373 = vpow2.f32 %v1410_v20  ;;  %v7402_v2 = vld [vmem:[#allocation33_spill] sm:$0xff]  ;;  %v7416_v20 = vld [vmem:[#allocation43_spill] sm:$0xff] }
 0x819   : > { %4375 = vpow2.f32 %v1408_v43 }
 0x81a   : > { %4127 = vmatpush3.bf16.xpose.msra.mxu0 %v4124_v28  ;;  %v3860_v28 = vld [vmem:[%s5128_s18 + $0xe8] sm:$0xff] }
 0x81b   : > { %4159 = vmatpush1.bf16.xpose.msra.mxu1 %v4158_v49  ;;  %4129 = vmatprep.subr.bf16.mxu0 %v4128_v50  ;;  %v4132_v40 = vpack.c.bf16 %v3860_v28, %v3859_v39  ;;  %v7409_v28 = vld [vmem:[#allocation28_spill] sm:$0xff] }
 0x81c   : > { %4161 = vmatprep.subr.bf16.mxu1 %v4160_v63  ;;  %v4168_v63 = vpack.c.bf16 %v3894_v16, %v3892_v18  ;;  %v7403_v18 = vld [vmem:[#allocation35_spill] sm:$0xff]  ;;  %v7404_v16 = vld [vmem:[#allocation37_spill] sm:$0xff] }
 0x822   : > { %4131 = vmatpush3.bf16.xpose.msra.mxu0 %v4128_v50  ;;  %v7401_v50 = vld [vmem:[#allocation31_spill] sm:$0xff] }
 0x823   : > { %4163 = vmatpush1.bf16.xpose.msra.mxu1 %v4162_v52  ;;  %v4366_v52 = vpop.eup %4365  ;;  %4133 = vmatprep.subr.bf16.mxu0 %v4132_v40 }
 0x824   : > { %4165 = vmatprep.subr.bf16.mxu1 %v4164_v62  ;;  %v1446_v56 = vmul.f32 %v4366_v52, %v1425_v3  ;;  %v4368_v14 = vpop.eup %4367 }
 0x825   : > { %v1447_v47 = vmul.f32 %v4368_v14, %v1427_v15  ;;  %v4370_v62 = vpop.eup %4369  ;;  %v7410_v14 = vld [vmem:[#allocation40_spill] sm:$0xff] }
 0x82a   : > { %4135 = vmatpush3.bf16.xpose.msra.mxu0 %v4132_v40  ;;  %v7411_v40 = vld [vmem:[#allocation30_spill] sm:$0xff] }
 0x82b   : > { %4167 = vmatpush1.bf16.xpose.msra.mxu1 %v4166_v38  ;;  %v1448_v38 = vmul.f32 %v4370_v62, %v1429_v0  ;;  %v7414_v62 = vld [vmem:[#allocation42_spill] sm:$0xff] }
 0x82c   : > { %4169 = vmatprep.subr.bf16.mxu1 %v4168_v63 }
 0x833   : > { %4171 = vmatpush1.bf16.xpose.msra.mxu1 %v4170_v27  ;;  %v7407_v27 = vld [vmem:[#allocation26_spill] sm:$0xff] }
 0x837   : > { %1600 = vmax.xlane.f32.xlu0 %v7395_v53 }
 0x83b   : > { %1602 = vmax.xlane.f32.xlu0 %v7396_v34  ;;  %1598 = vmax.xlane.f32.xlu1 %v7397_v19 }
 0x83f   : > { %1606 = vmax.xlane.f32.xlu0 %v5358_v45  ;;  %1604 = vmax.xlane.f32.xlu1 %v5349_v23 }
 0x843   : > { %1610 = vmax.xlane.f32.xlu0 %v5378_v41  ;;  %1608 = vmax.xlane.f32.xlu1 %v5367_v25 }
 0x847   : > { %1612 = vmax.xlane.f32.xlu1 %v5387_v42 }
 0x877   : > { %v1517_v49 = vpop.xlane.xlu1 %1516 }
 0x878   : > { %v1532_v10 = vadd.f32 %v1517_v49, %v1444_v13  ;;  %v7398_v13 = vld [vmem:[#allocation25_spill] sm:$0xff]  ;;  %v3862_v49 = vld [vmem:[%s5128_s18 + $0xf8] sm:$0xff] }
 0x879   : > { %2054 = vmatmul.mubr.f32.vlgmr.msra.gmra.mrb[16].mxu1 %v7398_v13  ;;  %v4136_v4 = vpack.c.bf16 %v3862_v49, %v3861_v24  ;;  %v7418_v13 = vld [vmem:[#allocation44_spill] sm:$0xff] }
 0x87a   : > { %1548 = vrot.lane.b32.xlu0 %v1532_v10, %s4776_s0  ;;  %2058 = vmatprep.mubr.f32.mxu1 %v7399_v11  ;;  %v4372_v10 = vpop.eup %4371 }
 0x87b   : > { %v1519_v46 = vpop.xlane.xlu0 %1518  ;;  %v1449_v60 = vmul.f32 %v4372_v10, %v1431_v5  ;;  %4137 = vmatprep.subr.bf16.mxu0 %v4136_v4  ;;  %v4374_v5 = vpop.eup %4373 }
 0x87c   : > { %v1533_v22 = vadd.f32 %v1519_v46, %v1445_v17  ;;  %4139 = vmatpush3.bf16.xpose.msra.mxu0 %v4136_v4 }
 0x87d   : > { %2059 = vmatmul.mubr.f32.gmra.mrb[18].mxu1 %v7400_v54 }
 0x87e   : > { %1550 = vrot.lane.b32.xlu1 %v1533_v22, %s4776_s0  ;;  %2063 = vmatprep.mubr.f32.mxu1 %v7401_v50 }
 0x87f   : > { %v1521_v21 = vpop.xlane.xlu0 %1520 }
 0x880   : > { %v1534_v8 = vadd.f32 %v1521_v21, %v1446_v56  ;;  %v7408_v21 = vld [vmem:[#allocation39_spill] sm:$0xff] }
 0x881   : > { %2064 = vmatmul.mubr.f32.gmra.mrb[20].mxu1 %v7402_v2 }
 0x882   : > { %1552 = vrot.lane.b32.xlu1 %v1534_v8, %s4776_s0  ;;  %2068 = vmatprep.mubr.f32.mxu1 %v7403_v18  ;;  %v4376_v8 = vpop.eup %4375 }
 0x883   : > { %v1523_v3 = vpop.xlane.xlu1 %1522  ;;  %4033 = vmatmul.mubr.f32.vlgmr.msra.gmra.mrb[8].mxu0 %v7405_v1 }
 0x884   : > { %v1535_v29 = vadd.f32 %v1523_v3, %v1447_v47  ;;  %4035 = vmatprep.mubr.f32.mxu0 %v7407_v27  ;;  %v7412_v3 = vld [vmem:[#allocation41_spill] sm:$0xff] }
 0x885   : > { %2069 = vmatmul.mubr.f32.gmra.mrb[22].mxu1 %v7404_v16 }
 0x886   : > { %1554 = vrot.lane.b32.xlu0 %v1535_v29, %s4776_s0  ;;  %2073 = vmatprep.mubr.f32.mxu1 %v7406_v36  ;;  %v7413_v29 = vld [vmem:[#allocation32_spill] sm:$0xff] }
 0x887   : > { %v1525_v61 = vpop.xlane.xlu0 %1524  ;;  %4036 = vmatmul.mubr.f32.gmra.mrb[10].mxu0 %v7409_v28 }
 0x888   : > { %v1536_v15 = vadd.f32 %v1525_v61, %v1448_v38  ;;  %4038 = vmatprep.mubr.f32.mxu0 %v7411_v40  ;;  %v7417_v38 = vld [vmem:[#allocation36_spill] sm:$0xff]  ;;  %v7419_v61 = vld [vmem:[#allocation45_spill] sm:$0xff] }
 0x889   : > { %2074 = vmatmul.mubr.f32.gmra.mrb[24].mxu1 %v7408_v21 }
 0x88a   : > { %1556 = vrot.lane.b32.xlu1 %v1536_v15, %s4776_s0  ;;  %2078 = vmatprep.mubr.f32.mxu1 %v7410_v14 }
 0x88b   : > { %v1527_v0 = vpop.xlane.xlu1 %1526  ;;  %4039 = vmatmul.mubr.f32.gmra.mrb[12].mxu0 %v7413_v29 }
 0x88c   : > { %v1537_v17 = vadd.f32 %v1527_v0, %v1449_v60  ;;  %4041 = vmatprep.mubr.f32.mxu0 %v7415_v35 }
 0x88d   : > { %2079 = vmatmul.mubr.f32.gmra.mrb[26].mxu1 %v7412_v3 }
 0x88e   : > { %1558 = vrot.lane.b32.xlu0 %v1537_v17, %s4776_s0  ;;  %2083 = vmatprep.mubr.f32.mxu1 %v7414_v62 }
 0x88f   : > { %v1529_v46 = vpop.xlane.xlu0 %1528  ;;  %4042 = vmatmul.mubr.f32.gmra.mrb[14].mxu0 %v7417_v38 }
 0x891   : > { %2084 = vmatmul.mubr.f32.gmra.mrb[28].mxu1 %v7416_v20 }
 0x892   : > { %2088 = vmatprep.mubr.f32.mxu1 %v7418_v13 }
 0x893   : > { %v1531_v22 = vpop.xlane.xlu1 %1530  ;;  %v1435_v63 = vpop.permute.xlu0 %1434 }
 0x894   : > { %v1451_v52 = vmul.f32 %v4374_v5, %v1435_v63 }
 0x895   : > { %2089 = vmatmul.mubr.f32.gmra.mrb[30].mxu1 %v7419_v61 }
 0x896   : > { %v1539_v56 = vadd.f32 %v1531_v22, %v1451_v52 }
 0x897   : > { %v1433_v39 = vpop.permute.xlu1 %1432 }
 0x898   : > { %v1450_v44 = vmul.f32 %v4376_v8, %v1433_v39  ;;  %1562 = vrot.lane.b32.xlu0 %v1539_v56, %s4776_s0 }
 0x89a   : > { %v1538_v47 = vadd.f32 %v1529_v46, %v1450_v44 }
 0x89c   : > { %1560 = vrot.lane.b32.xlu1 %v1538_v47, %s4776_s0 }
 0x8c4   : > { %v1601_v11 = vpop.xlane.xlu0 %1600 }
 0x8c8   : > { %v1599_v15 = vpop.xlane.xlu1 %1598  ;;  %v1603_v24 = vpop.xlane.xlu0 %1602 }
 0x8cc   : > { %v1605_v49 = vpop.xlane.xlu1 %1604  ;;  %v1607_v10 = vpop.xlane.xlu0 %1606 }
 0x8d0   : > { %v1609_v43 = vpop.xlane.xlu1 %1608  ;;  %v1611_v4 = vpop.xlane.xlu0 %1610 }
 0x8d4   : > { %v1613_v60 = vpop.xlane.xlu1 %1612 }
 0x8ec   : > { %v1549_v54 = vpop.permute.xlu0 %1548 }
 0x8ed   : > { %1573 = vst.msk [vmem:[#allocation2] sm:$0xff] %vm1572_vm0, %v1549_v54 }
 0x8ee   : > { %1582 = vst.msk [vmem:[#allocation2] sm:$0xff] %vm1581_vm5, %v5845_v48 }
 0x8f0   : > { %v1551_v0 = vpop.permute.xlu1 %1550 }
 0x8f1   : > { %1574 = vst.msk [vmem:[#allocation2 + $0x8] sm:$0xff] %vm1572_vm0, %v1551_v0 }
 0x8f2   : > { %1583 = vst.msk [vmem:[#allocation2 + $0x8] sm:$0xff] %vm1581_vm5, %v5853_v7 }
 0x8f4   : > { %v1553_v50 = vpop.permute.xlu1 %1552 }
 0x8f5   : > { %1575 = vst.msk [vmem:[#allocation2 + $0x10] sm:$0xff] %vm1572_vm0, %v1553_v50  ;;  %v6026_v17 = vld [vmem:[#allocation2] sm:$0xff] }
 0x8f6   : > { %1584 = vst.msk [vmem:[#allocation2 + $0x10] sm:$0xff] %vm1581_vm5, %v5859_v59  ;;  %v6031_v2 = vmax.f32 %v6026_v17, %v1599_v15 }
 0x8f8   : > { %1688 = vperm.xlu1 %4341, %v6031_v2   ;;  %v1555_v48 = vpop.permute.xlu0 %1554 }
 0x8f9   : > { %1576 = vst.msk [vmem:[#allocation2 + $0x18] sm:$0xff] %vm1572_vm0, %v1555_v48  ;;  %v6035_v46 = vld [vmem:[#allocation2 + $0x8] sm:$0xff] }
 0x8fa   : > { %1585 = vst.msk [vmem:[#allocation2 + $0x18] sm:$0xff] %vm1581_vm5, %v5867_v9  ;;  %v6040_v7 = vmax.f32 %v6035_v46, %v1601_v11 }
 0x8fc   : > { %v1557_v18 = vpop.permute.xlu1 %1556  ;;  %1693 = vperm.xlu0 %4342, %v6040_v7  }
 0x8fd   : > { %1577 = vst.msk [vmem:[#allocation2 + $0x20] sm:$0xff] %vm1572_vm0, %v1557_v18  ;;  %v6044_v59 = vld [vmem:[#allocation2 + $0x10] sm:$0xff] }
 0x8fe   : > { %1586 = vst.msk [vmem:[#allocation2 + $0x20] sm:$0xff] %vm1581_vm5, %v5874_v12  ;;  %v6049_v16 = vmax.f32 %v6044_v59, %v1603_v24 }
 0x900   : > { %1698 = vperm.xlu1 %4341, %v6049_v16   ;;  %v1559_v5 = vpop.permute.xlu0 %1558 }
 0x901   : > { %1578 = vst.msk [vmem:[#allocation2 + $0x28] sm:$0xff] %vm1572_vm0, %v1559_v5  ;;  %v6053_v9 = vld [vmem:[#allocation2 + $0x18] sm:$0xff] }
 0x902   : > { %1587 = vst.msk [vmem:[#allocation2 + $0x28] sm:$0xff] %vm1581_vm5, %v5879_v51  ;;  %v6058_v22 = vmax.f32 %v6053_v9, %v1605_v49 }
 0x904   : > { %1703 = vperm.xlu1 %4341, %v6058_v22  }
 0x905   : > { %v6061_v63 = vld [vmem:[#allocation2 + $0x20] sm:$0xff] }
 0x906   : > { %v6064_v12 = vmax.f32 %v6061_v63, %v1607_v10 }
 0x908   : > { %1708 = vperm.xlu0 %4342, %v6064_v12  }
 0x909   : > { %v6067_v1 = vld [vmem:[#allocation2 + $0x28] sm:$0xff] }
 0x90a   : > { %v1563_v36 = vpop.permute.xlu0 %1562  ;;  %v6070_v52 = vmax.f32 %v6067_v1, %v1609_v43 }
 0x90b   : > { %1580 = vst.msk [vmem:[#allocation2 + $0x38] sm:$0xff] %vm1572_vm0, %v1563_v36 }
 0x90c   : > { %1589 = vst.msk [vmem:[#allocation2 + $0x38] sm:$0xff] %vm1581_vm5, %v5891_v58  ;;  %1713 = vperm.xlu1 %4341, %v6070_v52   ;;  %v7420_v58 = vmov 2  }
 0x90e   : > { %v1561_v51 = vpop.permute.xlu1 %1560 }
 0x90f   : > { %1579 = vst.msk [vmem:[#allocation2 + $0x30] sm:$0xff] %vm1572_vm0, %v1561_v51 }
 0x910   : > { %1588 = vst.msk [vmem:[#allocation2 + $0x30] sm:$0xff] %vm1581_vm5, %v5884_v6 }
 0x913   : > { %v6079_v27 = vld [vmem:[#allocation2 + $0x38] sm:$0xff] }
 0x914   : > { %v6082_v56 = vmax.f32 %v6079_v27, %v1613_v60 }
 0x916   : > { %1723 = vperm.xlu1 %4341, %v6082_v56  }
 0x917   : > { %v6085_v21 = vld [vmem:[#allocation2 + $0x30] sm:$0xff] }
 0x918   : > { %v6088_v8 = vmax.f32 %v6085_v21, %v1611_v4 }
 0x91a   : > { %1718 = vperm.xlu0 %4342, %v6088_v8   ;;  %1654 = vrot.lane.b32.xlu1 %v6026_v17, %s4775_s26 }
 0x91b   : > { %4344 = vset.pattern.permute.xlu1 %v7420_v58 }
 0x91e   : > { %1656 = vrot.lane.b32.xlu0 %v6035_v46, %s4775_s26  ;;  %1658 = vrot.lane.b32.xlu1 %v6044_v59, %s4775_s26 }
 0x91f   : > { %4343 = vset.pattern.permute.xlu0 %v7420_v58 }
 0x922   : > { %1662 = vrot.lane.b32.xlu0 %v6061_v63, %s4775_s26  ;;  %1660 = vrot.lane.b32.xlu1 %v6053_v9, %s4775_s26 }
 0x926   : > { %1664 = vrot.lane.b32.xlu1 %v6067_v1, %s4775_s26 }
 0x94c   : > { %v6105_v6 = vpop.f32.mrb[16].mxu1 }
 0x94d   : > { %v2057_v39 = vpop.f32.mrb[17].mxu1 }
 0x950   : > { %v6107_v28 = vpop.f32.mrb[18].mxu1 }
 0x951   : > { %v2062_v14 = vpop.f32.mrb[19].mxu1 }
 0x954   : > { %v6109_v44 = vpop.f32.mrb[20].mxu1 }
 0x955   : > { %v2067_v40 = vpop.f32.mrb[21].mxu1 }
 0x956   : > { %v6113_v3 = vpop.f32.mrb[8].mxu0 }
 0x957   : > { %v6115_v62 = vpop.f32.mrb[9].mxu0 }
 0x958   : > { %v6111_v47 = vpop.f32.mrb[22].mxu1 }
 0x959   : > { %v2072_v29 = vpop.f32.mrb[23].mxu1 }
 0x95a   : > { %v6119_v20 = vpop.f32.mrb[10].mxu0 }
 0x95b   : > { %v6121_v13 = vpop.f32.mrb[11].mxu0 }
 0x95c   : > { %v6117_v35 = vpop.f32.mrb[24].mxu1 }
 0x95d   : > { %v2077_v38 = vpop.f32.mrb[25].mxu1 }
 0x95e   : > { %v6125_v11 = vpop.f32.mrb[12].mxu0 }
 0x95f   : > { %v6127_v24 = vpop.f32.mrb[13].mxu0 }
 0x960   : > { %v6123_v61 = vpop.f32.mrb[26].mxu1 }
 0x961   : > { %v2082_v15 = vpop.f32.mrb[27].mxu1 }
 0x962   : > { %v6131_v10 = vpop.f32.mrb[14].mxu0 }
 0x963   : > { %v6133_v4 = vpop.f32.mrb[15].mxu0 }
 0x964   : > { %v6129_v49 = vpop.f32.mrb[28].mxu1 }
 0x965   : > { %v2087_v43 = vpop.f32.mrb[29].mxu1 }
 0x968   : > { %v6135_v60 = vpop.f32.mrb[30].mxu1 }
 0x969   : > { %v2092_v54 = vpop.f32.mrb[31].mxu1 }
 0x977   : > { %v1689_v0 = vpop.permute.xlu1 %1688 }
 0x978   : > { %v1726_v50 = vsub.f32 %v7397_v19, %v1689_v0 }
 0x97a   : > { %v1734_v48 = vmul.f32 1.442695, %v1726_v50 }
 0x97b   : > { %v1694_v18 = vpop.permute.xlu0 %1693 }
 0x97c   : > { %4377 = vpow2.f32 %v1734_v48  ;;  %v1727_v5 = vsub.f32 %v7395_v53, %v1694_v18 }
 0x97e   : > { %v1736_v36 = vmul.f32 1.442695, %v1727_v5 }
 0x97f   : > { %v1699_v51 = vpop.permute.xlu1 %1698 }
 0x980   : > { %4379 = vpow2.f32 %v1736_v36  ;;  %v1728_v58 = vsub.f32 %v7396_v34, %v1699_v51 }
 0x982   : > { %v1738_v39 = vmul.f32 1.442695, %v1728_v58 }
 0x983   : > { %v1704_v14 = vpop.permute.xlu1 %1703 }
 0x984   : > { %4381 = vpow2.f32 %v1738_v39  ;;  %v1729_v40 = vsub.f32 %v5349_v23, %v1704_v14 }
 0x986   : > { %v4378_v29 = vpop.eup %4377  ;;  %v1740_v38 = vmul.f32 1.442695, %v1729_v40  ;;  %v6153_v40 = vmul.f32 20.0, %v6107_v28  ;;  %v6171_v28 = vmul.f32 20.0, %v6121_v13 }
 0x987   : > { %1750 = vadd.xlane.f32.xlu0 %v4378_v29  ;;  %v1709_v15 = vpop.permute.xlu0 %1708  ;;  %v6157_v29 = vmul.f32 20.0, %v6115_v62  ;;  %v6177_v62 = vmul.f32 20.0, %v6117_v35 }
 0x988   : > { %4383 = vpow2.f32 %v1740_v38  ;;  %v1730_v19 = vsub.f32 %v5358_v45, %v1709_v15  ;;  %7422 = vst [vmem:[#allocation22_spill] sm:$0xff] %v6153_v40  ;;  %v6160_v38 = vmul.f32 20.0, %v6109_v44  ;;  %v6163_v15 = vmul.f32 20.0, %v6113_v3 }
 0x989   : > { %v6180_v44 = vmul.f32 20.0, %v6119_v20  ;;  %v2106_v13 = vmul.f32 0.3, %v6177_v62  ;;  %v6198_v20 = vmul.f32 20.0, %v6129_v49 }
 0x98a   : > { %v4380_v43 = vpop.eup %4379  ;;  %v1742_v54 = vmul.f32 1.442695, %v1730_v19  ;;  %7423 = vst [vmem:[#allocation49_spill] sm:$0xff] %v6160_v38  ;;  %v2103_v19 = vmul.f32 0.3, %v6153_v40 }
 0x98b   : > { %v1714_v53 = vpop.permute.xlu1 %1713  ;;  %1752 = vadd.xlane.f32.xlu1 %v4380_v43  ;;  %v6167_v43 = vmul.f32 20.0, %v6111_v47 }
 0x98c   : > { %4385 = vpow2.f32 %v1742_v54  ;;  %v1731_v0 = vsub.f32 %v5367_v25, %v1714_v53  ;;  %v6184_v53 = vmul.f32 20.0, %v6123_v61  ;;  %v6187_v47 = vadd.f32 %v2103_v19, %v6163_v15 }
 0x98d   : > { %7424 = vst [vmem:[#allocation50_spill] sm:$0xff] %v6167_v43  ;;  %v2105_v3 = vmul.f32 0.3, %v6167_v43  ;;  %v1625_v19 = vsub.f32 %v6053_v9, %v6058_v22 }
 0x98e   : > { %v4382_v34 = vpop.eup %4381  ;;  %v1744_v50 = vmul.f32 1.442695, %v1731_v0  ;;  %v6192_v0 = vmul.f32 20.0, %v6127_v24  ;;  %v2107_v61 = vmul.f32 0.3, %v6184_v53 }
 0x98f   : > { %1754 = vadd.xlane.f32.xlu0 %v4382_v34  ;;  %v6201_v34 = vmul.f32 20.0, %v6125_v11  ;;  %v2108_v24 = vmul.f32 0.3, %v6198_v20  ;;  %v6217_v11 = vmul.f32 20.0, %v6135_v60 }
 0x990   : > { %4387 = vpow2.f32 %v1744_v50  ;;  %7425 = vst [vmem:[#allocation51_spill] sm:$0xff] %v6192_v0  ;;  %v6205_v50 = vadd.f32 %v2105_v3, %v6180_v44  ;;  %v6214_v49 = vadd.f32 %v2106_v13, %v6192_v0  ;;  %v1626_v3 = vsub.f32 %v6061_v63, %v6064_v12 }
 0x991   : > { %7426 = vst [vmem:[#allocation52_spill] sm:$0xff] %v6201_v34 }
 0x992   : > { %v4384_v48 = vpop.eup %4383 }
 0x993   : > { %1756 = vadd.xlane.f32.xlu0 %v4384_v48  ;;  %v6211_v48 = vmul.f32 20.0, %v6133_v4 }
 0x995   : > { %v1724_v23 = vpop.permute.xlu1 %1723  ;;  %7427 = vst [vmem:[#allocation47_spill] sm:$0xff] %v6211_v48  ;;  %v6229_v4 = vadd.f32 %v2108_v24, %v6211_v48  ;;  %v1638_v24 = vmul.f32 1.442695, %v1626_v3 }
 0x996   : > { %v4386_v18 = vpop.eup %4385  ;;  %v1733_v5 = vsub.f32 %v5387_v42, %v1724_v23  ;;  %v6150_v42 = vmul.f32 20.0, %v6105_v6  ;;  %v2104_v6 = vmul.f32 0.3, %v6160_v38  ;;  %v6220_v23 = vmul.f32 20.0, %v6131_v10 }
 0x997   : > { %1758 = vadd.xlane.f32.xlu1 %v4386_v18  ;;  %v2109_v18 = vmul.f32 0.3, %v6217_v11  ;;  %v1622_v10 = vsub.f32 %v6026_v17, %v6031_v2  ;;  %v1636_v17 = vmul.f32 1.442695, %v1625_v19 }
 0x998   : > { %v1748_v36 = vmul.f32 1.442695, %v1733_v5  ;;  %7421 = vst [vmem:[#allocation23_spill] sm:$0xff] %v6150_v42  ;;  %v6195_v35 = vadd.f32 %v2104_v6, %v6171_v28  ;;  %7428 = vst [vmem:[#allocation48_spill] sm:$0xff] %v6220_v23  ;;  %v6226_v5 = vadd.f32 %v2107_v61, %v6201_v34 }
 0x999   : > { %v1719_v45 = vpop.permute.xlu0 %1718  ;;  %v6234_v60 = vadd.f32 %v2109_v18, %v6220_v23 }
 0x99a   : > { %v4388_v51 = vpop.eup %4387  ;;  %4389 = vpow2.f32 %v1748_v36  ;;  %v1732_v58 = vsub.f32 %v5378_v41, %v1719_v45  ;;  %v2102_v41 = vmul.f32 0.3, %v6150_v42  ;;  %v1655_v36 = vpop.permute.xlu1 %1654  ;;  %v1630_v45 = vmul.f32 1.442695, %v1622_v10 }
 0x99b   : > { %1760 = vadd.xlane.f32.xlu0 %v4388_v51  ;;  %v1623_v51 = vsub.f32 %v6035_v46, %v6040_v7 }
 0x99c   : > { %v1746_v39 = vmul.f32 1.442695, %v1732_v58  ;;  %v6174_v54 = vadd.f32 %v2102_v41, %v6157_v29 }
 0x99d   : > { %v1632_v58 = vmul.f32 1.442695, %v1623_v51 }
 0x99e   : > { %4391 = vpow2.f32 %v1746_v39  ;;  %v1624_v39 = vsub.f32 %v6044_v59, %v6049_v16  ;;  %v1627_v59 = vsub.f32 %v6067_v1, %v6070_v52 }
 0x99f   : > { %4393 = vpow2.f32 %v1630_v45 }
 0x9a0   : > { %4395 = vpow2.f32 %v1632_v58  ;;  %v1634_v41 = vmul.f32 1.442695, %v1624_v39  ;;  %v1640_v9 = vmul.f32 1.442695, %v1627_v59 }
 0x9a2   : > { %4397 = vpow2.f32 %v1634_v41 }
 0x9a3   : > { %4399 = vpow2.f32 %v1636_v17 }
 0x9a4   : > { %v4390_v25 = vpop.eup %4389  ;;  %4401 = vpow2.f32 %v1638_v24  ;;  %v1628_v24 = vsub.f32 %v6085_v21, %v6088_v8 }
 0x9a5   : > { %1764 = vadd.xlane.f32.xlu0 %v4390_v25  ;;  %v1659_v25 = vpop.permute.xlu1 %1658  ;;  %4403 = vpow2.f32 %v1640_v9 }
 0x9a8   : > { %v4392_v14 = vpop.eup %4391 }
 0x9a9   : > { %1762 = vadd.xlane.f32.xlu1 %v4392_v14  ;;  %v1657_v14 = vpop.permute.xlu0 %1656  ;;  %v1661_v6 = vpop.permute.xlu1 %1660 }
 0x9aa   : > { %v4394_v46 = vpop.eup %4393 }
 0x9ab   : > { %v1678_v61 = vmul.f32 %v4394_v46, %v1655_v36  ;;  %v4396_v51 = vpop.eup %4395 }
 0x9ac   : > { %v1679_v58 = vmul.f32 %v4396_v51, %v1657_v14  ;;  %v4398_v63 = vpop.eup %4397 }
 0x9ad   : > { %v1663_v13 = vpop.permute.xlu0 %1662  ;;  %v1665_v18 = vpop.permute.xlu1 %1664  ;;  %v1680_v19 = vmul.f32 %v4398_v63, %v1659_v25 }
 0x9ae   : > { %v4400_v3 = vpop.eup %4399 }
 0x9af   : > { %v1681_v1 = vmul.f32 %v4400_v3, %v1661_v6  ;;  %v4402_v14 = vpop.eup %4401  ;;  %v1629_v6 = vsub.f32 %v6079_v27, %v6082_v56 }
 0x9ba   : > { %1668 = vrot.lane.b32.xlu1 %v6079_v27, %s4775_s26 }
 0x9bb   : > { %1666 = vrot.lane.b32.xlu0 %v6085_v21, %s4775_s26 }
 0x9da   : > { %2126 = vmax.xlane.f32.xlu0 %v6174_v54 }
 0x9de   : > { %2130 = vmax.xlane.f32.xlu0 %v6195_v35  ;;  %2128 = vmax.xlane.f32.xlu1 %v6187_v47 }
 0x9e2   : > { %2132 = vmax.xlane.f32.xlu0 %v6205_v50  ;;  %2134 = vmax.xlane.f32.xlu1 %v6214_v49 }
 0x9e6   : > { %2136 = vmax.xlane.f32.xlu0 %v6226_v5  ;;  %2138 = vmax.xlane.f32.xlu1 %v6229_v4 }
 0x9ea   : > { %2140 = vmax.xlane.f32.xlu0 %v6234_v60 }
 0xa14   : > { %v1751_v10 = vpop.xlane.xlu0 %1750 }
 0xa15   : > { %v1766_v45 = vadd.f32 %v1751_v10, %v1678_v61  ;;  %v1682_v10 = vmul.f32 %v4402_v14, %v1663_v13  ;;  %v1644_v13 = vmul.f32 1.442695, %v1629_v6 }
 0xa17   : > { %1782 = vrot.lane.b32.xlu1 %v1766_v45, %s4776_s0  ;;  %v4404_v45 = vpop.eup %4403 }
 0xa18   : > { %v1753_v39 = vpop.xlane.xlu1 %1752  ;;  %v1683_v51 = vmul.f32 %v4404_v45, %v1665_v18 }
 0xa19   : > { %v1767_v41 = vadd.f32 %v1753_v39, %v1679_v58  ;;  %v1642_v58 = vmul.f32 1.442695, %v1628_v24 }
 0xa1b   : > { %1784 = vrot.lane.b32.xlu0 %v1767_v41, %s4776_s0  ;;  %4405 = vpow2.f32 %v1642_v58 }
 0xa1c   : > { %v1755_v36 = vpop.xlane.xlu0 %1754  ;;  %4407 = vpow2.f32 %v1644_v13 }
 0xa1d   : > { %v1768_v17 = vadd.f32 %v1755_v36, %v1680_v19 }
 0xa1f   : > { %1786 = vrot.lane.b32.xlu1 %v1768_v17, %s4776_s0 }
 0xa20   : > { %v1757_v46 = vpop.xlane.xlu0 %1756 }
 0xa21   : > { %v1769_v61 = vadd.f32 %v1757_v46, %v1681_v1 }
 0xa23   : > { %1788 = vrot.lane.b32.xlu1 %v1769_v61, %s4776_s0 }
 0xa24   : > { %v1759_v59 = vpop.xlane.xlu1 %1758 }
 0xa25   : > { %v1770_v25 = vadd.f32 %v1759_v59, %v1682_v10  ;;  %v4406_v63 = vpop.eup %4405 }
 0xa26   : > { %v4408_v18 = vpop.eup %4407 }
 0xa27   : > { %1790 = vrot.lane.b32.xlu0 %v1770_v25, %s4776_s0 }
 0xa28   : > { %v1761_v9 = vpop.xlane.xlu0 %1760 }
 0xa29   : > { %v1771_v39 = vadd.f32 %v1761_v9, %v1683_v51 }
 0xa2b   : > { %1792 = vrot.lane.b32.xlu1 %v1771_v39, %s4776_s0 }
 0xa32   : > { %v1765_v41 = vpop.xlane.xlu0 %1764 }
 0xa36   : > { %v1763_v21 = vpop.xlane.xlu1 %1762  ;;  %v1667_v19 = vpop.permute.xlu0 %1666 }
 0xa37   : > { %v1684_v36 = vmul.f32 %v4406_v63, %v1667_v19 }
 0xa39   : > { %v1772_v17 = vadd.f32 %v1763_v21, %v1684_v36 }
 0xa3a   : > { %v1669_v3 = vpop.permute.xlu1 %1668 }
 0xa3b   : > { %v1685_v1 = vmul.f32 %v4408_v18, %v1669_v3  ;;  %1794 = vrot.lane.b32.xlu0 %v1772_v17, %s4776_s0 }
 0xa3d   : > { %v1773_v27 = vadd.f32 %v1765_v41, %v1685_v1 }
 0xa3f   : > { %1796 = vrot.lane.b32.xlu1 %v1773_v27, %s4776_s0 }
 0xa67   : > { %v2127_v46 = vpop.xlane.xlu0 %2126 }
 0xa6b   : > { %v2131_v61 = vpop.xlane.xlu0 %2130  ;;  %v2129_v14 = vpop.xlane.xlu1 %2128 }
 0xa6f   : > { %v2133_v10 = vpop.xlane.xlu0 %2132  ;;  %v2135_v24 = vpop.xlane.xlu1 %2134 }
 0xa73   : > { %v2137_v59 = vpop.xlane.xlu0 %2136  ;;  %v2139_v25 = vpop.xlane.xlu1 %2138 }
 0xa77   : > { %v2141_v45 = vpop.xlane.xlu0 %2140 }
 0xa89   : > { %v1783_v51 = vpop.permute.xlu1 %1782 }
 0xa8a   : > { %1807 = vst.msk [vmem:[#allocation2] sm:$0xff] %vm1806_vm6, %v1783_v51 }
 0xa8b   : > { %1816 = vst.msk [vmem:[#allocation2] sm:$0xff] %vm1815_vm7, %v6031_v2 }
 0xa8d   : > { %v1785_v6 = vpop.permute.xlu0 %1784 }
 0xa8e   : > { %1808 = vst.msk [vmem:[#allocation2 + $0x8] sm:$0xff] %vm1806_vm6, %v1785_v6 }
 0xa8f   : > { %1817 = vst.msk [vmem:[#allocation2 + $0x8] sm:$0xff] %vm1815_vm7, %v6040_v7 }
 0xa91   : > { %v1787_v58 = vpop.permute.xlu1 %1786 }
 0xa92   : > { %1809 = vst.msk [vmem:[#allocation2 + $0x10] sm:$0xff] %vm1806_vm6, %v1787_v58  ;;  %v6268_v9 = vld [vmem:[#allocation2] sm:$0xff] }
 0xa93   : > { %1818 = vst.msk [vmem:[#allocation2 + $0x10] sm:$0xff] %vm1815_vm7, %v6049_v16  ;;  %2246 = vrot.lane.b32.xlu0 %v6268_v9, %s4775_s26  ;;  %v6275_v2 = vmax.f32 %v6268_v9, %v2127_v46 }
 0xa95   : > { %v1789_v39 = vpop.permute.xlu1 %1788 }
 0xa96   : > { %1810 = vst.msk [vmem:[#allocation2 + $0x18] sm:$0xff] %vm1806_vm6, %v1789_v39  ;;  %v6278_v13 = vld [vmem:[#allocation2 + $0x8] sm:$0xff] }
 0xa97   : > { %1819 = vst.msk [vmem:[#allocation2 + $0x18] sm:$0xff] %vm1815_vm7, %v6058_v22  ;;  %2176 = vperm.xlu0 %4343, %v6275_v2   ;;  %2248 = vrot.lane.b32.xlu1 %v6278_v13, %s4775_s26  ;;  %v6286_v7 = vmax.f32 %v6278_v13, %v2129_v14 }
 0xa99   : > { %v1791_v16 = vpop.permute.xlu0 %1790 }
 0xa9a   : > { %1811 = vst.msk [vmem:[#allocation2 + $0x20] sm:$0xff] %vm1806_vm6, %v1791_v16  ;;  %v6289_v41 = vld [vmem:[#allocation2 + $0x10] sm:$0xff] }
 0xa9b   : > { %1820 = vst.msk [vmem:[#allocation2 + $0x20] sm:$0xff] %vm1815_vm7, %v6064_v12  ;;  %2181 = vperm.xlu1 %4344, %v6286_v7   ;;  %v6295_v22 = vmax.f32 %v6289_v41, %v2131_v61 }
 0xa9d   : > { %v1793_v63 = vpop.permute.xlu1 %1792 }
 0xa9e   : > { %1812 = vst.msk [vmem:[#allocation2 + $0x28] sm:$0xff] %vm1806_vm6, %v1793_v63  ;;  %v6298_v21 = vld [vmem:[#allocation2 + $0x18] sm:$0xff] }
 0xa9f   : > { %1821 = vst.msk [vmem:[#allocation2 + $0x28] sm:$0xff] %vm1815_vm7, %v6070_v52  ;;  %2186 = vperm.xlu1 %4344, %v6295_v22   ;;  %v6304_v19 = vmax.f32 %v6298_v21, %v2133_v10 }
 0xaa1   : > { %2191 = vperm.xlu0 %4343, %v6304_v19  }
 0xaa2   : > { %v6307_v12 = vld [vmem:[#allocation2 + $0x20] sm:$0xff] }
 0xaa3   : > { %v6310_v36 = vmax.f32 %v6307_v12, %v2135_v24 }
 0xaa5   : > { %2196 = vperm.xlu1 %4344, %v6310_v36  }
 0xaa6   : > { %v6313_v17 = vld [vmem:[#allocation2 + $0x28] sm:$0xff] }
 0xaa7   : > { %v6316_v18 = vmax.f32 %v6313_v17, %v2137_v59 }
 0xaa9   : > { %2201 = vperm.xlu0 %4343, %v6316_v18  }
 0xaad   : > { %2252 = vrot.lane.b32.xlu0 %v6298_v21, %s4775_s26  ;;  %v1795_v52 = vpop.permute.xlu0 %1794 }
 0xaae   : > { %1813 = vst.msk [vmem:[#allocation2 + $0x30] sm:$0xff] %vm1806_vm6, %v1795_v52 }
 0xaaf   : > { %1822 = vst.msk [vmem:[#allocation2 + $0x30] sm:$0xff] %vm1815_vm7, %v6088_v8 }
 0xab1   : > { %v1797_v3 = vpop.permute.xlu1 %1796  ;;  %2256 = vrot.lane.b32.xlu0 %v6313_v17, %s4775_s26 }
 0xab2   : > { %1814 = vst.msk [vmem:[#allocation2 + $0x38] sm:$0xff] %vm1806_vm6, %v1797_v3 }
 0xab3   : > { %1823 = vst.msk [vmem:[#allocation2 + $0x38] sm:$0xff] %vm1815_vm7, %v6082_v56 }
 0xab6   : > { %v6329_v1 = vld [vmem:[#allocation2 + $0x30] sm:$0xff] }
 0xab7   : > { %v6332_v27 = vmax.f32 %v6329_v1, %v2139_v25 }
 0xab9   : > { %2206 = vperm.xlu1 %4344, %v6332_v27  }
 0xaba   : > { %v6335_v46 = vld [vmem:[#allocation2 + $0x38] sm:$0xff] }
 0xabb   : > { %v6338_v8 = vmax.f32 %v6335_v46, %v2141_v45 }
 0xabd   : > { %2211 = vperm.xlu0 %4343, %v6338_v8   ;;  %2250 = vrot.lane.b32.xlu1 %v6289_v41, %s4775_s26 }
 0xac1   : > { %2254 = vrot.lane.b32.xlu1 %v6307_v12, %s4775_s26 }
 0xb05   : > { %v6345_v56 = vpop.permute.xlu0 %2246 }
 0xb09   : > { %v6347_v61 = vpop.permute.xlu1 %2248 }
 0xb16   : > { %v2177_v14 = vpop.permute.xlu0 %2176 }
 0xb17   : > { %v2214_v10 = vsub.f32 %v6174_v54, %v2177_v14 }
 0xb19   : > { %v2222_v24 = vmul.f32 1.442695, %v2214_v10 }
 0xb1a   : > { %v2182_v59 = vpop.permute.xlu1 %2181 }
 0xb1b   : > { %4409 = vpow2.f32 %v2222_v24  ;;  %v2215_v25 = vsub.f32 %v6187_v47, %v2182_v59 }
 0xb1d   : > { %v2224_v45 = vmul.f32 1.442695, %v2215_v25 }
 0xb1e   : > { %v2187_v51 = vpop.permute.xlu1 %2186 }
 0xb1f   : > { %4411 = vpow2.f32 %v2224_v45  ;;  %v2216_v6 = vsub.f32 %v6195_v35, %v2187_v51 }
 0xb20   : > { %v2192_v58 = vpop.permute.xlu0 %2191 }
 0xb21   : > { %v2226_v39 = vmul.f32 1.442695, %v2216_v6  ;;  %v2217_v16 = vsub.f32 %v6205_v50, %v2192_v58 }
 0xb23   : > { %4413 = vpow2.f32 %v2226_v39  ;;  %v2228_v63 = vmul.f32 1.442695, %v2217_v16 }
 0xb24   : > { %v2197_v52 = vpop.permute.xlu1 %2196 }
 0xb25   : > { %v6353_v3 = vpop.eup %4409  ;;  %4415 = vpow2.f32 %v2228_v63  ;;  %v2218_v14 = vsub.f32 %v6214_v49, %v2197_v52 }
 0xb26   : > { %2278 = vadd.xlane.f32.xlu1 %v6353_v3 }
 0xb27   : > { %v2230_v10 = vmul.f32 1.442695, %v2218_v14 }
 0xb28   : > { %v2202_v24 = vpop.permute.xlu0 %2201 }
 0xb29   : > { %v6357_v59 = vpop.eup %4411  ;;  %4417 = vpow2.f32 %v2230_v10  ;;  %v2219_v25 = vsub.f32 %v6226_v5, %v2202_v24 }
 0xb2a   : > { %2280 = vadd.xlane.f32.xlu0 %v6357_v59 }
 0xb2b   : > { %v2232_v45 = vmul.f32 1.442695, %v2219_v25 }
 0xb2c   : > { %v6367_v58 = vpop.permute.xlu0 %2252 }
 0xb2d   : > { %v6361_v51 = vpop.eup %4413  ;;  %4419 = vpow2.f32 %v2232_v45 }
 0xb2e   : > { %2282 = vadd.xlane.f32.xlu0 %v6361_v51 }
 0xb2f   : > { %v6364_v6 = vpop.eup %4415 }
 0xb30   : > { %2284 = vadd.xlane.f32.xlu1 %v6364_v6  ;;  %v6374_v63 = vpop.permute.xlu0 %2256 }
 0xb33   : > { %v6369_v39 = vpop.eup %4417 }
 0xb34   : > { %2286 = vadd.xlane.f32.xlu0 %v6369_v39 }
 0xb37   : > { %v6372_v16 = vpop.eup %4419 }
 0xb38   : > { %v2207_v52 = vpop.permute.xlu1 %2206  ;;  %2288 = vadd.xlane.f32.xlu1 %v6372_v16 }
 0xb39   : > { %v2220_v14 = vsub.f32 %v6229_v4, %v2207_v52  ;;  %v2391_v52 = vmul.f32 %v6357_v59, %v6163_v15 }
 0xb3b   : > { %v2234_v10 = vmul.f32 1.442695, %v2220_v14  ;;  %v2392_v14 = vmul.f32 %v6361_v51, %v6171_v28 }
 0xb3c   : > { %v2212_v24 = vpop.permute.xlu0 %2211 }
 0xb3d   : > { %4421 = vpow2.f32 %v2234_v10  ;;  %v2221_v25 = vsub.f32 %v6234_v60, %v2212_v24  ;;  %v2390_v10 = vmul.f32 %v6353_v3, %v6157_v29  ;;  %v2394_v24 = vmul.f32 %v6369_v39, %v6192_v0 }
 0xb3f   : > { %v2236_v45 = vmul.f32 1.442695, %v2221_v25  ;;  %v2393_v25 = vmul.f32 %v6364_v6, %v6180_v44 }
 0xb41   : > { %4423 = vpow2.f32 %v2236_v45 }
 0xb47   : > { %v6379_v57 = vpop.eup %4421 }
 0xb48   : > { %2290 = vadd.xlane.f32.xlu0 %v6379_v57  ;;  %v2396_v45 = vmul.f32 %v6379_v57, %v6211_v48  ;;  %v2152_v48 = vsub.f32 %v6289_v41, %v6295_v22 }
 0xb4b   : > { %v6382_v55 = vpop.eup %4423 }
 0xb4c   : > { %2292 = vadd.xlane.f32.xlu1 %v6382_v55 }
 0xb5d   : > { %2258 = vrot.lane.b32.xlu1 %v6329_v1, %s4775_s26 }
 0xb5e   : > { %2260 = vrot.lane.b32.xlu0 %v6335_v46, %s4775_s26 }
 0xb7d   : > { %2400 = vadd.xlane.f32.xlu0 %v2391_v52  ;;  %v2395_v52 = vmul.f32 %v6372_v16, %v6201_v34  ;;  %v2162_v34 = vmul.f32 1.442695, %v2152_v48 }
 0xb81   : > { %2402 = vadd.xlane.f32.xlu0 %v2392_v14  ;;  %2398 = vadd.xlane.f32.xlu1 %v2390_v10  ;;  %v2397_v14 = vmul.f32 %v6382_v55, %v6220_v23  ;;  %v2150_v10 = vsub.f32 %v6268_v9, %v6275_v2 }
 0xb83   : > { %v2158_v0 = vmul.f32 1.442695, %v2150_v10 }
 0xb85   : > { %2406 = vadd.xlane.f32.xlu0 %v2394_v24  ;;  %2404 = vadd.xlane.f32.xlu1 %v2393_v25  ;;  %v2151_v24 = vsub.f32 %v6278_v13, %v6286_v7  ;;  %4425 = vpow2.f32 %v2158_v0  ;;  %v2155_v13 = vsub.f32 %v6313_v17, %v6316_v18 }
 0xb87   : > { %v2160_v25 = vmul.f32 1.442695, %v2151_v24  ;;  %v2168_v48 = vmul.f32 1.442695, %v2155_v13 }
 0xb89   : > { %2410 = vadd.xlane.f32.xlu0 %v2396_v45  ;;  %2408 = vadd.xlane.f32.xlu1 %v2395_v52  ;;  %v2153_v45 = vsub.f32 %v6298_v21, %v6304_v19  ;;  %v2251_v52 = vpop.permute.xlu1 %2250  ;;  %4427 = vpow2.f32 %v2160_v25 }
 0xb8a   : > { %4429 = vpow2.f32 %v2162_v34 }
 0xb8b   : > { %v2164_v23 = vmul.f32 1.442695, %v2153_v45 }
 0xb8d   : > { %2412 = vadd.xlane.f32.xlu1 %v2397_v14  ;;  %v2154_v14 = vsub.f32 %v6307_v12, %v6310_v36  ;;  %v2255_v9 = vpop.permute.xlu1 %2254  ;;  %4431 = vpow2.f32 %v2164_v23 }
 0xb8f   : > { %v6415_v10 = vpop.eup %4425  ;;  %v2166_v0 = vmul.f32 1.442695, %v2154_v14 }
 0xb90   : > { %v2270_v41 = vmul.f32 %v6415_v10, %v6345_v56 }
 0xb91   : > { %4433 = vpow2.f32 %v2166_v0 }
 0xb92   : > { %4435 = vpow2.f32 %v2168_v48 }
 0xb93   : > { %v6421_v25 = vpop.eup %4427 }
 0xb94   : > { %v2271_v34 = vmul.f32 %v6421_v25, %v6347_v61  ;;  %v6426_v45 = vpop.eup %4429 }
 0xb95   : > { %v2272_v17 = vmul.f32 %v6426_v45, %v2251_v52 }
 0xb97   : > { %v6430_v56 = vpop.eup %4431 }
 0xb98   : > { %v2273_v0 = vmul.f32 %v6430_v56, %v6367_v58 }
 0xbb3   : > { %v2279_v21 = vpop.xlane.xlu1 %2278 }
 0xbb4   : > { %v2294_v24 = vadd.f32 %v2279_v21, %v2270_v41  ;;  %v6435_v21 = vpop.eup %4433 }
 0xbb6   : > { %2310 = vrot.lane.b32.xlu1 %v2294_v24, %s4776_s0  ;;  %v2274_v24 = vmul.f32 %v6435_v21, %v2255_v9  ;;  %v2156_v9 = vsub.f32 %v6329_v1, %v6332_v27 }
 0xbb7   : > { %v2281_v12 = vpop.xlane.xlu0 %2280 }
 0xbb8   : > { %v2295_v23 = vadd.f32 %v2281_v12, %v2271_v34  ;;  %v6439_v34 = vpop.eup %4435 }
 0xbb9   : > { %v2275_v12 = vmul.f32 %v6439_v34, %v6374_v63 }
 0xbba   : > { %2312 = vrot.lane.b32.xlu0 %v2295_v23, %s4776_s0 }
 0xbbb   : > { %v2283_v14 = vpop.xlane.xlu0 %2282 }
 0xbbc   : > { %v2296_v13 = vadd.f32 %v2283_v14, %v2272_v17  ;;  %v2157_v17 = vsub.f32 %v6335_v46, %v6338_v8 }
 0xbbd   : > { %v2285_v41 = vpop.xlane.xlu1 %2284 }
 0xbbe   : > { %v2297_v61 = vadd.f32 %v2285_v41, %v2273_v0  ;;  %2314 = vrot.lane.b32.xlu1 %v2296_v13, %s4776_s0  ;;  %v2172_v14 = vmul.f32 1.442695, %v2157_v17  ;;  %v2170_v0 = vmul.f32 1.442695, %v2156_v9 }
 0xbc0   : > { %2316 = vrot.lane.b32.xlu0 %v2297_v61, %s4776_s0  ;;  %4437 = vpow2.f32 %v2172_v14 }
 0xbc1   : > { %v2287_v52 = vpop.xlane.xlu0 %2286  ;;  %4439 = vpow2.f32 %v2170_v0 }
 0xbc2   : > { %v2298_v48 = vadd.f32 %v2287_v52, %v2274_v24 }
 0xbc4   : > { %2318 = vrot.lane.b32.xlu1 %v2298_v48, %s4776_s0 }
 0xbc5   : > { %v2289_v58 = vpop.xlane.xlu1 %2288 }
 0xbc6   : > { %v2299_v23 = vadd.f32 %v2289_v58, %v2275_v12  ;;  %v2511_v58 = vmul.f32 %v6357_v59, %v6153_v40 }
 0xbc8   : > { %2320 = vrot.lane.b32.xlu0 %v2299_v23, %s4776_s0  ;;  %v2510_v23 = vmul.f32 %v6353_v3, %v6150_v42 }
 0xbca   : > { %v6449_v41 = vpop.eup %4437 }
 0xbcb   : > { %v6452_v48 = vpop.eup %4439 }
 0xbd5   : > { %v2291_v13 = vpop.xlane.xlu0 %2290 }
 0xbd9   : > { %v2293_v63 = vpop.xlane.xlu1 %2292  ;;  %v2261_v61 = vpop.permute.xlu0 %2260 }
 0xbda   : > { %v2277_v24 = vmul.f32 %v6449_v41, %v2261_v61 }
 0xbdc   : > { %v2301_v52 = vadd.f32 %v2293_v63, %v2277_v24 }
 0xbdd   : > { %v2259_v46 = vpop.permute.xlu1 %2258 }
 0xbde   : > { %v2276_v12 = vmul.f32 %v6452_v48, %v2259_v46  ;;  %2324 = vrot.lane.b32.xlu0 %v2301_v52, %s4776_s0 }
 0xbe0   : > { %v2300_v1 = vadd.f32 %v2291_v13, %v2276_v12 }
 0xbe2   : > { %2322 = vrot.lane.b32.xlu1 %v2300_v1, %s4776_s0 }
 0xbfd   : > { %2520 = vadd.xlane.f32.xlu0 %v2511_v58 }
 0xc06   : > { %2518 = vadd.xlane.f32.xlu1 %v2510_v23 }
 0xc0a   : > { %v2401_v9 = vpop.xlane.xlu0 %2400 }
 0xc0e   : > { %v2399_v17 = vpop.xlane.xlu1 %2398  ;;  %v2403_v0 = vpop.xlane.xlu0 %2402 }
 0xc12   : > { %v2405_v14 = vpop.xlane.xlu1 %2404  ;;  %v2407_v61 = vpop.xlane.xlu0 %2406 }
 0xc16   : > { %v6461_v63 = vpop.xlane.xlu1 %2408  ;;  %v6465_v13 = vpop.xlane.xlu0 %2410 }
 0xc1a   : > { %v6463_v24 = vpop.xlane.xlu1 %2412 }
 0xc28   : > { %v2311_v52 = vpop.permute.xlu1 %2310 }
 0xc29   : > { %2334 = vst.msk [vmem:[#allocation2] sm:$0xff] %vm931_vm1, %v2311_v52 }
 0xc2c   : > { %v2313_v59 = vpop.permute.xlu0 %2312 }
 0xc2d   : > { %2335 = vst.msk [vmem:[#allocation2 + $0x8] sm:$0xff] %vm931_vm1, %v2313_v59 }
 0xc30   : > { %v2315_v46 = vpop.permute.xlu1 %2314  ;;  %v2342_v3 = vld [vmem:[#allocation2] sm:$0xff] }
 0xc31   : > { %2336 = vst.msk [vmem:[#allocation2 + $0x10] sm:$0xff] %vm931_vm1, %v2315_v46  ;;  %2358 = vrot.lane.b32.xlu0 %v2342_v3, %s4777_s12 }
 0xc32   : > { %v2317_v12 = vpop.permute.xlu0 %2316 }
 0xc33   : > { %2337 = vst.msk [vmem:[#allocation2 + $0x18] sm:$0xff] %vm931_vm1, %v2317_v12 }
 0xc34   : > { %v2343_v1 = vld [vmem:[#allocation2 + $0x8] sm:$0xff] }
 0xc35   : > { %2360 = vrot.lane.b32.xlu1 %v2343_v1, %s4777_s12 }
 0xc36   : > { %v2319_v58 = vpop.permute.xlu1 %2318 }
 0xc37   : > { %2338 = vst.msk [vmem:[#allocation2 + $0x20] sm:$0xff] %vm931_vm1, %v2319_v58 }
 0xc38   : > { %v2344_v23 = vld [vmem:[#allocation2 + $0x10] sm:$0xff] }
 0xc39   : > { %2362 = vrot.lane.b32.xlu1 %v2344_v23, %s4777_s12 }
 0xc3a   : > { %v2321_v52 = vpop.permute.xlu0 %2320  ;;  %v2345_v59 = vld [vmem:[#allocation2 + $0x18] sm:$0xff] }
 0xc3b   : > { %2339 = vst.msk [vmem:[#allocation2 + $0x28] sm:$0xff] %vm931_vm1, %v2321_v52  ;;  %2364 = vrot.lane.b32.xlu0 %v2345_v59, %s4777_s12  ;;  %v2512_v52 = vmul.f32 %v6361_v51, %v6160_v38  ;;  %v2513_v59 = vmul.f32 %v6364_v6, %v6167_v43 }
 0xc3e   : > { %v2346_v46 = vld [vmem:[#allocation2 + $0x20] sm:$0xff] }
 0xc3f   : > { %2366 = vrot.lane.b32.xlu1 %v2346_v46, %s4777_s12 }
 0xc42   : > { %v2347_v3 = vld [vmem:[#allocation2 + $0x28] sm:$0xff] }
 0xc43   : > { %2368 = vrot.lane.b32.xlu0 %v2347_v3, %s4777_s12 }
 0xc50   : > { %v2325_v12 = vpop.permute.xlu0 %2324 }
 0xc51   : > { %2341 = vst.msk [vmem:[#allocation2 + $0x38] sm:$0xff] %vm931_vm1, %v2325_v12 }
 0xc54   : > { %v2323_v1 = vpop.permute.xlu1 %2322 }
 0xc55   : > { %2340 = vst.msk [vmem:[#allocation2 + $0x30] sm:$0xff] %vm931_vm1, %v2323_v1  ;;  %vm2626_vm1 = vcmask (!%p3895_p10), 72768  }
 0xc58   : > { %v2349_v58 = vld [vmem:[#allocation2 + $0x38] sm:$0xff] }
 0xc59   : > { %2372 = vrot.lane.b32.xlu0 %v2349_v58, %s4777_s12 }
 0xc5c   : > { %v2348_v23 = vld [vmem:[#allocation2 + $0x30] sm:$0xff] }
 0xc5d   : > { %2370 = vrot.lane.b32.xlu1 %v2348_v23, %s4777_s12 }
 0xc78   : > { %2522 = vadd.xlane.f32.xlu0 %v2512_v52 }
 0xc81   : > { %2524 = vadd.xlane.f32.xlu1 %v2513_v59 }
 0xc8a   : > { %v6487_v46 = vpop.xlane.xlu0 %2520 }
 0xc93   : > { %v6489_v3 = vpop.xlane.xlu1 %2518 }
 0xca3   : > { %v2359_v12 = vpop.permute.xlu0 %2358 }
 0xca4   : > { %v2382_v1 = vmul.f32 %v6415_v10, %v2359_v12 }
 0xca6   : > { %v2414_v42 = vadd.f32 %v2399_v17, %v2382_v1 }
 0xca7   : > { %v2361_v58 = vpop.permute.xlu1 %2360 }
 0xca8   : > { %v2383_v40 = vmul.f32 %v6421_v25, %v2361_v58  ;;  %2430 = vrot.lane.b32.xlu1 %v2414_v42, %s4778_s9 }
 0xcaa   : > { %v2415_v23 = vadd.f32 %v2401_v9, %v2383_v40 }
 0xcab   : > { %v2363_v51 = vpop.permute.xlu1 %2362 }
 0xcac   : > { %v2384_v52 = vmul.f32 %v6426_v45, %v2363_v51  ;;  %2432 = vrot.lane.b32.xlu0 %v2415_v23, %s4778_s9  ;;  %v2517_v51 = vmul.f32 %v6382_v55, %v6217_v11 }
 0xcad   : > { %v2365_v6 = vpop.permute.xlu0 %2364 }
 0xcae   : > { %v2416_v59 = vadd.f32 %v2403_v0, %v2384_v52  ;;  %v2385_v38 = vmul.f32 %v6430_v56, %v2365_v6 }
 0xcb0   : > { %v2417_v43 = vadd.f32 %v2405_v14, %v2385_v38  ;;  %2434 = vrot.lane.b32.xlu1 %v2416_v59, %s4778_s9 }
 0xcb1   : > { %v2367_v12 = vpop.permute.xlu1 %2366 }
 0xcb2   : > { %v2386_v17 = vmul.f32 %v6435_v21, %v2367_v12  ;;  %2436 = vrot.lane.b32.xlu0 %v2417_v43, %s4778_s9 }
 0xcb4   : > { %v2418_v1 = vadd.f32 %v2407_v61, %v2386_v17  ;;  %v2514_v61 = vmul.f32 %v6369_v39, %v6177_v62 }
 0xcb5   : > { %v2369_v42 = vpop.permute.xlu0 %2368 }
 0xcb6   : > { %v2387_v40 = vmul.f32 %v6439_v34, %v2369_v42  ;;  %2438 = vrot.lane.b32.xlu1 %v2418_v1, %s4778_s9 }
 0xcb8   : > { %v2419_v9 = vadd.f32 %v6461_v63, %v2387_v40  ;;  %v2516_v63 = vmul.f32 %v6379_v57, %v6198_v20 }
 0xcba   : > { %2440 = vrot.lane.b32.xlu0 %v2419_v9, %s4778_s9 }
 0xccb   : > { %v2373_v0 = vpop.permute.xlu0 %2372 }
 0xccc   : > { %v2389_v38 = vmul.f32 %v6449_v41, %v2373_v0 }
 0xcce   : > { %v2421_v14 = vadd.f32 %v6463_v24, %v2389_v38  ;;  %v2515_v24 = vmul.f32 %v6372_v16, %v6184_v53 }
 0xccf   : > { %v2371_v58 = vpop.permute.xlu1 %2370 }
 0xcd0   : > { %v2388_v23 = vmul.f32 %v6452_v48, %v2371_v58  ;;  %2444 = vrot.lane.b32.xlu0 %v2421_v14, %s4778_s9 }
 0xcd2   : > { %v2420_v43 = vadd.f32 %v6465_v13, %v2388_v23 }
 0xcd4   : > { %2442 = vrot.lane.b32.xlu1 %v2420_v43, %s4778_s9 }
 0xcef   : > { %2526 = vadd.xlane.f32.xlu0 %v2514_v61 }
 0xcf3   : > { %2530 = vadd.xlane.f32.xlu0 %v2516_v63 }
 0xcf8   : > { %2528 = vadd.xlane.f32.xlu1 %v2515_v24 }
 0xcfc   : > { %2532 = vadd.xlane.f32.xlu1 %v2517_v51 }
 0xd05   : > { %v2523_v13 = vpop.xlane.xlu0 %2522 }
 0xd0e   : > { %v2525_v52 = vpop.xlane.xlu1 %2524 }
 0xd1a   : > { %v2431_v6 = vpop.permute.xlu1 %2430 }
 0xd1b   : > { %2454 = vst.msk [vmem:[#allocation2] sm:$0xff] %vm1052_vm2, %v2431_v6 }
 0xd1e   : > { %v2433_v59 = vpop.permute.xlu0 %2432 }
 0xd1f   : > { %2455 = vst.msk [vmem:[#allocation2 + $0x8] sm:$0xff] %vm1052_vm2, %v2433_v59 }
 0xd22   : > { %v2435_v39 = vpop.permute.xlu1 %2434  ;;  %v2462_v12 = vld [vmem:[#allocation2] sm:$0xff] }
 0xd23   : > { %2456 = vst.msk [vmem:[#allocation2 + $0x10] sm:$0xff] %vm1052_vm2, %v2435_v39  ;;  %2478 = vrot.lane.b32.xlu0 %v2462_v12, %s4779_s30 }
 0xd24   : > { %v2437_v57 = vpop.permute.xlu0 %2436 }
 0xd25   : > { %2457 = vst.msk [vmem:[#allocation2 + $0x18] sm:$0xff] %vm1052_vm2, %v2437_v57 }
 0xd26   : > { %v2463_v16 = vld [vmem:[#allocation2 + $0x8] sm:$0xff] }
 0xd27   : > { %2480 = vrot.lane.b32.xlu1 %v2463_v16, %s4779_s30 }
 0xd28   : > { %v2439_v55 = vpop.permute.xlu1 %2438 }
 0xd29   : > { %2458 = vst.msk [vmem:[#allocation2 + $0x20] sm:$0xff] %vm1052_vm2, %v2439_v55 }
 0xd2a   : > { %v2464_v17 = vld [vmem:[#allocation2 + $0x10] sm:$0xff] }
 0xd2b   : > { %2482 = vrot.lane.b32.xlu1 %v2464_v17, %s4779_s30 }
 0xd2c   : > { %v2441_v1 = vpop.permute.xlu0 %2440  ;;  %v2465_v42 = vld [vmem:[#allocation2 + $0x18] sm:$0xff] }
 0xd2d   : > { %2459 = vst.msk [vmem:[#allocation2 + $0x28] sm:$0xff] %vm1052_vm2, %v2441_v1  ;;  %2484 = vrot.lane.b32.xlu0 %v2465_v42, %s4779_s30 }
 0xd30   : > { %v2466_v40 = vld [vmem:[#allocation2 + $0x20] sm:$0xff] }
 0xd31   : > { %2486 = vrot.lane.b32.xlu1 %v2466_v40, %s4779_s30 }
 0xd34   : > { %v2467_v9 = vld [vmem:[#allocation2 + $0x28] sm:$0xff] }
 0xd35   : > { %2488 = vrot.lane.b32.xlu0 %v2467_v9, %s4779_s30 }
 0xd42   : > { %v2445_v0 = vpop.permute.xlu0 %2444 }
 0xd43   : > { %2461 = vst.msk [vmem:[#allocation2 + $0x38] sm:$0xff] %vm1052_vm2, %v2445_v0 }
 0xd46   : > { %v2443_v38 = vpop.permute.xlu1 %2442 }
 0xd47   : > { %2460 = vst.msk [vmem:[#allocation2 + $0x30] sm:$0xff] %vm1052_vm2, %v2443_v38 }
 0xd4a   : > { %v2469_v14 = vld [vmem:[#allocation2 + $0x38] sm:$0xff] }
 0xd4b   : > { %2492 = vrot.lane.b32.xlu0 %v2469_v14, %s4779_s30 }
 0xd4e   : > { %v2468_v58 = vld [vmem:[#allocation2 + $0x30] sm:$0xff] }
 0xd4f   : > { %2490 = vrot.lane.b32.xlu1 %v2468_v58, %s4779_s30 }
 0xd7c   : > { %v2527_v23 = vpop.xlane.xlu0 %2526 }
 0xd80   : > { %v2531_v61 = vpop.xlane.xlu0 %2530 }
 0xd85   : > { %v2529_v43 = vpop.xlane.xlu1 %2528 }
 0xd89   : > { %v2533_v63 = vpop.xlane.xlu1 %2532 }
 0xd95   : > { %v2479_v24 = vpop.permute.xlu0 %2478 }
 0xd96   : > { %v2502_v51 = vmul.f32 %v6415_v10, %v2479_v24 }
 0xd98   : > { %v2534_v6 = vadd.f32 %v6489_v3, %v2502_v51 }
 0xd99   : > { %v2481_v59 = vpop.permute.xlu1 %2480 }
 0xd9a   : > { %v2503_v39 = vmul.f32 %v6421_v25, %v2481_v59  ;;  %2550 = vrot.lane.b32.xlu1 %v2534_v6, %s4780_s17 }
 0xd9c   : > { %v2535_v12 = vadd.f32 %v6487_v46, %v2503_v39 }
 0xd9d   : > { %v2483_v57 = vpop.permute.xlu1 %2482 }
 0xd9e   : > { %v2504_v16 = vmul.f32 %v6426_v45, %v2483_v57  ;;  %2552 = vrot.lane.b32.xlu0 %v2535_v12, %s4780_s17 }
 0xd9f   : > { %v2485_v55 = vpop.permute.xlu0 %2484 }
 0xda0   : > { %v2536_v17 = vadd.f32 %v2523_v13, %v2504_v16  ;;  %v2505_v1 = vmul.f32 %v6430_v56, %v2485_v55 }
 0xda2   : > { %v2537_v42 = vadd.f32 %v2525_v52, %v2505_v1  ;;  %2554 = vrot.lane.b32.xlu1 %v2536_v17, %s4780_s17 }
 0xda3   : > { %v2487_v10 = vpop.permute.xlu1 %2486 }
 0xda4   : > { %v2506_v3 = vmul.f32 %v6435_v21, %v2487_v10  ;;  %2556 = vrot.lane.b32.xlu0 %v2537_v42, %s4780_s17 }
 0xda6   : > { %v2538_v25 = vadd.f32 %v2527_v23, %v2506_v3 }
 0xda7   : > { %v2489_v40 = vpop.permute.xlu0 %2488 }
 0xda8   : > { %v2507_v46 = vmul.f32 %v6439_v34, %v2489_v40  ;;  %2558 = vrot.lane.b32.xlu1 %v2538_v25, %s4780_s17 }
 0xdaa   : > { %v2539_v45 = vadd.f32 %v2529_v43, %v2507_v46 }
 0xdac   : > { %2560 = vrot.lane.b32.xlu0 %v2539_v45, %s4780_s17 }
 0xdbd   : > { %v2493_v13 = vpop.permute.xlu0 %2492 }
 0xdbe   : > { %v2509_v56 = vmul.f32 %v6449_v41, %v2493_v13 }
 0xdc0   : > { %v2541_v52 = vadd.f32 %v2533_v63, %v2509_v56 }
 0xdc1   : > { %v2491_v9 = vpop.permute.xlu1 %2490 }
 0xdc2   : > { %v2508_v0 = vmul.f32 %v6452_v48, %v2491_v9  ;;  %2564 = vrot.lane.b32.xlu0 %v2541_v52, %s4780_s17 }
 0xdc4   : > { %v2540_v21 = vadd.f32 %v2531_v61, %v2508_v0 }
 0xdc6   : > { %2562 = vrot.lane.b32.xlu1 %v2540_v21, %s4780_s17  ;;  %2602 = vrot.lane.b32.xlu0 (!%p3895_p10), %v6174_v54, %s4784_s22 }
 0xdca   : > { %2606 = vrot.lane.b32.xlu1 (!%p3895_p10), %v6195_v35, %s4784_s22  ;;  %2604 = vrot.lane.b32.xlu0 (!%p3895_p10), %v6187_v47, %s4784_s22 }
 0xdce   : > { %2608 = vrot.lane.b32.xlu1 (!%p3895_p10), %v6205_v50, %s4784_s22  ;;  %2610 = vrot.lane.b32.xlu0 (!%p3895_p10), %v6214_v49, %s4784_s22 }
 0xdd2   : > { %2612 = vrot.lane.b32.xlu1 (!%p3895_p10), %v6226_v5, %s4784_s22  ;;  %2614 = vrot.lane.b32.xlu0 (!%p3895_p10), %v6229_v4, %s4784_s22 }
 0xdd6   : > { %2616 = vrot.lane.b32.xlu1 (!%p3895_p10), %v6234_v60, %s4784_s22 }
 0xe0c   : > { %v2551_v38 = vpop.permute.xlu1 %2550 }
 0xe0d   : > { %2574 = vst.msk [vmem:[#allocation2] sm:$0xff] %vm1173_vm3, %v2551_v38 }
 0xe0e   : > { %2582 = vst.msk [vmem:[#allocation2] sm:$0xff] %vm1182_vm4, %v6275_v2 }
 0xe10   : > { %v2553_v34 = vpop.permute.xlu0 %2552 }
 0xe11   : > { %2575 = vst.msk [vmem:[#allocation2 + $0x8] sm:$0xff] %vm1173_vm3, %v2553_v34 }
 0xe12   : > { %2583 = vst.msk [vmem:[#allocation2 + $0x8] sm:$0xff] %vm1182_vm4, %v6286_v7 }
 0xe14   : > { %v2555_v41 = vpop.permute.xlu1 %2554 }
 0xe15   : > { %2576 = vst.msk [vmem:[#allocation2 + $0x10] sm:$0xff] %vm1173_vm3, %v2555_v41 }
 0xe16   : > { %2584 = vst.msk [vmem:[#allocation2 + $0x10] sm:$0xff] %vm1182_vm4, %v6295_v22  ;;  %v2557_v48 = vpop.permute.xlu0 %2556 }
 0xe17   : > { %2577 = vst.msk [vmem:[#allocation2 + $0x18] sm:$0xff] %vm1173_vm3, %v2557_v48 }
 0xe18   : > { %2585 = vst.msk [vmem:[#allocation2 + $0x18] sm:$0xff] %vm1182_vm4, %v6304_v19 }
 0xe1a   : > { %v2559_v14 = vpop.permute.xlu1 %2558 }
 0xe1b   : > { %2578 = vst.msk [vmem:[#allocation2 + $0x20] sm:$0xff] %vm1173_vm3, %v2559_v14 }
 0xe1c   : > { %2586 = vst.msk [vmem:[#allocation2 + $0x20] sm:$0xff] %vm1182_vm4, %v6310_v36 }
 0xe1e   : > { %v2561_v2 = vpop.permute.xlu0 %2560 }
 0xe1f   : > { %2579 = vst.msk [vmem:[#allocation2 + $0x28] sm:$0xff] %vm1173_vm3, %v2561_v2 }
 0xe20   : > { %2587 = vst.msk [vmem:[#allocation2 + $0x28] sm:$0xff] %vm1182_vm4, %v6316_v18 }
 0xe34   : > { %v2565_v7 = vpop.permute.xlu0 %2564  ;;  %2593 = sbr.rel (%p3895_p10) target bundleno = 3658 (0xe4a), region = 68 }
 0xe35   : > { %2581 = vst.msk [vmem:[#allocation2 + $0x38] sm:$0xff] %vm1173_vm3, %v2565_v7 }
 0xe36   : > { %2589 = vst.msk [vmem:[#allocation2 + $0x38] sm:$0xff] %vm1182_vm4, %v6338_v8 }
 0xe38   : > { %v2563_v22 = vpop.permute.xlu1 %2562  ;;  %v2603_v36 = vpop.permute.xlu0 (!%p3895_p10), %2602 }
 0xe39   : > { %2580 = vst.msk [vmem:[#allocation2 + $0x30] sm:$0xff] %vm1173_vm3, %v2563_v22 }
 0xe3a   : > { %2588 = vst.msk [vmem:[#allocation2 + $0x30] sm:$0xff] %vm1182_vm4, %v6332_v27 }
 0xe3b   : > { %2627 = vst.msk [vmem:[#allocation2] sm:$0xff] %vm2626_vm1, %v2603_v36 }
 0xe3c   : > { %v2607_v19 = vpop.permute.xlu1 %2606  ;;  %v2605_v35 = vpop.permute.xlu0 %2604 }
 0xe3d   : > { %2629 = vst.msk [vmem:[#allocation2 + $0x10] sm:$0xff] %vm2626_vm1, %v2607_v19  ;;  %2628 = vst.msk [vmem:[#allocation2 + $0x8] sm:$0xff] %vm2626_vm1, %v2605_v35 }
 0xe40   : > { %v2609_v54 = vpop.permute.xlu1 %2608  ;;  %v2611_v50 = vpop.permute.xlu0 %2610 }
 0xe41   : > { %2630 = vst.msk [vmem:[#allocation2 + $0x18] sm:$0xff] %vm2626_vm1, %v2609_v54  ;;  %2631 = vst.msk [vmem:[#allocation2 + $0x20] sm:$0xff] %vm2626_vm1, %v2611_v50 }
 0xe44   : > { %v2613_v47 = vpop.permute.xlu1 %2612  ;;  %v2615_v5 = vpop.permute.xlu0 %2614 }
 0xe45   : > { %2632 = vst.msk [vmem:[#allocation2 + $0x28] sm:$0xff] %vm2626_vm1, %v2613_v47  ;;  %2633 = vst.msk [vmem:[#allocation2 + $0x30] sm:$0xff] %vm2626_vm1, %v2615_v5 }
 0xe48   : > { %v2617_v49 = vpop.permute.xlu1 %2616 }
 0xe49   : > { %2634 = vst.msk [vmem:[#allocation2 + $0x38] sm:$0xff] %vm2626_vm1, %v2617_v49 }
 0xe4a PF: > { %p2635_p2 = scmp.le.s32.totalorder %s5706_s7, %s3906_s8  ;;  %s2636_s18 = sadd.s32 256, %s5155_s13 }
 0xe4b   : > { %p2637_p6 = scmp.lt.s32.totalorder %s5703_s28, %s2636_s18 }
 0xe4d   : > { %p2638_p11 = pnand %p2637_p6, %p2635_p2 }
 0xe4e   : > { %v7429_v4 = vlaneseq (!%p2638_p11)  ;;  %v2644_v18 = vstv (!%p2638_p11), %s5706_s7  ;;  %v7430_v8 = vmul.u32 (!%p2638_p11), 4, %v5173_v31  ;;  %v7433_v23 = vmul.u32 (!%p2638_p11), 4, %v5166_v26  ;;  %v7448_v57 = vld [vmem:[#allocation52_spill] sm:$0xff] (!%p2638_p11)  ;;  %v7449_v55 = vld [vmem:[#allocation51_spill] sm:$0xff] (!%p2638_p11)  ;;  %v7450_v17 = vld [vmem:[#allocation21_spill] sm:$0xff] (!%p2638_p11) }
 0xe4f   : > { %2641 = sbr.rel (%p2638_p11) target bundleno = 3843 (0xf03), region = 72  ;;  %v7436_v61 = vmul.u32 (!%p2638_p11), 4, %v5175_v32  ;;  %v7439_v24 = vmul.u32 (!%p2638_p11), 4, %v5171_v30  ;;  %v7458_v25 = vld [vmem:[#allocation48_spill] sm:$0xff] (!%p2638_p11)  ;;  %v7459_v46 = vld [vmem:[#allocation47_spill] sm:$0xff] (!%p2638_p11)  ;;  %v7460_v13 = vld [vmem:[#allocation22_spill] sm:$0xff] (!%p2638_p11) }
 0xe50   : > { %v2643_v60 = vand.u32 (!%p2638_p11), 127, %v7429_v4  ;;  %v7442_v6 = vmul.u32 (!%p2638_p11), 4, %v5182_v37  ;;  %v7445_v39 = vmul.u32 (!%p2638_p11), 4, %v5177_v33  ;;  %v7454_v33 = vld [vmem:[#allocation20_spill] sm:$0xff] (!%p2638_p11)  ;;  %v7461_v52 = vld [vmem:[#allocation23_spill] sm:$0xff] (!%p2638_p11)  ;;  %v7462_v0 = vld [vmem:[#allocation50_spill] sm:$0xff] (!%p2638_p11) }
 0xe51   : > { %v7451_v1 = vmul.u32 (!%p2638_p11), 4, %v7450_v17  ;;  %v7455_v10 = vmul.u32 (!%p2638_p11), 4, %v7454_v33  ;;  %v7463_v38 = vld [vmem:[#allocation49_spill] sm:$0xff] (!%p2638_p11)  ;;  %v2656_v7 = vld [vmem:[#allocation2 + $0x10] sm:$0xff] (!%p2638_p11)  ;;  %v2654_v22 = vld [vmem:[#allocation2] sm:$0xff] (!%p2638_p11)  ;;  %vm2694_vm13 = vcmask (!%p2638_p11), 56368  }
 0xe52   : > { %v2645_v27 = vadd.s32 (!%p2638_p11), %v2644_v18, %v2643_v60  ;;  %v2657_v47 = vld [vmem:[#allocation2 + $0x18] sm:$0xff] (!%p2638_p11)  ;;  %v2655_v50 = vld [vmem:[#allocation2 + $0x8] sm:$0xff] (!%p2638_p11)  ;;  %v2660_v63 = vld [vmem:[#allocation2 + $0x30] sm:$0xff] (!%p2638_p11)  ;;  %vm2743_vm14 = vcmask (!%p2638_p11), 64568  }
 0xe53   : > { %v2659_v18 = vld [vmem:[#allocation2 + $0x28] sm:$0xff] (!%p2638_p11) }
 0xe54   : > { %vm6602_vm2 = vcmp.eq.s32.totalorder (!%p2638_p11), %v2645_v27, %v7430_v8  ;;  %vm6608_vm3 = vcmp.eq.s32.totalorder (!%p2638_p11), %v2645_v27, %v7433_v23  ;;  %vm6614_vm4 = vcmp.eq.s32.totalorder (!%p2638_p11), %v2645_v27, %v7436_v61  ;;  %vm6620_vm8 = vcmp.eq.s32.totalorder (!%p2638_p11), %v2645_v27, %v7439_v24  ;;  %v2661_v61 = vld [vmem:[#allocation2 + $0x38] sm:$0xff] (!%p2638_p11) }
 0xe55   : > { %v2664_v26 = vsel (!%p2638_p11), %vm6602_vm2, %v6171_v28, 0.0  ;;  %v2662_v51 = vsel (!%p2638_p11), %vm6608_vm3, %v6157_v29, 0.0  ;;  %v2665_v32 = vsel (!%p2638_p11), %vm6614_vm4, %v6180_v44, 0.0  ;;  %v2663_v30 = vsel (!%p2638_p11), %vm6620_vm8, %v6163_v15, 0.0 }
 0xe56   : > { %2674 = vadd.xlane.f32.xlu1 %v2664_v26  ;;  %2670 = vadd.xlane.f32.xlu0 %v2662_v51  ;;  %vm6638_vm9 = vcmp.eq.s32.totalorder %v2645_v27, %v7442_v6  ;;  %vm6644_vm10 = vcmp.eq.s32.totalorder %v2645_v27, %v7445_v39  ;;  %vm6656_vm11 = vcmp.eq.s32.totalorder %v2645_v27, %v7451_v1  ;;  %v2712_v56 = vsel %vm6620_vm8, %v7460_v13, 0.0 }
 0xe57   : > { %v2667_v16 = vsel %vm6638_vm9, %v7448_v57, 0.0  ;;  %v2666_v37 = vsel %vm6644_vm10, %v7449_v55, 0.0  ;;  %vm6662_vm12 = vcmp.eq.s32.totalorder %v2645_v27, %v7455_v10  ;;  %v2669_v40 = vsel %vm6656_vm11, %v7458_v25, 0.0  ;;  %v2658_v27 = vld [vmem:[#allocation2 + $0x20] sm:$0xff] }
 0xe58   : > { %v2668_v45 = vsel %vm6662_vm12, %v7459_v46, 0.0  ;;  %v2711_v9 = vsel %vm6608_vm3, %v7461_v52, 0.0  ;;  %v2714_v21 = vsel %vm6614_vm4, %v7462_v0, 0.0  ;;  %v2713_v34 = vsel %vm6602_vm2, %v7463_v38, 0.0 }
 0xe59   : > { %v2716_v41 = vsel %vm6638_vm9, %v6184_v53, 0.0  ;;  %v2715_v48 = vsel %vm6644_vm10, %v6177_v62, 0.0  ;;  %v2718_v14 = vsel %vm6656_vm11, %v6217_v11, 0.0  ;;  %v2717_v2 = vsel %vm6662_vm12, %v6198_v20, 0.0 }
 0xe5a   : > { %2676 = vadd.xlane.f32.xlu1 %v2665_v32  ;;  %2672 = vadd.xlane.f32.xlu0 %v2663_v30 }
 0xe5e   : > { %2680 = vadd.xlane.f32.xlu1 %v2667_v16  ;;  %2678 = vadd.xlane.f32.xlu0 %v2666_v37 }
 0xe62   : > { %2684 = vadd.xlane.f32.xlu1 %v2669_v40  ;;  %2682 = vadd.xlane.f32.xlu0 %v2668_v45 }
 0xe66   : > { %2721 = vadd.xlane.f32.xlu1 %v2712_v56  ;;  %2719 = vadd.xlane.f32.xlu0 %v2711_v9 }
 0xe6a   : > { %2725 = vadd.xlane.f32.xlu1 %v2714_v21  ;;  %2723 = vadd.xlane.f32.xlu0 %v2713_v34 }
 0xe6e   : > { %2729 = vadd.xlane.f32.xlu1 %v2716_v41  ;;  %2727 = vadd.xlane.f32.xlu0 %v2715_v48 }
 0xe72   : > { %2733 = vadd.xlane.f32.xlu1 %v2718_v14  ;;  %2731 = vadd.xlane.f32.xlu0 %v2717_v2 }
 0xee3   : > { %v2675_v19 = vpop.xlane.xlu1 %2674  ;;  %v2671_v36 = vpop.xlane.xlu0 %2670 }
 0xee4   : > { %v2688_v54 = vadd.f32 %v2675_v19, %v2656_v7  ;;  %v2686_v35 = vadd.f32 %v2671_v36, %v2654_v22 }
 0xee6   : > { %2697 = vst.msk [vmem:[#allocation2 + $0x10] sm:$0xff] %vm2694_vm13, %v2688_v54  ;;  %2695 = vst.msk [vmem:[#allocation2] sm:$0xff] %vm2694_vm13, %v2686_v35 }
 0xee7   : > { %v2677_v49 = vpop.xlane.xlu1 %2676  ;;  %v2673_v5 = vpop.xlane.xlu0 %2672 }
 0xee8   : > { %v2689_v4 = vadd.f32 %v2677_v49, %v2657_v47  ;;  %v2687_v60 = vadd.f32 %v2673_v5, %v2655_v50 }
 0xeea   : > { %2698 = vst.msk [vmem:[#allocation2 + $0x18] sm:$0xff] %vm2694_vm13, %v2689_v4  ;;  %2696 = vst.msk [vmem:[#allocation2 + $0x8] sm:$0xff] %vm2694_vm13, %v2687_v60 }
 0xeeb   : > { %v2681_v8 = vpop.xlane.xlu1 %2680  ;;  %v2679_v58 = vpop.xlane.xlu0 %2678 }
 0xeec   : > { %v2691_v23 = vadd.f32 %v2681_v8, %v2659_v18  ;;  %v2690_v43 = vadd.f32 %v2679_v58, %v2658_v27 }
 0xeed   : > { %v2703_v6 = vld [vmem:[#allocation2] sm:$0xff]  ;;  %v2705_v55 = vld [vmem:[#allocation2 + $0x10] sm:$0xff] }
 0xeee   : > { %2700 = vst.msk [vmem:[#allocation2 + $0x28] sm:$0xff] %vm2694_vm13, %v2691_v23  ;;  %2699 = vst.msk [vmem:[#allocation2 + $0x20] sm:$0xff] %vm2694_vm13, %v2690_v43 }
 0xeef   : > { %v2685_v24 = vpop.xlane.xlu1 %2684  ;;  %v2683_v31 = vpop.xlane.xlu0 %2682 }
 0xef0   : > { %v2693_v26 = vadd.f32 %v2685_v24, %v2661_v61  ;;  %v2692_v51 = vadd.f32 %v2683_v31, %v2660_v63 }
 0xef1   : > { %v2704_v30 = vld [vmem:[#allocation2 + $0x8] sm:$0xff]  ;;  %v2706_v57 = vld [vmem:[#allocation2 + $0x18] sm:$0xff] }
 0xef2   : > { %2702 = vst.msk [vmem:[#allocation2 + $0x38] sm:$0xff] %vm2694_vm13, %v2693_v26  ;;  %2701 = vst.msk [vmem:[#allocation2 + $0x30] sm:$0xff] %vm2694_vm13, %v2692_v51 }
 0xef3   : > { %v2722_v32 = vpop.xlane.xlu1 %2721  ;;  %v2720_v59 = vpop.xlane.xlu0 %2719 }
 0xef4   : > { %v2736_v39 = vadd.f32 %v2722_v32, %v2704_v30  ;;  %v2735_v12 = vadd.f32 %v2720_v59, %v2703_v6 }
 0xef5   : > { %v2708_v42 = vld [vmem:[#allocation2 + $0x28] sm:$0xff]  ;;  %v2707_v10 = vld [vmem:[#allocation2 + $0x20] sm:$0xff] }
 0xef6   : > { %2745 = vst.msk [vmem:[#allocation2 + $0x8] sm:$0xff] %vm2743_vm14, %v2736_v39  ;;  %2744 = vst.msk [vmem:[#allocation2] sm:$0xff] %vm2743_vm14, %v2735_v12 }
 0xef7   : > { %v2726_v16 = vpop.xlane.xlu1 %2725  ;;  %v2724_v37 = vpop.xlane.xlu0 %2723 }
 0xef8   : > { %v2738_v17 = vadd.f32 %v2726_v16, %v2706_v57  ;;  %v2737_v1 = vadd.f32 %v2724_v37, %v2705_v55 }
 0xef9   : > { %v2710_v46 = vld [vmem:[#allocation2 + $0x38] sm:$0xff]  ;;  %v2709_v13 = vld [vmem:[#allocation2 + $0x30] sm:$0xff] }
 0xefa   : > { %2747 = vst.msk [vmem:[#allocation2 + $0x18] sm:$0xff] %vm2743_vm14, %v2738_v17  ;;  %2746 = vst.msk [vmem:[#allocation2 + $0x10] sm:$0xff] %vm2743_vm14, %v2737_v1 }
 0xefb   : > { %v2730_v33 = vpop.xlane.xlu1 %2729  ;;  %v2728_v3 = vpop.xlane.xlu0 %2727 }
 0xefc   : > { %v2740_v25 = vadd.f32 %v2730_v33, %v2708_v42  ;;  %v2739_v40 = vadd.f32 %v2728_v3, %v2707_v10 }
 0xefe   : > { %2749 = vst.msk [vmem:[#allocation2 + $0x28] sm:$0xff] %vm2743_vm14, %v2740_v25  ;;  %2748 = vst.msk [vmem:[#allocation2 + $0x20] sm:$0xff] %vm2743_vm14, %v2739_v40 }
 0xeff   : > { %v2734_v45 = vpop.xlane.xlu1 %2733  ;;  %v2732_v56 = vpop.xlane.xlu0 %2731 }
 0xf00   : > { %v2742_v52 = vadd.f32 %v2734_v45, %v2710_v46  ;;  %v2741_v9 = vadd.f32 %v2732_v56, %v2709_v13 }
 0xf02   : > { %2751 = vst.msk [vmem:[#allocation2 + $0x38] sm:$0xff] %vm2743_vm14, %v2742_v52  ;;  %2750 = vst.msk [vmem:[#allocation2 + $0x30] sm:$0xff] %vm2743_vm14, %v2741_v9 }
 0xf03 PF: > { %2760 = vmax.xlane.f32.xlu0 %v6157_v29  ;;  %2764 = vmax.xlane.f32.xlu1 %v6171_v28  ;;  %v7464_v0 = vmov 0   ;;  %v7465_v21 = vld [vmem:[#allocation51_spill] sm:$0xff]  ;;  %v7466_v38 = vld [vmem:[#allocation52_spill] sm:$0xff]  ;;  %v6729_v7 = vld [vmem:[#allocation2 + $0x8] sm:$0xff]  ;;  %v7469_v49 = vmov 1   ;;  %p3896_p12 = scmp.ne.s32.totalorder %s4747_s21, 1 }
 0xf04   : > { %4441 = vset.pattern.permute.xlu0 %v7464_v0  ;;  %4442 = vset.pattern.permute.xlu1 %v7464_v0  ;;  %v7467_v34 = vld [vmem:[#allocation47_spill] sm:$0xff]  ;;  %v7468_v41 = vld [vmem:[#allocation48_spill] sm:$0xff]  ;;  %v6732_v36 = vld [vmem:[#allocation2 + $0x10] sm:$0xff]  ;;  %s4785_s21 = smov (!%p3896_p12), 5   ;;  %s4786_s27 = smov (!%p3896_p12), 125  }
 0xf05   : > { %v6722_v48 = vld [vmem:[#allocation2] sm:$0xff]  ;;  %v6737_v35 = vld [vmem:[#allocation2 + $0x18] sm:$0xff]  ;;  %v6746_v5 = vld [vmem:[#allocation2 + $0x28] sm:$0xff]  ;;  %s4787_s29 = smov (!%p3896_p12), 122   ;;  %s4788_s10 = smov (!%p3896_p12), 4  }
 0xf06   : > { %v6754_v60 = vld [vmem:[#allocation2 + $0x20] sm:$0xff]  ;;  %s4789_s20 = smov (!%p3896_p12), 119   ;;  %s4790_s1 = smov (!%p3896_p12), 126  }
 0xf07   : > { %2762 = vmax.xlane.f32.xlu0 %v6163_v15  ;;  %2766 = vmax.xlane.f32.xlu1 %v6180_v44  ;;  %s4791_s11 = smov (!%p3896_p12), 127  }
 0xf09   : > { %v6764_v23 = vld [vmem:[#allocation2 + $0x30] sm:$0xff]  ;;  %v6770_v24 = vld [vmem:[#allocation2 + $0x38] sm:$0xff] }
 0xf0b   : > { %2768 = vmax.xlane.f32.xlu0 %v7465_v21  ;;  %2770 = vmax.xlane.f32.xlu1 %v7466_v38 }
 0xf0f   : > { %2772 = vmax.xlane.f32.xlu0 %v7467_v34  ;;  %2774 = vmax.xlane.f32.xlu1 %v7468_v41 }
 0xf25   : > { %2816 = vrot.lane.b32.xlu0 %v6722_v48, %s4775_s26 }
 0xf90   : > { %v2761_v14 = vpop.xlane.xlu0 %2760  ;;  %v2765_v22 = vpop.xlane.xlu1 %2764 }
 0xf91   : > { %v6727_v2 = vmax.f32 %v6722_v48, %v2761_v14  ;;  %v6741_v47 = vmax.f32 %v6732_v36, %v2765_v22  ;;  %v7471_v14 = vld [vmem:[#allocation49_spill] sm:$0xff]  ;;  %v7473_v22 = vld [vmem:[#allocation50_spill] sm:$0xff] }
 0xf93   : > { %2850 = vperm.xlu0 %4441, %v6727_v2  }
 0xf94   : > { %v2763_v19 = vpop.xlane.xlu0 %2762  ;;  %v2767_v50 = vpop.xlane.xlu1 %2766 }
 0xf95   : > { %v6735_v54 = vmax.f32 %v6729_v7, %v2763_v19  ;;  %v6750_v4 = vmax.f32 %v6737_v35, %v2767_v50  ;;  %v2784_v19 = vsub.f32 %v6722_v48, %v6727_v2 }
 0xf97   : > { %2855 = vperm.xlu1 %4442, %v6735_v54   ;;  %2822 = vrot.lane.b32.xlu0 %v6737_v35, %s4775_s26  ;;  %v2792_v50 = vmul.f32 1.442695, %v2784_v19 }
 0xf98   : > { %4444 = vset.pattern.permute.xlu0 %v7469_v49  ;;  %v2769_v18 = vpop.xlane.xlu0 %2768  ;;  %v2771_v8 = vpop.xlane.xlu1 %2770 }
 0xf99   : > { %v6757_v27 = vmax.f32 %v6754_v60, %v2769_v18  ;;  %v6762_v58 = vmax.f32 %v6746_v5, %v2771_v8 }
 0xf9b   : > { %2860 = vperm.xlu1 %4442, %v6741_v47   ;;  %2826 = vrot.lane.b32.xlu0 %v6746_v5, %s4775_s26  ;;  %v2788_v48 = vsub.f32 %v6754_v60, %v6757_v27 }
 0xf9c   : > { %v2773_v43 = vpop.xlane.xlu0 %2772  ;;  %v2775_v63 = vpop.xlane.xlu1 %2774 }
 0xf9d   : > { %v6767_v61 = vmax.f32 %v6764_v23, %v2773_v43  ;;  %v6774_v31 = vmax.f32 %v6770_v24, %v2775_v63  ;;  %v2786_v43 = vsub.f32 %v6732_v36, %v6741_v47 }
 0xf9f   : > { %2865 = vperm.xlu1 %4442, %v6750_v4  }
 0xfa0   : > { %v6784_v26 = vpop.permute.xlu0 %2816 }
 0xfa3   : > { %2870 = vperm.xlu1 %4442, %v6757_v27  }
 0xfa7   : > { %2875 = vperm.xlu1 %4442, %v6762_v58  }
 0xfab   : > { %2880 = vperm.xlu1 %4442, %v6767_v61  }
 0xfaf   : > { %2885 = vperm.xlu1 %4442, %v6774_v31  }
 0xfb3   : > { %2818 = vrot.lane.b32.xlu1 %v6729_v7, %s4775_s26 }
 0xfb4   : > { %4443 = vset.pattern.permute.xlu1 %v7469_v49  ;;  %v2785_v49 = vsub.f32 %v6729_v7, %v6735_v54 }
 0xfb6   : > { %v2794_v8 = vmul.f32 1.442695, %v2785_v49 }
 0xfb7   : > { %2820 = vrot.lane.b32.xlu1 %v6732_v36, %s4775_s26  ;;  %v2789_v36 = vsub.f32 %v6746_v5, %v6762_v58  ;;  %v2791_v5 = vsub.f32 %v6770_v24, %v6774_v31 }
 0xfbb   : > { %2824 = vrot.lane.b32.xlu1 %v6754_v60, %s4775_s26 }
0x1012   : > { %v2851_v51 = vpop.permute.xlu0 %2850 }
0x1013   : > { %v2888_v32 = vsub.f32 %v6157_v29, %v2851_v51  ;;  %v2796_v51 = vmul.f32 1.442695, %v2786_v43 }
0x1015   : > { %v2896_v30 = vmul.f32 1.442695, %v2888_v32  ;;  %v2787_v32 = vsub.f32 %v6737_v35, %v6750_v4 }
0x1016   : > { %v2856_v6 = vpop.permute.xlu1 %2855 }
0x1017   : > { %4445 = vpow2.f32 %v2896_v30  ;;  %v2889_v59 = vsub.f32 %v6163_v15, %v2856_v6  ;;  %v2823_v30 = vpop.permute.xlu0 %2822 }
0x1019   : > { %v2898_v39 = vmul.f32 1.442695, %v2889_v59  ;;  %v2798_v59 = vmul.f32 1.442695, %v2787_v32 }
0x101a   : > { %v2861_v12 = vpop.permute.xlu1 %2860 }
0x101b   : > { %4447 = vpow2.f32 %v2898_v39  ;;  %v2890_v57 = vsub.f32 %v6171_v28, %v2861_v12  ;;  %v2800_v12 = vmul.f32 1.442695, %v2788_v48 }
0x101d   : > { %v2900_v16 = vmul.f32 1.442695, %v2890_v57  ;;  %v2827_v57 = vpop.permute.xlu0 %2826 }
0x101e   : > { %v2866_v55 = vpop.permute.xlu1 %2865 }
0x101f   : > { %4449 = vpow2.f32 %v2900_v16  ;;  %v2891_v37 = vsub.f32 %v6180_v44, %v2866_v55 }
0x1021   : > { %v4446_v17 = vpop.eup %4445  ;;  %v2902_v1 = vmul.f32 1.442695, %v2891_v37 }
0x1022   : > { %v2871_v42 = vpop.permute.xlu1 %2870  ;;  %2912 = vadd.xlane.f32.xlu1 %v4446_v17  ;;  %v2802_v17 = vmul.f32 1.442695, %v2789_v36 }
0x1023   : > { %4451 = vpow2.f32 %v2902_v1  ;;  %v2892_v29 = vsub.f32 %v7465_v21, %v2871_v42 }
0x1025   : > { %v4448_v33 = vpop.eup %4447  ;;  %v2904_v10 = vmul.f32 1.442695, %v2892_v29 }
0x1026   : > { %v2876_v15 = vpop.permute.xlu1 %2875  ;;  %2914 = vadd.xlane.f32.xlu0 %v4448_v33 }
0x1027   : > { %4453 = vpow2.f32 %v2904_v10  ;;  %v2893_v3 = vsub.f32 %v7466_v38, %v2876_v15 }
0x1029   : > { %v4450_v28 = vpop.eup %4449  ;;  %v2906_v25 = vmul.f32 1.442695, %v2893_v3 }
0x102a   : > { %v2881_v40 = vpop.permute.xlu1 %2880  ;;  %2916 = vadd.xlane.f32.xlu0 %v4450_v28 }
0x102b   : > { %4455 = vpow2.f32 %v2906_v25  ;;  %v2894_v44 = vsub.f32 %v7467_v34, %v2881_v40  ;;  %v7470_v34 = vld [vmem:[#allocation22_spill] sm:$0xff]  ;;  %v2790_v40 = vsub.f32 %v6764_v23, %v6767_v61 }
0x102d   : > { %v4452_v46 = vpop.eup %4451  ;;  %v2908_v45 = vmul.f32 1.442695, %v2894_v44  ;;  %v2806_v44 = vmul.f32 1.442695, %v2791_v5 }
0x102e   : > { %v2886_v13 = vpop.permute.xlu1 %2885  ;;  %2918 = vadd.xlane.f32.xlu1 %v4452_v46 }
0x102f   : > { %4457 = vpow2.f32 %v2908_v45  ;;  %v2895_v56 = vsub.f32 %v7468_v41, %v2886_v13  ;;  %v7472_v41 = vld [vmem:[#allocation23_spill] sm:$0xff] }
0x1031   : > { %v4454_v52 = vpop.eup %4453  ;;  %v2910_v9 = vmul.f32 1.442695, %v2895_v56 }
0x1032   : > { %2920 = vadd.xlane.f32.xlu0 %v4454_v52  ;;  %v2819_v18 = vpop.permute.xlu1 %2818  ;;  %v2804_v52 = vmul.f32 1.442695, %v2790_v40 }
0x1033   : > { %4459 = vpow2.f32 %v2910_v9 }
0x1034   : > { %4461 = vpow2.f32 %v2792_v50 }
0x1035   : > { %v4456_v0 = vpop.eup %4455  ;;  %4463 = vpow2.f32 %v2794_v8 }
0x1036   : > { %2922 = vadd.xlane.f32.xlu1 %v4456_v0  ;;  %v2821_v63 = vpop.permute.xlu1 %2820  ;;  %4465 = vpow2.f32 %v2796_v51 }
0x1037   : > { %4467 = vpow2.f32 %v2798_v59 }
0x1038   : > { %4469 = vpow2.f32 %v2800_v12 }
0x1039   : > { %v4458_v21 = vpop.eup %4457  ;;  %4471 = vpow2.f32 %v2802_v17 }
0x103a   : > { %2924 = vadd.xlane.f32.xlu0 %v4458_v21  ;;  %v2825_v7 = vpop.permute.xlu1 %2824  ;;  %4473 = vpow2.f32 %v2806_v44 }
0x103b   : > { %4475 = vpow2.f32 %v2804_v52 }
0x103d   : > { %v4460_v38 = vpop.eup %4459 }
0x103e   : > { %2926 = vadd.xlane.f32.xlu1 %v4460_v38  ;;  %v4462_v6 = vpop.eup %4461 }
0x103f   : > { %v2840_v39 = vmul.f32 %v4462_v6, %v6784_v26  ;;  %v4464_v37 = vpop.eup %4463 }
0x1040   : > { %v2841_v35 = vmul.f32 %v4464_v37, %v2819_v18  ;;  %v4466_v42 = vpop.eup %4465 }
0x1041   : > { %v2842_v29 = vmul.f32 %v4466_v42, %v2821_v63  ;;  %v4468_v10 = vpop.eup %4467 }
0x1042   : > { %v2843_v15 = vmul.f32 %v4468_v10, %v2823_v30  ;;  %v4470_v25 = vpop.eup %4469 }
0x1043   : > { %v2844_v46 = vmul.f32 %v4470_v25, %v2825_v7  ;;  %v4472_v56 = vpop.eup %4471 }
0x1044   : > { %v2845_v9 = vmul.f32 %v4472_v56, %v2827_v57  ;;  %v4474_v38 = vpop.eup %4473 }
0x1045   : > { %v4476_v18 = vpop.eup %4475 }
0x104f   : > { %2828 = vrot.lane.b32.xlu1 %v6764_v23, %s4775_s26 }
0x1050   : > { %2830 = vrot.lane.b32.xlu0 %v6770_v24, %s4775_s26 }
0x106f   : > { %2994 = vmax.xlane.f32.xlu0 %v7470_v34 }
0x1073   : > { %2996 = vmax.xlane.f32.xlu0 %v7471_v14  ;;  %2992 = vmax.xlane.f32.xlu1 %v7472_v41 }
0x1077   : > { %3000 = vmax.xlane.f32.xlu0 %v6177_v62  ;;  %2998 = vmax.xlane.f32.xlu1 %v7473_v22 }
0x107b   : > { %3004 = vmax.xlane.f32.xlu0 %v6198_v20  ;;  %3002 = vmax.xlane.f32.xlu1 %v6184_v53 }
0x107f   : > { %3006 = vmax.xlane.f32.xlu1 %v6217_v11 }
0x10af   : > { %v2913_v16 = vpop.xlane.xlu1 %2912 }
0x10b0   : > { %v2928_v55 = vadd.f32 %v2913_v16, %v2840_v39 }
0x10b2   : > { %2944 = vrot.lane.b32.xlu0 %v2928_v55, %s4776_s0 }
0x10b3   : > { %v2915_v1 = vpop.xlane.xlu0 %2914 }
0x10b4   : > { %v2929_v60 = vadd.f32 %v2915_v1, %v2841_v35 }
0x10b6   : > { %2946 = vrot.lane.b32.xlu1 %v2929_v60, %s4776_s0 }
0x10b7   : > { %v2917_v26 = vpop.xlane.xlu0 %2916 }
0x10b8   : > { %v2930_v33 = vadd.f32 %v2917_v26, %v2842_v29 }
0x10ba   : > { %2948 = vrot.lane.b32.xlu1 %v2930_v33, %s4776_s0 }
0x10bb   : > { %v2919_v3 = vpop.xlane.xlu1 %2918 }
0x10bc   : > { %v2931_v28 = vadd.f32 %v2919_v3, %v2843_v15 }
0x10be   : > { %2950 = vrot.lane.b32.xlu0 %v2931_v28, %s4776_s0 }
0x10bf   : > { %v2921_v45 = vpop.xlane.xlu0 %2920 }
0x10c0   : > { %v2932_v13 = vadd.f32 %v2921_v45, %v2844_v46 }
0x10c2   : > { %2952 = vrot.lane.b32.xlu1 %v2932_v13, %s4776_s0 }
0x10c3   : > { %v2923_v24 = vpop.xlane.xlu1 %2922 }
0x10c4   : > { %v2933_v0 = vadd.f32 %v2923_v24, %v2845_v9 }
0x10c6   : > { %2954 = vrot.lane.b32.xlu0 %v2933_v0, %s4776_s0 }
0x10c7   : > { %v2925_v21 = vpop.xlane.xlu0 %2924 }
0x10cb   : > { %v2927_v23 = vpop.xlane.xlu1 %2926  ;;  %v2831_v19 = vpop.permute.xlu0 %2830 }
0x10cc   : > { %v2847_v50 = vmul.f32 %v4474_v38, %v2831_v19 }
0x10ce   : > { %v2935_v49 = vadd.f32 %v2927_v23, %v2847_v50 }
0x10cf   : > { %v2829_v8 = vpop.permute.xlu1 %2828 }
0x10d0   : > { %v2846_v43 = vmul.f32 %v4476_v18, %v2829_v8  ;;  %2958 = vrot.lane.b32.xlu0 %v2935_v49, %s4776_s0 }
0x10d2   : > { %v2934_v63 = vadd.f32 %v2925_v21, %v2846_v43 }
0x10d4   : > { %2956 = vrot.lane.b32.xlu1 %v2934_v63, %s4776_s0 }
0x10fc   : > { %v2995_v51 = vpop.xlane.xlu0 %2994 }
0x1100   : > { %v2993_v32 = vpop.xlane.xlu1 %2992  ;;  %v2997_v30 = vpop.xlane.xlu0 %2996 }
0x1104   : > { %v2999_v6 = vpop.xlane.xlu1 %2998  ;;  %v3001_v48 = vpop.xlane.xlu0 %3000 }
0x1108   : > { %v3003_v59 = vpop.xlane.xlu1 %3002  ;;  %v3005_v7 = vpop.xlane.xlu0 %3004 }
0x110c   : > { %v3007_v39 = vpop.xlane.xlu1 %3006 }
0x1124   : > { %v2945_v12 = vpop.permute.xlu0 %2944 }
0x1125   : > { %2968 = vst.msk [vmem:[#allocation2] sm:$0xff] %vm1572_vm0, %v2945_v12 }
0x1126   : > { %2976 = vst.msk [vmem:[#allocation2] sm:$0xff] %vm1581_vm5, %v6727_v2 }
0x1128   : > { %v2947_v36 = vpop.permute.xlu1 %2946 }
0x1129   : > { %2969 = vst.msk [vmem:[#allocation2 + $0x8] sm:$0xff] %vm1572_vm0, %v2947_v36 }
0x112a   : > { %2977 = vst.msk [vmem:[#allocation2 + $0x8] sm:$0xff] %vm1581_vm5, %v6735_v54 }
0x112c   : > { %v2949_v57 = vpop.permute.xlu1 %2948 }
0x112d   : > { %2970 = vst.msk [vmem:[#allocation2 + $0x10] sm:$0xff] %vm1572_vm0, %v2949_v57  ;;  %v6838_v16 = vld [vmem:[#allocation2] sm:$0xff] }
0x112e   : > { %2978 = vst.msk [vmem:[#allocation2 + $0x10] sm:$0xff] %vm1581_vm5, %v6741_v47  ;;  %v6843_v55 = vmax.f32 %v6838_v16, %v2993_v32 }
0x1130   : > { %3082 = vperm.xlu1 %4443, %v6843_v55   ;;  %v2951_v2 = vpop.permute.xlu0 %2950 }
0x1131   : > { %2971 = vst.msk [vmem:[#allocation2 + $0x18] sm:$0xff] %vm1572_vm0, %v2951_v2  ;;  %v6847_v37 = vld [vmem:[#allocation2 + $0x8] sm:$0xff] }
0x1132   : > { %2979 = vst.msk [vmem:[#allocation2 + $0x18] sm:$0xff] %vm1581_vm5, %v6750_v4  ;;  %v6852_v54 = vmax.f32 %v6847_v37, %v2995_v51 }
0x1134   : > { %v2953_v35 = vpop.permute.xlu1 %2952  ;;  %3087 = vperm.xlu0 %4444, %v6852_v54  }
0x1135   : > { %2972 = vst.msk [vmem:[#allocation2 + $0x20] sm:$0xff] %vm1572_vm0, %v2953_v35  ;;  %v6856_v47 = vld [vmem:[#allocation2 + $0x10] sm:$0xff] }
0x1136   : > { %2980 = vst.msk [vmem:[#allocation2 + $0x20] sm:$0xff] %vm1581_vm5, %v6757_v27  ;;  %v6861_v17 = vmax.f32 %v6856_v47, %v2997_v30 }
0x1138   : > { %3092 = vperm.xlu1 %4443, %v6861_v17   ;;  %v2955_v1 = vpop.permute.xlu0 %2954 }
0x1139   : > { %2973 = vst.msk [vmem:[#allocation2 + $0x28] sm:$0xff] %vm1572_vm0, %v2955_v1  ;;  %v6865_v4 = vld [vmem:[#allocation2 + $0x18] sm:$0xff] }
0x113a   : > { %2981 = vst.msk [vmem:[#allocation2 + $0x28] sm:$0xff] %vm1581_vm5, %v6762_v58  ;;  %v6870_v60 = vmax.f32 %v6865_v4, %v2999_v6 }
0x113c   : > { %3097 = vperm.xlu1 %4443, %v6870_v60   ;;  %v3019_v36 = vsub.f32 %v6865_v4, %v6870_v60 }
0x113d   : > { %v6873_v42 = vld [vmem:[#allocation2 + $0x20] sm:$0xff] }
0x113e   : > { %v6876_v27 = vmax.f32 %v6873_v42, %v3001_v48 }
0x1140   : > { %3102 = vperm.xlu0 %4444, %v6876_v27   ;;  %v3020_v2 = vsub.f32 %v6873_v42, %v6876_v27 }
0x1141   : > { %v6879_v29 = vld [vmem:[#allocation2 + $0x28] sm:$0xff] }
0x1142   : > { %v2959_v26 = vpop.permute.xlu0 %2958  ;;  %v6882_v33 = vmax.f32 %v6879_v29, %v3003_v59  ;;  %v3018_v59 = vsub.f32 %v6856_v47, %v6861_v17 }
0x1143   : > { %2975 = vst.msk [vmem:[#allocation2 + $0x38] sm:$0xff] %vm1572_vm0, %v2959_v26  ;;  %v3032_v26 = vmul.f32 1.442695, %v3020_v2 }
0x1144   : > { %2983 = vst.msk [vmem:[#allocation2 + $0x38] sm:$0xff] %vm1581_vm5, %v6774_v31  ;;  %3107 = vperm.xlu1 %4443, %v6882_v33   ;;  %v3028_v12 = vmul.f32 1.442695, %v3018_v59 }
0x1146   : > { %v2957_v58 = vpop.permute.xlu1 %2956 }
0x1147   : > { %2974 = vst.msk [vmem:[#allocation2 + $0x30] sm:$0xff] %vm1572_vm0, %v2957_v58 }
0x1148   : > { %2982 = vst.msk [vmem:[#allocation2 + $0x30] sm:$0xff] %vm1581_vm5, %v6767_v61 }
0x114b   : > { %v6891_v10 = vld [vmem:[#allocation2 + $0x38] sm:$0xff] }
0x114c   : > { %v6894_v5 = vmax.f32 %v6891_v10, %v3007_v39 }
0x114e   : > { %3117 = vperm.xlu1 %4443, %v6894_v5  }
0x114f   : > { %v6897_v15 = vld [vmem:[#allocation2 + $0x30] sm:$0xff] }
0x1150   : > { %v6900_v3 = vmax.f32 %v6897_v15, %v3005_v7 }
0x1152   : > { %3112 = vperm.xlu0 %4444, %v6900_v3   ;;  %3048 = vrot.lane.b32.xlu1 %v6838_v16, %s4775_s26 }
0x1156   : > { %3050 = vrot.lane.b32.xlu0 %v6847_v37, %s4775_s26  ;;  %3052 = vrot.lane.b32.xlu1 %v6856_v47, %s4775_s26  ;;  %v3021_v47 = vsub.f32 %v6879_v29, %v6882_v33 }
0x115a   : > { %3056 = vrot.lane.b32.xlu0 %v6873_v42, %s4775_s26  ;;  %3054 = vrot.lane.b32.xlu1 %v6865_v4, %s4775_s26  ;;  %v3034_v4 = vmul.f32 1.442695, %v3021_v47 }
0x115e   : > { %3058 = vrot.lane.b32.xlu1 %v6879_v29, %s4775_s26 }
0x11af   : > { %v3083_v61 = vpop.permute.xlu1 %3082 }
0x11b0   : > { %v3120_v31 = vsub.f32 %v7472_v41, %v3083_v61 }
0x11b2   : > { %v3128_v28 = vmul.f32 1.442695, %v3120_v31 }
0x11b3   : > { %v3088_v25 = vpop.permute.xlu0 %3087 }
0x11b4   : > { %4477 = vpow2.f32 %v3128_v28  ;;  %v3121_v40 = vsub.f32 %v7470_v34, %v3088_v25 }
0x11b6   : > { %v3130_v44 = vmul.f32 1.442695, %v3121_v40 }
0x11b7   : > { %v3093_v46 = vpop.permute.xlu1 %3092 }
0x11b8   : > { %4479 = vpow2.f32 %v3130_v44  ;;  %v3122_v45 = vsub.f32 %v7471_v14, %v3093_v46 }
0x11ba   : > { %v3132_v13 = vmul.f32 1.442695, %v3122_v45 }
0x11bb   : > { %v3098_v56 = vpop.permute.xlu1 %3097 }
0x11bc   : > { %4481 = vpow2.f32 %v3132_v13  ;;  %v3123_v52 = vsub.f32 %v7473_v22, %v3098_v56 }
0x11be   : > { %v4478_v9 = vpop.eup %4477  ;;  %v3134_v24 = vmul.f32 1.442695, %v3123_v52 }
0x11bf   : > { %3144 = vadd.xlane.f32.xlu0 %v4478_v9  ;;  %v3103_v0 = vpop.permute.xlu0 %3102 }
0x11c0   : > { %4483 = vpow2.f32 %v3134_v24  ;;  %v3124_v41 = vsub.f32 %v6177_v62, %v3103_v0 }
0x11c2   : > { %v4480_v21 = vpop.eup %4479  ;;  %v3136_v38 = vmul.f32 1.442695, %v3124_v41  ;;  %v3022_v41 = vsub.f32 %v6897_v15, %v6900_v3 }
0x11c3   : > { %v3108_v34 = vpop.permute.xlu1 %3107  ;;  %3146 = vadd.xlane.f32.xlu1 %v4480_v21 }
0x11c4   : > { %4485 = vpow2.f32 %v3136_v38  ;;  %v3125_v23 = vsub.f32 %v6184_v53, %v3108_v34 }
0x11c6   : > { %v4482_v14 = vpop.eup %4481  ;;  %v3138_v19 = vmul.f32 1.442695, %v3125_v23 }
0x11c7   : > { %3148 = vadd.xlane.f32.xlu0 %v4482_v14  ;;  %v3023_v14 = vsub.f32 %v6891_v10, %v6894_v5 }
0x11c8   : > { %4487 = vpow2.f32 %v3138_v19  ;;  %v3036_v19 = vmul.f32 1.442695, %v3022_v41 }
0x11ca   : > { %v4484_v50 = vpop.eup %4483 }
0x11cb   : > { %3150 = vadd.xlane.f32.xlu0 %v4484_v50 }
0x11cd   : > { %v3118_v22 = vpop.permute.xlu1 %3117 }
0x11ce   : > { %v4486_v49 = vpop.eup %4485  ;;  %v3127_v18 = vsub.f32 %v6217_v11, %v3118_v22  ;;  %v3016_v11 = vsub.f32 %v6838_v16, %v6843_v55  ;;  %v3030_v16 = vmul.f32 1.442695, %v3019_v36 }
0x11cf   : > { %3152 = vadd.xlane.f32.xlu1 %v4486_v49  ;;  %v3038_v49 = vmul.f32 1.442695, %v3023_v14 }
0x11d0   : > { %v3142_v8 = vmul.f32 1.442695, %v3127_v18  ;;  %v3024_v6 = vmul.f32 1.442695, %v3016_v11 }
0x11d1   : > { %v3113_v62 = vpop.permute.xlu0 %3112  ;;  %v3049_v30 = vpop.permute.xlu1 %3048 }
0x11d2   : > { %v4488_v43 = vpop.eup %4487  ;;  %4489 = vpow2.f32 %v3142_v8  ;;  %v3126_v63 = vsub.f32 %v6198_v20, %v3113_v62  ;;  %v3017_v20 = vsub.f32 %v6847_v37, %v6852_v54 }
0x11d3   : > { %3154 = vadd.xlane.f32.xlu0 %v4488_v43 }
0x11d4   : > { %v3140_v51 = vmul.f32 1.442695, %v3126_v63  ;;  %v3026_v48 = vmul.f32 1.442695, %v3017_v20 }
0x11d5   : > { %v3053_v7 = vpop.permute.xlu1 %3052  ;;  %v3051_v39 = vpop.permute.xlu0 %3050 }
0x11d6   : > { %4491 = vpow2.f32 %v3140_v51 }
0x11d7   : > { %4493 = vpow2.f32 %v3024_v6 }
0x11d8   : > { %4495 = vpow2.f32 %v3026_v48 }
0x11d9   : > { %v3055_v57 = vpop.permute.xlu1 %3054  ;;  %4497 = vpow2.f32 %v3028_v12  ;;  %v3057_v35 = vpop.permute.xlu0 %3056 }
0x11da   : > { %4499 = vpow2.f32 %v3030_v16 }
0x11db   : > { %4501 = vpow2.f32 %v3032_v26 }
0x11dc   : > { %v4490_v53 = vpop.eup %4489  ;;  %4503 = vpow2.f32 %v3034_v4 }
0x11dd   : > { %3158 = vadd.xlane.f32.xlu0 %v4490_v53  ;;  %v3059_v58 = vpop.permute.xlu1 %3058  ;;  %4505 = vpow2.f32 %v3036_v19 }
0x11de   : > { %4507 = vpow2.f32 %v3038_v49 }
0x11e0   : > { %v4492_v32 = vpop.eup %4491 }
0x11e1   : > { %3156 = vadd.xlane.f32.xlu1 %v4492_v32  ;;  %v4494_v37 = vpop.eup %4493 }
0x11e2   : > { %v3072_v1 = vmul.f32 %v4494_v37, %v3049_v30  ;;  %v4496_v28 = vpop.eup %4495 }
0x11e3   : > { %v3073_v25 = vmul.f32 %v4496_v28, %v3051_v39  ;;  %v4498_v42 = vpop.eup %4497 }
0x11e4   : > { %v3074_v46 = vmul.f32 %v4498_v42, %v3053_v7  ;;  %v4500_v56 = vpop.eup %4499 }
0x11e5   : > { %v3075_v29 = vmul.f32 %v4500_v56, %v3055_v57  ;;  %v4502_v24 = vpop.eup %4501 }
0x11e6   : > { %v3076_v0 = vmul.f32 %v4502_v24, %v3057_v35  ;;  %v4504_v34 = vpop.eup %4503 }
0x11e7   : > { %v3077_v23 = vmul.f32 %v4504_v34, %v3059_v58  ;;  %v4506_v8 = vpop.eup %4505 }
0x11e8   : > { %v4508_v51 = vpop.eup %4507 }
0x11f2   : > { %3062 = vrot.lane.b32.xlu1 %v6891_v10, %s4775_s26 }
0x11f3   : > { %3060 = vrot.lane.b32.xlu0 %v6897_v15, %s4775_s26 }
0x124c   : > { %v3145_v61 = vpop.xlane.xlu0 %3144 }
0x124d   : > { %v3160_v31 = vadd.f32 %v3145_v61, %v3072_v1 }
0x124f   : > { %3176 = vrot.lane.b32.xlu0 %v3160_v31, %s4776_s0 }
0x1250   : > { %v3147_v40 = vpop.xlane.xlu1 %3146 }
0x1251   : > { %v3161_v44 = vadd.f32 %v3147_v40, %v3073_v25 }
0x1253   : > { %3178 = vrot.lane.b32.xlu1 %v3161_v44, %s4776_s0 }
0x1254   : > { %v3149_v45 = vpop.xlane.xlu0 %3148 }
0x1255   : > { %v3162_v13 = vadd.f32 %v3149_v45, %v3074_v46 }
0x1257   : > { %3180 = vrot.lane.b32.xlu0 %v3162_v13, %s4776_s0 }
0x1258   : > { %v3151_v52 = vpop.xlane.xlu0 %3150 }
0x1259   : > { %v3163_v9 = vadd.f32 %v3151_v52, %v3075_v29 }
0x125b   : > { %3182 = vrot.lane.b32.xlu1 %v3163_v9, %s4776_s0 }
0x125c   : > { %v3153_v21 = vpop.xlane.xlu1 %3152 }
0x125d   : > { %v3164_v38 = vadd.f32 %v3153_v21, %v3076_v0 }
0x125f   : > { %3184 = vrot.lane.b32.xlu0 %v3164_v38, %s4776_s0 }
0x1260   : > { %v3155_v50 = vpop.xlane.xlu0 %3154 }
0x1261   : > { %v3165_v22 = vadd.f32 %v3155_v50, %v3077_v23 }
0x1263   : > { %3186 = vrot.lane.b32.xlu1 %v3165_v22, %s4776_s0 }
0x126a   : > { %v3159_v18 = vpop.xlane.xlu0 %3158 }
0x126e   : > { %v3157_v15 = vpop.xlane.xlu1 %3156  ;;  %v3061_v62 = vpop.permute.xlu0 %3060 }
0x126f   : > { %v3078_v43 = vmul.f32 %v4506_v8, %v3061_v62 }
0x1271   : > { %v3166_v63 = vadd.f32 %v3157_v15, %v3078_v43 }
0x1272   : > { %v3063_v53 = vpop.permute.xlu1 %3062 }
0x1273   : > { %v3079_v32 = vmul.f32 %v4508_v51, %v3063_v53  ;;  %3188 = vrot.lane.b32.xlu0 %v3166_v63, %s4776_s0 }
0x1275   : > { %v3167_v10 = vadd.f32 %v3159_v18, %v3079_v32 }
0x1277   : > { %3190 = vrot.lane.b32.xlu1 %v3167_v10, %s4776_s0 }
0x12c1   : > { %v3177_v11 = vpop.permute.xlu0 %3176 }
0x12c2   : > { %3200 = vst.msk [vmem:[#allocation2] sm:$0xff] %vm1806_vm6, %v3177_v11 }
0x12c3   : > { %3208 = vst.msk [vmem:[#allocation2] sm:$0xff] %vm1815_vm7, %v6843_v55 }
0x12c5   : > { %v3179_v30 = vpop.permute.xlu1 %3178 }
0x12c6   : > { %3201 = vst.msk [vmem:[#allocation2 + $0x8] sm:$0xff] %vm1806_vm6, %v3179_v30 }
0x12c7   : > { %3209 = vst.msk [vmem:[#allocation2 + $0x8] sm:$0xff] %vm1815_vm7, %v6852_v54 }
0x12c9   : > { %v3181_v6 = vpop.permute.xlu0 %3180 }
0x12ca   : > { %3202 = vst.msk [vmem:[#allocation2 + $0x10] sm:$0xff] %vm1806_vm6, %v3181_v6 }
0x12cb   : > { %3210 = vst.msk [vmem:[#allocation2 + $0x10] sm:$0xff] %vm1815_vm7, %v6861_v17 }
0x12cd   : > { %v3183_v20 = vpop.permute.xlu1 %3182 }
0x12ce   : > { %3203 = vst.msk [vmem:[#allocation2 + $0x18] sm:$0xff] %vm1806_vm6, %v3183_v20  ;;  %v6983_v59 = vld [vmem:[#allocation2 + $0x8] sm:$0xff] (!%p3896_p12) }
0x12cf   : > { %3211 = vst.msk [vmem:[#allocation2 + $0x18] sm:$0xff] %vm1815_vm7, %v6870_v60 }
0x12d1   : > { %v3185_v48 = vpop.permute.xlu0 %3184 }
0x12d2   : > { %3204 = vst.msk [vmem:[#allocation2 + $0x20] sm:$0xff] %vm1806_vm6, %v3185_v48  ;;  %v6976_v60 = vld [vmem:[#allocation2 + $0x10] sm:$0xff] (!%p3896_p12) }
0x12d3   : > { %3212 = vst.msk [vmem:[#allocation2 + $0x20] sm:$0xff] %vm1815_vm7, %v6876_v27  ;;  %v6978_v27 = vld [vmem:[#allocation2] sm:$0xff] (!%p3896_p12)  ;;  %4509 = vrcp.f32 (!%p3896_p12), %v6976_v60 }
0x12d4   : > { %4511 = vrcp.f32 (!%p3896_p12), %v6978_v27 }
0x12d5   : > { %v3187_v55 = vpop.permute.xlu1 %3186 }
0x12d6   : > { %3205 = vst.msk [vmem:[#allocation2 + $0x28] sm:$0xff] %vm1806_vm6, %v3187_v55 }
0x12d7   : > { %3213 = vst.msk [vmem:[#allocation2 + $0x28] sm:$0xff] %vm1815_vm7, %v6882_v33  ;;  %v6980_v33 = vld [vmem:[#allocation2 + $0x18] sm:$0xff] (!%p3896_p12) }
0x12d8   : > { %4513 = vrcp.f32 (!%p3896_p12), %v6980_v33 }
0x12d9   : > { %4515 = vrcp.f32 (!%p3896_p12), %v6983_v59 }
0x12dd   : > { %v4510_v12 = vpop.eup (!%p3896_p12), %4509 }
0x12de   : > { %v4512_v36 = vpop.eup (!%p3896_p12), %4511  ;;  %3424 = vrot.lane.b32.xlu1 (!%p3896_p12), %v4510_v12, %s4785_s21 }
0x12df   : > { %3420 = vrot.lane.b32.xlu0 (!%p3896_p12), %v4512_v36, %s4785_s21 }
0x12e2   : > { %v4514_v57 = vpop.eup (!%p3896_p12), %4513 }
0x12e3   : > { %v4516_v16 = vpop.eup (!%p3896_p12), %4515  ;;  %3426 = vrot.lane.b32.xlu1 (!%p3896_p12), %v4514_v57, %s4785_s21 }
0x12e4   : > { %3422 = vrot.lane.b32.xlu0 (!%p3896_p12), %v4516_v16, %s4785_s21 }
0x12e5   : > { %v3189_v54 = vpop.permute.xlu0 %3188  ;;  %3219 = sbr.rel (%p3896_p12) target bundleno = 5223 (0x1467), region = 76 }
0x12e6   : > { %3206 = vst.msk [vmem:[#allocation2 + $0x30] sm:$0xff] %vm1806_vm6, %v3189_v54 }
0x12e7   : > { %3214 = vst.msk [vmem:[#allocation2 + $0x30] sm:$0xff] %vm1815_vm7, %v6900_v3  ;;  %v6990_v3 = vld [vmem:[#allocation2 + $0x20] sm:$0xff] (!%p3896_p12) }
0x12e9   : > { %v3191_v17 = vpop.permute.xlu1 %3190 }
0x12ea   : > { %3207 = vst.msk [vmem:[#allocation2 + $0x38] sm:$0xff] %vm1806_vm6, %v3191_v17 }
0x12eb   : > { %3215 = vst.msk [vmem:[#allocation2 + $0x38] sm:$0xff] %vm1815_vm7, %v6894_v5  ;;  %v6988_v5 = vld [vmem:[#allocation2 + $0x28] sm:$0xff] (!%p3896_p12) }
0x12ec   : > { %4517 = vrcp.f32 %v6988_v5 }
0x12ed   : > { %4519 = vrcp.f32 %v6990_v3 }
0x12ee   : > { %v6995_v39 = vld [vmem:[#allocation2 + $0x30] sm:$0xff] }
0x12f2   : > { %v6992_v7 = vld [vmem:[#allocation2 + $0x38] sm:$0xff] }
0x12f3   : > { %4521 = vrcp.f32 %v6992_v7 }
0x12f4   : > { %4523 = vrcp.f32 %v6995_v39 }
0x12f5   : > { %4525 = vlog2.f32 %v6983_v59 }
0x12f6   : > { %4527 = vlog2.f32 %v6978_v27  ;;  %v4518_v2 = vpop.eup %4517 }
0x12f7   : > { %4529 = vlog2.f32 %v6980_v33  ;;  %v4520_v35 = vpop.eup %4519  ;;  %3430 = vrot.lane.b32.xlu1 %v4518_v2, %s4785_s21 }
0x12f8   : > { %4531 = vlog2.f32 %v6976_v60  ;;  %3428 = vrot.lane.b32.xlu0 %v4520_v35, %s4785_s21 }
0x12f9   : > { %4533 = vlog2.f32 %v6988_v5 }
0x12fa   : > { %4535 = vlog2.f32 %v6990_v3 }
0x12fb   : > { %4537 = vlog2.f32 %v6992_v7 }
0x12fc   : > { %4539 = vlog2.f32 %v6995_v39 }
0x12fd   : > { %v4522_v37 = vpop.eup %4521 }
0x12fe   : > { %v4524_v1 = vpop.eup %4523  ;;  %3434 = vrot.lane.b32.xlu1 %v4522_v37, %s4785_s21 }
0x12ff   : > { %v4526_v26 = vpop.eup %4525  ;;  %3432 = vrot.lane.b32.xlu0 %v4524_v1, %s4785_s21 }
0x1300   : > { %v4528_v47 = vpop.eup %4527  ;;  %v3231_v58 = vmul.f32 0.6931472, %v4526_v26 }
0x1301   : > { %v4530_v61 = vpop.eup %4529  ;;  %v3229_v31 = vmul.f32 0.6931472, %v4528_v47 }
0x1302   : > { %v4532_v28 = vpop.eup %4531  ;;  %3254 = vrot.lane.b32.xlu1 %v3231_v58, %s4786_s27  ;;  %v3235_v25 = vmul.f32 0.6931472, %v4530_v61 }
0x1303   : > { %v4534_v4 = vpop.eup %4533  ;;  %3252 = vrot.lane.b32.xlu0 %v3229_v31, %s4786_s27  ;;  %v3233_v40 = vmul.f32 0.6931472, %v4532_v28 }
0x1304   : > { %v4536_v44 = vpop.eup %4535  ;;  %v3239_v42 = vmul.f32 0.6931472, %v4534_v4 }
0x1305   : > { %v4538_v46 = vpop.eup %4537  ;;  %v3237_v45 = vmul.f32 0.6931472, %v4536_v44 }
0x1306   : > { %3258 = vrot.lane.b32.xlu1 %v3235_v25, %s4786_s27  ;;  %v4540_v13 = vpop.eup %4539  ;;  %v3243_v56 = vmul.f32 0.6931472, %v4538_v46 }
0x1307   : > { %3256 = vrot.lane.b32.xlu0 %v3233_v40, %s4786_s27  ;;  %v3241_v29 = vmul.f32 0.6931472, %v4540_v13 }
0x130a   : > { %3262 = vrot.lane.b32.xlu1 %v3239_v42, %s4786_s27 }
0x130b   : > { %3260 = vrot.lane.b32.xlu0 %v3237_v45, %s4786_s27 }
0x130e   : > { %3266 = vrot.lane.b32.xlu1 %v3243_v56, %s4786_s27 }
0x130f   : > { %3264 = vrot.lane.b32.xlu0 %v3241_v29, %s4786_s27 }
0x1312   : > { %3294 = vrot.lane.b32.xlu1 %v6983_v59, %s4787_s29 }
0x1313   : > { %3292 = vrot.lane.b32.xlu0 %v6978_v27, %s4787_s29 }
0x1316   : > { %3298 = vrot.lane.b32.xlu1 %v6980_v33, %s4787_s29 }
0x1317   : > { %3296 = vrot.lane.b32.xlu0 %v6976_v60, %s4787_s29 }
0x131a   : > { %3302 = vrot.lane.b32.xlu1 %v6988_v5, %s4787_s29 }
0x131b   : > { %3300 = vrot.lane.b32.xlu0 %v6990_v3, %s4787_s29 }
0x131e   : > { %3306 = vrot.lane.b32.xlu1 %v6992_v7, %s4787_s29 }
0x131f   : > { %3304 = vrot.lane.b32.xlu0 %v6995_v39, %s4787_s29 }
0x1322   : > { %3350 = vrot.lane.b32.xlu1 %v4516_v16, %s4788_s10 }
0x1323   : > { %3348 = vrot.lane.b32.xlu0 %v4512_v36, %s4788_s10 }
0x1326   : > { %3354 = vrot.lane.b32.xlu1 %v4514_v57, %s4788_s10 }
0x1327   : > { %3352 = vrot.lane.b32.xlu0 %v4510_v12, %s4788_s10 }
0x132a   : > { %3358 = vrot.lane.b32.xlu1 %v4518_v2, %s4788_s10 }
0x132b   : > { %3356 = vrot.lane.b32.xlu0 %v4520_v35, %s4788_s10 }
0x132e   : > { %3362 = vrot.lane.b32.xlu1 %v4522_v37, %s4788_s10 }
0x132f   : > { %3360 = vrot.lane.b32.xlu0 %v4524_v1, %s4788_s10 }
0x1350   : > { %v3425_v52 = vpop.permute.xlu1 %3424 }
0x1351   : > { %v3421_v9 = vpop.permute.xlu0 %3420  ;;  %v3446_v0 = vmul.f32 %v3425_v52, %v6976_v60 }
0x1352   : > { %v3444_v24 = vmul.f32 %v3421_v9, %v6978_v27 }
0x1354   : > { %3460 = vrot.lane.b32.xlu0 %v3444_v24, %s4789_s20 }
0x1355   : > { %v3427_v41 = vpop.permute.xlu1 %3426 }
0x1356   : > { %v3423_v21 = vpop.permute.xlu0 %3422  ;;  %v3447_v34 = vmul.f32 %v3427_v41, %v6980_v33 }
0x1357   : > { %v3445_v38 = vmul.f32 %v3423_v21, %v6983_v59 }
0x1358   : > { %3464 = vrot.lane.b32.xlu0 %v3446_v0, %s4789_s20 }
0x1359   : > { %3462 = vrot.lane.b32.xlu1 %v3445_v38, %s4789_s20 }
0x135d   : > { %3466 = vrot.lane.b32.xlu1 %v3447_v34, %s4789_s20 }
0x1369   : > { %v3431_v23 = vpop.permute.xlu1 %3430 }
0x136a   : > { %v3429_v14 = vpop.permute.xlu0 %3428  ;;  %v3449_v50 = vmul.f32 %v3431_v23, %v6988_v5 }
0x136b   : > { %v3448_v19 = vmul.f32 %v3429_v14, %v6990_v3 }
0x136c   : > { %3470 = vrot.lane.b32.xlu1 %v3449_v50, %s4789_s20 }
0x136d   : > { %3468 = vrot.lane.b32.xlu0 %v3448_v19, %s4789_s20 }
0x1370   : > { %v3435_v22 = vpop.permute.xlu1 %3434 }
0x1371   : > { %v3433_v49 = vpop.permute.xlu0 %3432  ;;  %v3451_v8 = vmul.f32 %v3435_v22, %v6992_v7 }
0x1372   : > { %v3450_v18 = vmul.f32 %v3433_v49, %v6995_v39 }
0x1373   : > { %3474 = vrot.lane.b32.xlu1 %v3451_v8, %s4789_s20 }
0x1374   : > { %3472 = vrot.lane.b32.xlu0 %v3450_v18, %s4789_s20  ;;  %v3255_v15 = vpop.permute.xlu1 %3254 }
0x1375   : > { %v3253_v62 = vpop.permute.xlu0 %3252  ;;  %v7045_v28 = vadd.f32 %v3255_v15, %v6983_v59 }
0x1376   : > { %v7049_v40 = vadd.f32 %v3253_v62, %v6978_v27 }
0x1378   : > { %v3259_v43 = vpop.permute.xlu1 %3258 }
0x1379   : > { %v3257_v63 = vpop.permute.xlu0 %3256  ;;  %v7055_v42 = vadd.f32 %v3259_v43, %v6980_v33 }
0x137c   : > { %v3263_v51 = vpop.permute.xlu1 %3262 }
0x137d   : > { %v3261_v53 = vpop.permute.xlu0 %3260 }
0x137e   : > { %v7075_v13 = vadd.f32 %v3261_v53, %v6990_v3 }
0x1380   : > { %v3267_v32 = vpop.permute.xlu1 %3266 }
0x1381   : > { %v3265_v10 = vpop.permute.xlu0 %3264  ;;  %v7083_v56 = vadd.f32 %v3267_v32, %v6992_v7 }
0x1384   : > { %v3295_v11 = vpop.permute.xlu1 %3294 }
0x1385   : > { %v3293_v30 = vpop.permute.xlu0 %3292  ;;  %v7058_v46 = vsub.f32 %v7045_v28, %v3295_v11 }
0x1386   : > { %v7064_v45 = vsub.f32 %v7049_v40, %v3293_v30 }
0x1388   : > { %v3299_v6 = vpop.permute.xlu1 %3298 }
0x1389   : > { %v3297_v20 = vpop.permute.xlu0 %3296 }
0x138c   : > { %v3303_v48 = vpop.permute.xlu1 %3302 }
0x138d   : > { %v3301_v55 = vpop.permute.xlu0 %3300 }
0x138e   : > { %v7092_v52 = vsub.f32 %v7075_v13, %v3301_v55 }
0x1390   : > { %v3307_v54 = vpop.permute.xlu1 %3306  ;;  %v3536_v21 = vmul.f32 0.1, %v7092_v52 }
0x1391   : > { %v3305_v17 = vpop.permute.xlu0 %3304 }
0x1394   : > { %v3351_v12 = vpop.permute.xlu1 %3350 }
0x1395   : > { %v3373_v36 = vmul.f32 %v3351_v12, %v6983_v59  ;;  %v3349_v57 = vpop.permute.xlu0 %3348  ;;  %v7061_v59 = vadd.f32 %v3257_v63, %v6976_v60 }
0x1396   : > { %v3372_v16 = vmul.f32 %v3349_v57, %v6978_v27  ;;  %v7069_v27 = vadd.f32 %v3263_v51, %v6988_v5 }
0x1397   : > { %3390 = vrot.lane.b32.xlu1 %v3373_v36, %s4789_s20 }
0x1398   : > { %3388 = vrot.lane.b32.xlu0 %v3372_v16, %s4789_s20  ;;  %v3355_v2 = vpop.permute.xlu1 %3354  ;;  %v7086_v29 = vsub.f32 %v7069_v27, %v3303_v48 }
0x1399   : > { %v3375_v35 = vmul.f32 %v3355_v2, %v6980_v33  ;;  %v3353_v37 = vpop.permute.xlu0 %3352  ;;  %v7072_v33 = vsub.f32 %v7055_v42, %v3299_v6 }
0x139a   : > { %v3374_v1 = vmul.f32 %v3353_v37, %v6976_v60  ;;  %v7078_v60 = vsub.f32 %v7061_v59, %v3297_v20  ;;  %v3537_v41 = vmul.f32 0.1, %v7086_v29 }
0x139b   : > { %3394 = vrot.lane.b32.xlu1 %v3375_v35, %s4789_s20  ;;  %v3535_v24 = vmul.f32 0.1, %v7072_v33 }
0x139c   : > { %3392 = vrot.lane.b32.xlu0 %v3374_v1, %s4789_s20  ;;  %v3359_v26 = vpop.permute.xlu1 %3358  ;;  %v3534_v0 = vmul.f32 0.1, %v7078_v60 }
0x139d   : > { %v3377_v47 = vmul.f32 %v3359_v26, %v6988_v5  ;;  %v3357_v58 = vpop.permute.xlu0 %3356  ;;  %v7089_v5 = vadd.f32 %v3265_v10, %v6995_v39 }
0x139e   : > { %v3376_v61 = vmul.f32 %v3357_v58, %v6990_v3  ;;  %v7097_v3 = vsub.f32 %v7083_v56, %v3307_v54 }
0x139f   : > { %3398 = vrot.lane.b32.xlu1 %v3377_v47, %s4789_s20  ;;  %v7100_v9 = vsub.f32 %v7089_v5, %v3305_v17 }
0x13a0   : > { %3396 = vrot.lane.b32.xlu0 %v3376_v61, %s4789_s20  ;;  %v3363_v31 = vpop.permute.xlu1 %3362  ;;  %v3539_v38 = vmul.f32 0.1, %v7097_v3 }
0x13a1   : > { %v3379_v25 = vmul.f32 %v3363_v31, %v6992_v7  ;;  %v3361_v4 = vpop.permute.xlu0 %3360  ;;  %v3533_v7 = vmul.f32 0.1, %v7058_v46  ;;  %v3538_v34 = vmul.f32 0.1, %v7100_v9 }
0x13a2   : > { %v3378_v44 = vmul.f32 %v3361_v4, %v6995_v39  ;;  %v3532_v39 = vmul.f32 0.1, %v7064_v45 }
0x13a3   : > { %3402 = vrot.lane.b32.xlu1 %v3379_v25, %s4789_s20 }
0x13a4   : > { %3400 = vrot.lane.b32.xlu0 %v3378_v44, %s4789_s20 }
0x13a7   : > { %3502 = vrot.lane.b32.xlu1 %v7058_v46, %s4790_s1 }
0x13a8   : > { %3500 = vrot.lane.b32.xlu0 %v7064_v45, %s4790_s1 }
0x13ab   : > { %3506 = vrot.lane.b32.xlu1 %v7072_v33, %s4790_s1 }
0x13ac   : > { %3504 = vrot.lane.b32.xlu0 %v7078_v60, %s4790_s1 }
0x13af   : > { %3510 = vrot.lane.b32.xlu1 %v7086_v29, %s4790_s1 }
0x13b0   : > { %3508 = vrot.lane.b32.xlu0 %v7092_v52, %s4790_s1 }
0x13b3   : > { %3514 = vrot.lane.b32.xlu1 %v7097_v3, %s4790_s1 }
0x13b4   : > { %3512 = vrot.lane.b32.xlu0 %v7100_v9, %s4790_s1 }
0x13b7   : > { %3550 = vrot.lane.b32.xlu1 %v3533_v7, %s4791_s11 }
0x13b8   : > { %3548 = vrot.lane.b32.xlu0 %v3532_v39, %s4791_s11 }
0x13bb   : > { %3554 = vrot.lane.b32.xlu1 %v3535_v24, %s4791_s11 }
0x13bc   : > { %3552 = vrot.lane.b32.xlu0 %v3534_v0, %s4791_s11 }
0x13bf   : > { %3558 = vrot.lane.b32.xlu1 %v3537_v41, %s4791_s11 }
0x13c0   : > { %3556 = vrot.lane.b32.xlu0 %v3536_v21, %s4791_s11 }
0x13c3   : > { %3562 = vrot.lane.b32.xlu1 %v3539_v38, %s4791_s11 }
0x13c4   : > { %3560 = vrot.lane.b32.xlu0 %v3538_v34, %s4791_s11 }
0x13c6   : > { %v3461_v23 = vpop.permute.xlu0 %3460 }
0x13c7   : > { %v3484_v14 = vsub.f32 %v7049_v40, %v3461_v23 }
0x13c9   : > { %v3589_v19 = vmul.f32 0.1, %v3484_v14 }
0x13ca   : > { %v3465_v22 = vpop.permute.xlu0 %3464 }
0x13cb   : > { %v3463_v50 = vpop.permute.xlu1 %3462  ;;  %v3486_v18 = vsub.f32 %v7061_v59, %v3465_v22  ;;  %3605 = vrot.lane.b32.xlu0 %v3589_v19, %s4791_s11 }
0x13cc   : > { %v3485_v49 = vsub.f32 %v7045_v28, %v3463_v50 }
0x13cd   : > { %v3591_v15 = vmul.f32 0.1, %v3486_v18 }
0x13ce   : > { %v3590_v8 = vmul.f32 0.1, %v3485_v49 }
0x13cf   : > { %v3467_v62 = vpop.permute.xlu1 %3466  ;;  %3609 = vrot.lane.b32.xlu0 %v3591_v15, %s4791_s11 }
0x13d0   : > { %v3487_v63 = vsub.f32 %v7055_v42, %v3467_v62  ;;  %3607 = vrot.lane.b32.xlu1 %v3590_v8, %s4791_s11 }
0x13d2   : > { %v3592_v53 = vmul.f32 0.1, %v3487_v63 }
0x13d4   : > { %3611 = vrot.lane.b32.xlu1 %v3592_v53, %s4791_s11 }
0x13de   : > { %v3471_v10 = vpop.permute.xlu1 %3470 }
0x13df   : > { %v3469_v43 = vpop.permute.xlu0 %3468  ;;  %v3489_v30 = vsub.f32 %v7069_v27, %v3471_v10 }
0x13e0   : > { %v3488_v51 = vsub.f32 %v7075_v13, %v3469_v43 }
0x13e1   : > { %v3594_v20 = vmul.f32 0.1, %v3489_v30 }
0x13e2   : > { %v3593_v32 = vmul.f32 0.1, %v3488_v51 }
0x13e3   : > { %3615 = vrot.lane.b32.xlu1 %v3594_v20, %s4791_s11 }
0x13e4   : > { %3613 = vrot.lane.b32.xlu0 %v3593_v32, %s4791_s11 }
0x13e5   : > { %v3475_v55 = vpop.permute.xlu1 %3474 }
0x13e6   : > { %v3473_v11 = vpop.permute.xlu0 %3472  ;;  %v3491_v54 = vsub.f32 %v7083_v56, %v3475_v55 }
0x13e7   : > { %v3490_v6 = vsub.f32 %v7089_v5, %v3473_v11 }
0x13e8   : > { %v3596_v17 = vmul.f32 0.1, %v3491_v54 }
0x13e9   : > { %v3595_v48 = vmul.f32 0.1, %v3490_v6 }
0x13ea   : > { %3619 = vrot.lane.b32.xlu1 %v3596_v17, %s4791_s11 }
0x13eb   : > { %3617 = vrot.lane.b32.xlu0 %v3595_v48, %s4791_s11 }
0x1409   : > { %v3391_v36 = vpop.permute.xlu1 %3390 }
0x140a   : > { %v3389_v12 = vpop.permute.xlu0 %3388  ;;  %v3413_v8 = vsub.f32 %v7045_v28, %v3391_v36 }
0x140b   : > { %v3412_v23 = vsub.f32 %v7049_v40, %v3389_v12 }
0x140d   : > { %v3395_v16 = vpop.permute.xlu1 %3394 }
0x140e   : > { %v3393_v57 = vpop.permute.xlu0 %3392 }
0x140f   : > { %v3414_v62 = vsub.f32 %v7061_v59, %v3393_v57 }
0x1411   : > { %v7136_v35 = vpop.permute.xlu1 %3398 }
0x1412   : > { %v3397_v2 = vpop.permute.xlu0 %3396 }
0x1413   : > { %v3416_v28 = vsub.f32 %v7075_v13, %v3397_v2 }
0x1415   : > { %v7140_v1 = vpop.permute.xlu1 %3402 }
0x1416   : > { %v7138_v37 = vpop.permute.xlu0 %3400 }
0x1419   : > { %v3503_v47 = vpop.permute.xlu1 %3502 }
0x141a   : > { %v3501_v26 = vpop.permute.xlu0 %3500  ;;  %v3525_v19 = vadd.f32 %v3503_v47, %v7058_v46  ;;  %v3415_v46 = vsub.f32 %v7055_v42, %v3395_v16 }
0x141b   : > { %v3524_v34 = vadd.f32 %v3501_v26, %v7064_v45 }
0x141d   : > { %v3507_v61 = vpop.permute.xlu1 %3506 }
0x141e   : > { %v3505_v58 = vpop.permute.xlu0 %3504  ;;  %v3527_v45 = vadd.f32 %v3507_v61, %v7072_v33  ;;  %v3417_v33 = vsub.f32 %v7069_v27, %v7136_v35 }
0x141f   : > { %v3526_v49 = vadd.f32 %v3505_v58, %v7078_v60 }
0x1421   : > { %v3511_v25 = vpop.permute.xlu1 %3510 }
0x1422   : > { %v3509_v31 = vpop.permute.xlu0 %3508  ;;  %v3529_v42 = vadd.f32 %v3511_v25, %v7086_v29 }
0x1423   : > { %v3528_v40 = vadd.f32 %v3509_v31, %v7092_v52  ;;  %v3418_v52 = vsub.f32 %v7089_v5, %v7138_v37 }
0x1425   : > { %v3515_v44 = vpop.permute.xlu1 %3514 }
0x1426   : > { %v3513_v4 = vpop.permute.xlu0 %3512 }
0x1427   : > { %v3530_v17 = vadd.f32 %v3513_v4, %v7100_v9  ;;  %v3531_v9 = vadd.f32 %v3515_v44, %v7097_v3 }
0x1429   : > { %v3551_v39 = vpop.permute.xlu1 %3550 }
0x142a   : > { %v3549_v7 = vpop.permute.xlu0 %3548  ;;  %v3573_v15 = vadd.f32 %v3551_v39, %v3525_v19 }
0x142b   : > { %v3572_v14 = vadd.f32 %v3549_v7, %v3524_v34 }
0x142c   : > { %v3582_v30 = vmul.f32 0.33333334, %v3573_v15 }
0x142d   : > { %v3555_v0 = vpop.permute.xlu1 %3554  ;;  %v3581_v43 = vmul.f32 0.33333334, %v3572_v14 }
0x142e   : > { %v3553_v24 = vpop.permute.xlu0 %3552  ;;  %v3575_v6 = vadd.f32 %v3555_v0, %v3527_v45 }
0x142f   : > { %v3574_v63 = vadd.f32 %v3553_v24, %v3526_v49  ;;  %v3419_v24 = vsub.f32 %v7083_v56, %v7140_v1 }
0x1430   : > { %v3584_v26 = vmul.f32 0.33333334, %v3575_v6 }
0x1431   : > { %v3559_v21 = vpop.permute.xlu1 %3558  ;;  %v3583_v20 = vmul.f32 0.33333334, %v3574_v63 }
0x1432   : > { %v3557_v41 = vpop.permute.xlu0 %3556  ;;  %v3577_v47 = vadd.f32 %v3559_v21, %v3529_v42 }
0x1433   : > { %v3576_v59 = vadd.f32 %v3557_v41, %v3528_v40 }
0x1434   : > { %v3586_v0 = vmul.f32 0.33333334, %v3577_v47 }
0x1435   : > { %v3563_v50 = vpop.permute.xlu1 %3562  ;;  %v3585_v27 = vmul.f32 0.33333334, %v3576_v59 }
0x1436   : > { %v3561_v38 = vpop.permute.xlu0 %3560  ;;  %v3579_v41 = vadd.f32 %v3563_v50, %v3531_v9 }
0x1437   : > { %v3578_v35 = vadd.f32 %v3561_v38, %v3530_v17 }
0x1438   : > { %v3588_v49 = vmul.f32 0.33333334, %v3579_v41 }
0x1439   : > { %v3587_v21 = vmul.f32 0.33333334, %v3578_v35 }
0x143d   : > { %v3606_v22 = vpop.permute.xlu0 %3605 }
0x143e   : > { %v3629_v18 = vadd.f32 %v3606_v22, %v3412_v23 }
0x1440   : > { %v3638_v51 = vmul.f32 0.5, %v3629_v18 }
0x1441   : > { %v3610_v32 = vpop.permute.xlu0 %3609 }
0x1442   : > { %v3608_v53 = vpop.permute.xlu1 %3607  ;;  %v3646_v10 = vadd.f32 %v3638_v51, %v3581_v43  ;;  %v3631_v60 = vadd.f32 %v3610_v32, %v3414_v62 }
0x1443   : > { %v3630_v11 = vadd.f32 %v3608_v53, %v3413_v8 }
0x1444   : > { %v3654_v48 = vmul.f32 0.5, %v3646_v10  ;;  %v3640_v54 = vmul.f32 0.5, %v3631_v60 }
0x1445   : > { %v3639_v55 = vmul.f32 0.5, %v3630_v11 }
0x1446   : > { %v3612_v12 = vpop.permute.xlu1 %3611  ;;  %3662 = vst.msk [vmem:[%s5150_s14] sm:$0xff] %vm1581_vm5, %v3654_v48  ;;  %v3648_v57 = vadd.f32 %v3640_v54, %v3583_v20 }
0x1447   : > { %v3647_v13 = vadd.f32 %v3639_v55, %v3582_v30  ;;  %v3632_v16 = vadd.f32 %v3612_v12, %v3415_v46 }
0x1448   : > { %v3656_v5 = vmul.f32 0.5, %v3648_v57 }
0x1449   : > { %v3655_v58 = vmul.f32 0.5, %v3647_v13  ;;  %v3641_v37 = vmul.f32 0.5, %v3632_v16 }
0x144a   : > { %3664 = vst.msk [vmem:[%s5150_s14 + $0x10] sm:$0xff] %vm1581_vm5, %v3656_v5 }
0x144b   : > { %3663 = vst.msk [vmem:[%s5150_s14 + $0x8] sm:$0xff] %vm1581_vm5, %v3655_v58  ;;  %v3649_v25 = vadd.f32 %v3641_v37, %v3584_v26 }
0x144d   : > { %v3657_v3 = vmul.f32 0.5, %v3649_v25 }
0x144f   : > { %3665 = vst.msk [vmem:[%s5150_s14 + $0x18] sm:$0xff] %vm1581_vm5, %v3657_v3 }
0x1455   : > { %v3616_v61 = vpop.permute.xlu1 %3615 }
0x1456   : > { %v3614_v36 = vpop.permute.xlu0 %3613  ;;  %v3634_v7 = vadd.f32 %v3616_v61, %v3417_v33 }
0x1457   : > { %v3633_v2 = vadd.f32 %v3614_v36, %v3416_v28 }
0x1458   : > { %v3643_v38 = vmul.f32 0.5, %v3634_v7 }
0x1459   : > { %v3642_v29 = vmul.f32 0.5, %v3633_v2 }
0x145a   : > { %v3651_v14 = vadd.f32 %v3643_v38, %v3586_v0 }
0x145b   : > { %v3650_v4 = vadd.f32 %v3642_v29, %v3585_v27 }
0x145c   : > { %v3620_v23 = vpop.permute.xlu1 %3619  ;;  %v3659_v56 = vmul.f32 0.5, %v3651_v14 }
0x145d   : > { %v3618_v31 = vpop.permute.xlu0 %3617  ;;  %v3658_v44 = vmul.f32 0.5, %v3650_v4  ;;  %v3636_v22 = vadd.f32 %v3620_v23, %v3419_v24 }
0x145e   : > { %v3635_v39 = vadd.f32 %v3618_v31, %v3418_v52  ;;  %3667 = vst.msk [vmem:[%s5150_s14 + $0x28] sm:$0xff] %vm1581_vm5, %v3659_v56 }
0x145f   : > { %3666 = vst.msk [vmem:[%s5150_s14 + $0x20] sm:$0xff] %vm1581_vm5, %v3658_v44  ;;  %v3645_v50 = vmul.f32 0.5, %v3636_v22 }
0x1460   : > { %v3644_v34 = vmul.f32 0.5, %v3635_v39 }
0x1461   : > { %v3653_v18 = vadd.f32 %v3645_v50, %v3588_v49 }
0x1462   : > { %v3652_v19 = vadd.f32 %v3644_v34, %v3587_v21 }
0x1463   : > { %v3661_v8 = vmul.f32 0.5, %v3653_v18 }
0x1464   : > { %v3660_v1 = vmul.f32 0.5, %v3652_v19 }
0x1465   : > { %3669 = vst.msk [vmem:[%s5150_s14 + $0x38] sm:$0xff] %vm1581_vm5, %v3661_v8 }
0x1466   : > { %3668 = vst.msk [vmem:[%s5150_s14 + $0x30] sm:$0xff] %vm1581_vm5, %v3660_v1 }
0x1467 PF: > { %s23_s25 = sadd.s32 1, %s4763_s25   ;;  %s7474_s5 = sld [smem:[#allocation14_spill]] }
0x1468   : > { %p20_p7 = scmp.ge.s32.totalorder %s23_s25, 6   ;;  %s7475_s17 = sld [smem:[#allocation17_spill]] }
0x1469   : > { %s7476_s6 = sld [smem:[#allocation15_spill]]  ;;  %s7477_s20 = sld [smem:[#allocation19_spill]] }
0x146a   : > { %s7478_s13 = sld [smem:[#allocation16_spill]]  ;;  %s7479_s26 = sld [smem:[#allocation18_spill]] }
0x146b   : > { %s7480_s15 = smov %s4727_s16  ;;  %s7482_s18 = smov %s4739_s19 }
0x146c   : > { %s7484_s21 = smov %s4755_s23  ;;  %s7485_s22 = smov %s4759_s24 }
0x146d   : > { %s7481_s16 = smov %s7474_s5  ;;  %22 = sbr.rel (!%p20_p7) target bundleno = 14 (0xe), region = 140 }
0x146f   : > { %s7483_s19 = smov %s7476_s6 }
0x1470   : > { %s7486_s23 = smov %s7478_s13  ;;  %s7487_s24 = smov %s7479_s26 }
0x1474   :  { %3692 = vsyncpa [#allocation4], 1 }
0x1475   :  { %3694 = vsyncpa [#allocation4 + $0x1], 1 }
0x1476   :  { %3695 = vsyncpa [#allocation6], 1 }
0x1477   :  { %3697 = vsyncpa [#allocation6 + $0x1], 1 }
0x1478   :  { %3698 = vsyncpa [#allocation9], 1 }
0x1479   :  { %3700 = vsyncpa [#allocation9 + $0x1], 1 }

</bundles_post_ra>
